<compile_context>
chip_gen: v5e
topology: v5e:2x2
jax: 0.10.0
libtpu: 0.0.40
codegen_flags: <defaults>
</compile_context>

<pallas_src>
import functools

import jax
import jax.numpy as jnp
from jax.experimental import pallas as pl
from jax.experimental.pallas import tpu as pltpu


def _round_up(n, m):
    return ((n + m - 1) // m) * m


def _vmem_limit_bytes():
    # Size the scoped-VMEM request to the part we are on: ~7/8 of physical
    # (raises the 32 MiB default on 128 MiB v5e/v6e, leaves headroom on v7x).
    try:
        cap = int(pltpu.get_tpu_info().vmem_capacity_bytes)
    except Exception:
        cap = 64 * 1024 * 1024
    return max(32 * 1024 * 1024, min((cap * 7) // 8, 112 * 1024 * 1024))


_VMEM_LIMIT = _vmem_limit_bytes()


def _unroll_for(T):
    """Small integer unroll so the LLO scheduler can overlap fwd/bwd work."""
    if T <= 8:
        return True            # fully unroll tiny loops
    for u in (4, 2):
        if T % u == 0:
            return u
    return 1


# ----------------------------------------------------------------------------
# Pallas kernels
# ----------------------------------------------------------------------------
def se_scale_kernel(avg_ref, w1_ref, s1_ref, b1_ref, w2_ref, s2_ref, b2_ref, o_ref):
    """SE excitation only: scale = hsigmoid(BN2(W2 @ relu(BN1(W1 @ avg)))).

    avg_ref: (B, C) channel means. The (W, B, C) * scale multiply is folded
    into the XLA fusion that builds the LSTM input layout (no SE HBM roundtrip).
    """
    z = jnp.dot(avg_ref[...], w1_ref[...], preferred_element_type=jnp.float32)
    z = jnp.maximum(z * s1_ref[...] + b1_ref[...], 0.0)          # BN1 (folded) + ReLU
    z = jnp.dot(z, w2_ref[...], preferred_element_type=jnp.float32)
    z = z * s2_ref[...] + b2_ref[...]                            # BN2 (folded)
    o_ref[...] = jnp.clip(z + 3.0, 0.0, 6.0) * (1.0 / 6.0)       # hsigmoid


def bilstm_layer_kernel(x_ref, wih_ref, bih_ref, whh_f_ref, whh_b_ref,
                        ef_ref, eb_ref, ebias_ref, out_ref,
                        xproj, hf_buf, hb_buf, *, T, B, H, unroll):
    """Fused bidirectional LSTM layer: input projection + recurrence + embedding.

    x_ref:     (T*B, In)   sequence, time-major rows (row t*B+b == (t, b))
    wih_ref:   (In, 8H)    [Wih_f | Wih_b].T (fwd+bwd fused), bih_ref: (1, 8H)
    whh_*_ref: (H, 4H)     recurrent weights (transposed), PyTorch gate order i,f,g,o
    ef/eb_ref: (H, Npad)   embedding weight halves (transposed, lane-dense padded)
    out_ref:   (T*B, Npad)
    xproj/hf_buf/hb_buf: VMEM scratch (T*B, 8H) / (T*B, H) / (T*B, H)
    """
    # 1) Fused fwd|bwd input projection: one (T*B, In) @ (In, 8H) MXU pass,
    #    result stays VMEM-resident (no HBM roundtrip).
    xproj[...] = (
        jnp.dot(x_ref[...], wih_ref[...], preferred_element_type=jnp.float32)
        + bih_ref[...]
    )

    def sigmoid(v):
        # 0.5*tanh(0.5*v)+0.5: one EUP push instead of exp + reciprocal.
        return 0.5 * jnp.tanh(0.5 * v) + 0.5

    def cell(gates, c):
        # PyTorch gate order i, f, g, o (lane-aligned slices at H multiples of 128).
        i = sigmoid(gates[:, 0 * H:1 * H])
        f = sigmoid(gates[:, 1 * H:2 * H])
        g = jnp.tanh(gates[:, 2 * H:3 * H])
        o = sigmoid(gates[:, 3 * H:4 * H])
        c_new = f * c + i * g
        return o * jnp.tanh(c_new), c_new

    def step(t, carry):
        h_f, c_f, h_b, c_b = carry
        tb = T - 1 - t
        rf = pl.multiple_of(t * B, B)
        rb = pl.multiple_of(tb * B, B)
        # Ref-level slices: only the needed 4H half of each row block is loaded.
        xg_f = xproj[pl.ds(rf, B), pl.ds(0, 4 * H)]
        xg_b = xproj[pl.ds(rb, B), pl.ds(4 * H, 4 * H)]
        g_f = xg_f + jnp.dot(h_f, whh_f_ref[...],
                             preferred_element_type=jnp.float32)
        g_b = xg_b + jnp.dot(h_b, whh_b_ref[...],
                             preferred_element_type=jnp.float32)
        h_f, c_f = cell(g_f, c_f)
        h_b, c_b = cell(g_b, c_b)
        hf_buf[pl.ds(rf, B), :] = h_f          # forward hidden at time t
        hb_buf[pl.ds(rb, B), :] = h_b          # backward hidden aligned to time tb
        return h_f, c_f, h_b, c_b

    zeros = jnp.zeros((B, H), jnp.float32)
    jax.lax.fori_loop(0, T, step, (zeros, zeros, zeros, zeros), unroll=unroll)

    # 2) Fused embedding over the whole sequence: out = hf @ Ef + hb @ Eb + bias
    #    as ONE (T*B, H) @ (H, Npad) matmul per direction (lane-dense output).
    out_ref[...] = (
        jnp.dot(hf_buf[...], ef_ref[...], preferred_element_type=jnp.float32)
        + jnp.dot(hb_buf[...], eb_ref[...], preferred_element_type=jnp.float32)
        + ebias_ref[...]
    )


# ----------------------------------------------------------------------------
# Pallas wrappers
# ----------------------------------------------------------------------------
def pallas_se_scale(avg, se):
    Bp, C = avg.shape
    Cr = se["w1_t"].shape[1]
    return pl.pallas_call(
        se_scale_kernel,
        out_shape=jax.ShapeDtypeStruct((Bp, C), jnp.float32),
        grid=(1,),
        in_specs=[
            pl.BlockSpec((Bp, C), lambda i: (0, 0)),
            pl.BlockSpec((C, Cr), lambda i: (0, 0)),
            pl.BlockSpec((1, Cr), lambda i: (0, 0)),
            pl.BlockSpec((1, Cr), lambda i: (0, 0)),
            pl.BlockSpec((Cr, C), lambda i: (0, 0)),
            pl.BlockSpec((1, C), lambda i: (0, 0)),
            pl.BlockSpec((1, C), lambda i: (0, 0)),
        ],
        out_specs=pl.BlockSpec((Bp, C), lambda i: (0, 0)),
        compiler_params=pltpu.CompilerParams(
            dimension_semantics=("arbitrary",)),
    )(avg, se["w1_t"], se["s1"], se["b1"], se["w2_t"], se["s2"], se["b2"])


def pallas_bilstm_layer(x2, lp, *, T, B):
    """x2: (T*B, In) -> (T*B, Npad) for one fused BidirectionalLSTM block."""
    TB, In = x2.shape
    assert TB == T * B
    H = lp["whh_f_t"].shape[0]
    G8 = lp["w_ih_cat"].shape[1]
    Np = lp["emb_f"].shape[1]
    kernel = functools.partial(bilstm_layer_kernel, T=T, B=B, H=H,
                               unroll=_unroll_for(T))
    return pl.pallas_call(
        kernel,
        out_shape=jax.ShapeDtypeStruct((TB, Np), jnp.float32),
        grid=(1,),
        in_specs=[
            pl.BlockSpec((TB, In), lambda i: (0, 0)),
            pl.BlockSpec((In, G8), lambda i: (0, 0)),
            pl.BlockSpec((1, G8), lambda i: (0, 0)),
            pl.BlockSpec((H, 4 * H), lambda i: (0, 0)),
            pl.BlockSpec((H, 4 * H), lambda i: (0, 0)),
            pl.BlockSpec((H, Np), lambda i: (0, 0)),
            pl.BlockSpec((H, Np), lambda i: (0, 0)),
            pl.BlockSpec((1, Np), lambda i: (0, 0)),
        ],
        out_specs=pl.BlockSpec((TB, Np), lambda i: (0, 0)),
        scratch_shapes=[
            pltpu.VMEM((TB, G8), jnp.float32),   # xproj (fwd|bwd gates)
            pltpu.VMEM((TB, H), jnp.float32),    # forward hiddens
            pltpu.VMEM((TB, H), jnp.float32),    # backward hiddens
        ],
        compiler_params=pltpu.CompilerParams(
            dimension_semantics=("arbitrary",),
            vmem_limit_bytes=_VMEM_LIMIT),
    )(x2, lp["w_ih_cat"], lp["b_cat"], lp["whh_f_t"], lp["whh_b_t"],
      lp["emb_f"], lp["emb_bw"], lp["emb_bias"])


def crnn_head_forward(x, params, *, classes):
    """x: (B, C, H, W) NCHW with H == 1.  Returns (W, B, classes)."""
    B, C, Hh, W = x.shape
    assert Hh == 1, "CRNN_Head expects feature-map height 1 (squeeze(2))."
    B_pad = _round_up(B, 8)                    # full sublanes for all (B, ...) tiles
    x3 = x.reshape(B, C, W).astype(jnp.float32)
    if B_pad > B:
        x3 = jnp.concatenate(
            [x3, jnp.zeros((B_pad - B, C, W), jnp.float32)], axis=0)

    # SE attention: channel mean (XLA reduce) -> tiny excitation kernel ->
    # the (B, C) scale is folded into the XLA transpose that builds the
    # time-major LSTM input, so the scaled map hits HBM exactly once.
    se = params["se"]
    avg = jnp.mean(x3, axis=2)                               # (B_pad, C)
    scale = pallas_se_scale(avg, se)                         # (B_pad, C)
    x_t = jnp.transpose(x3, (2, 0, 1)) * scale[None, :, :]   # (W, B_pad, C)
    seq2 = x_t.reshape(W * B_pad, C)

    for lp in params["lstms"]:
        seq2 = pallas_bilstm_layer(seq2, lp, T=W, B=B_pad)

    n_out_pad = params["lstms"][-1]["emb_f"].shape[1]
    out = seq2.reshape(W, B_pad, n_out_pad)
    return out[:, :B, :classes]                              # strip batch / lane padding


# ----------------------------------------------------------------------------
# Deterministic parameter initialization (mirrors weights_init / nn defaults),
# stored directly in the fused / transposed / lane-padded kernel layouts.
# ----------------------------------------------------------------------------
def init_params(key, inchannel, hiddenchannel, classes, lstm_num=2, reduction=4):
    cr = inchannel // reduction
    eps = 1e-5
    keys = list(jax.random.split(key, 4 + 10 * lstm_num))
    kit = iter(keys)

    # SeModule: Conv2d ~ N(0, 0.02); BN weight ~ N(1, 0.02), bias 0,
    # fresh running stats (0, 1) -> folded eval-mode scale/shift.
    w1 = 0.02 * jax.random.normal(next(kit), (cr, inchannel), jnp.float32)
    g1 = 1.0 + 0.02 * jax.random.normal(next(kit), (cr,), jnp.float32)
    w2 = 0.02 * jax.random.normal(next(kit), (inchannel, cr), jnp.float32)
    g2 = 1.0 + 0.02 * jax.random.normal(next(kit), (inchannel,), jnp.float32)
    se = dict(
        w1_t=w1.T,                                             # (C, Cr)
        s1=(g1 / jnp.sqrt(1.0 + eps)).reshape(1, cr),
        b1=jnp.zeros((1, cr), jnp.float32),
        w2_t=w2.T,                                             # (Cr, C)
        s2=(g2 / jnp.sqrt(1.0 + eps)).reshape(1, inchannel),
        b2=jnp.zeros((1, inchannel), jnp.float32),
    )

    # LSTM default init U(-k, k), k = 1/sqrt(hidden); embedding Linear ~ N(0, 0.001).
    k = 1.0 / float(hiddenchannel) ** 0.5
    H = hiddenchannel
    lstms = []
    in_actual = inchannel     # real feature width seen by this layer
    in_padded = inchannel     # width of the (lane-padded) tensor actually fed in
    for layer in range(lstm_num):
        n_out = classes if layer == lstm_num - 1 else hiddenchannel
        n_out_pad = _round_up(n_out, 128)      # lane-dense output stores

        def u(shape):
            return jax.random.uniform(next(kit), shape, jnp.float32, -k, k)

        wih_f = u((4 * H, in_actual)); whh_f = u((4 * H, H))
        bih_f = u((4 * H,));           bhh_f = u((4 * H,))
        wih_b = u((4 * H, in_actual)); whh_b = u((4 * H, H))
        bih_b = u((4 * H,));           bhh_b = u((4 * H,))
        emb_w = 0.001 * jax.random.normal(next(kit), (n_out, 2 * H), jnp.float32)
        emb_b = jnp.zeros((n_out,), jnp.float32)

        # Fused fwd|bwd input projection weight; zero rows for lane padding of
        # the previous layer's output (those input columns are exactly zero).
        w_ih_cat = jnp.concatenate([wih_f.T, wih_b.T], axis=1)        # (In, 8H)
        if in_padded > in_actual:
            w_ih_cat = jnp.concatenate(
                [w_ih_cat,
                 jnp.zeros((in_padded - in_actual, 8 * H), jnp.float32)], axis=0)

        emb_f = emb_w[:, :H].T                                         # (H, nOut)
        emb_bw = emb_w[:, H:].T
        pad_cols = n_out_pad - n_out
        if pad_cols:
            zc = jnp.zeros((H, pad_cols), jnp.float32)
            emb_f = jnp.concatenate([emb_f, zc], axis=1)
            emb_bw = jnp.concatenate([emb_bw, zc], axis=1)
        emb_bias = jnp.concatenate(
            [emb_b, jnp.zeros((pad_cols,), jnp.float32)]).reshape(1, n_out_pad)

        lstms.append(dict(
            w_ih_cat=w_ih_cat,                                          # (In_pad, 8H)
            b_cat=jnp.concatenate([bih_f + bhh_f, bih_b + bhh_b]).reshape(1, 8 * H),
            whh_f_t=whh_f.T,                                            # (H, 4H)
            whh_b_t=whh_b.T,                                            # (H, 4H)
            emb_f=emb_f,                                                # (H, nOut_pad)
            emb_bw=emb_bw,                                              # (H, nOut_pad)
            emb_bias=emb_bias,                                          # (1, nOut_pad)
        ))
        in_actual = hiddenchannel
        in_padded = n_out_pad
    return dict(se=se, lstms=lstms)


# ----------------------------------------------------------------------------
if __name__ == "__main__":
    # Small shapes consistent with the module: (B, C, H, W) with H == 1.
    B, C, Hh, W = 2, 16, 1, 8
    hiddenchannel = 32
    classes = 41

    key = jax.random.PRNGKey(0)
    kx, kp = jax.random.split(key)
    x = jax.random.normal(kx, (B, C, Hh, W), jnp.float32)
    params = init_params(kp, inchannel=C, hiddenchannel=hiddenchannel,
                         classes=classes, lstm_num=2)

    fwd = jax.jit(functools.partial(crnn_head_forward, classes=classes))
    out = jax.block_until_ready(fwd(x, params))

    assert out.shape == (W, B, classes), out.shape
    assert bool(jnp.all(jnp.isfinite(out)))
    print("KERNEL_OK")
</pallas_src>

<mosaic_0001>
module attributes {stable_mosaic.version = 11 : i64} {
  func.func @se_scale_kernel(%arg0: i32, %arg1: memref<8x16xf32, #tpu.memory_space<vmem>>, %arg2: memref<16x4xf32, #tpu.memory_space<vmem>>, %arg3: memref<1x4xf32, #tpu.memory_space<vmem>>, %arg4: memref<1x4xf32, #tpu.memory_space<vmem>>, %arg5: memref<4x16xf32, #tpu.memory_space<vmem>>, %arg6: memref<1x16xf32, #tpu.memory_space<vmem>>, %arg7: memref<1x16xf32, #tpu.memory_space<vmem>>, %arg8: memref<8x16xf32, #tpu.memory_space<vmem>>) attributes {dimension_semantics = [#tpu.dimension_semantics<arbitrary>], iteration_bounds = array<i64: 1>, scalar_prefetch = 0 : i64, scratch_operands = 0 : i64, tpu.core_type = #tpu.core_type<tc>, window_params = [{pipeline_mode = #tpu.pipeline_mode<synchronous>, transform_indices = @transform_0, window_bounds = array<i64: 8, 16>}, {pipeline_mode = #tpu.pipeline_mode<synchronous>, transform_indices = @transform_1, window_bounds = array<i64: 16, 4>}, {pipeline_mode = #tpu.pipeline_mode<synchronous>, transform_indices = @transform_2, window_bounds = array<i64: 1, 4>}, {pipeline_mode = #tpu.pipeline_mode<synchronous>, transform_indices = @transform_3, window_bounds = array<i64: 1, 4>}, {pipeline_mode = #tpu.pipeline_mode<synchronous>, transform_indices = @transform_4, window_bounds = array<i64: 4, 16>}, {pipeline_mode = #tpu.pipeline_mode<synchronous>, transform_indices = @transform_5, window_bounds = array<i64: 1, 16>}, {pipeline_mode = #tpu.pipeline_mode<synchronous>, transform_indices = @transform_6, window_bounds = array<i64: 1, 16>}, {pipeline_mode = #tpu.pipeline_mode<synchronous>, transform_indices = @transform_7, window_bounds = array<i64: 8, 16>}]} {
    %c0 = arith.constant 0 : index
    %c0_0 = arith.constant 0 : index
    %0 = vector.load %arg1[%c0, %c0_0] : memref<8x16xf32, #tpu.memory_space<vmem>>, vector<8x16xf32>
    %c0_1 = arith.constant 0 : index
    %c0_2 = arith.constant 0 : index
    %1 = vector.load %arg2[%c0_1, %c0_2] : memref<16x4xf32, #tpu.memory_space<vmem>>, vector<16x4xf32>
    %cst = arith.constant dense<0.000000e+00> : vector<8x4xf32>
    %2 = tpu.matmul %0, %1, %cst {dimension_numbers = #tpu.dot_dimension_numbers<[1], [0], [0], [1], [0, 0, 1, 1], [], []>} : vector<8x16xf32>, vector<16x4xf32>, vector<8x4xf32> -> vector<8x4xf32>
    %c0_3 = arith.constant 0 : index
    %c0_4 = arith.constant 0 : index
    %3 = vector.load %arg3[%c0_3, %c0_4] : memref<1x4xf32, #tpu.memory_space<vmem>>, vector<1x4xf32>
    %4 = vector.broadcast %3 : vector<1x4xf32> to vector<8x4xf32>
    %5 = arith.mulf %2, %4 : vector<8x4xf32>
    %c0_5 = arith.constant 0 : index
    %c0_6 = arith.constant 0 : index
    %6 = vector.load %arg4[%c0_5, %c0_6] : memref<1x4xf32, #tpu.memory_space<vmem>>, vector<1x4xf32>
    %7 = vector.broadcast %6 : vector<1x4xf32> to vector<8x4xf32>
    %8 = arith.addf %5, %7 : vector<8x4xf32>
    %cst_7 = arith.constant 0.000000e+00 : f32
    %9 = vector.broadcast %cst_7 : f32 to vector<8x4xf32>
    %10 = arith.maximumf %8, %9 : vector<8x4xf32>
    %c0_8 = arith.constant 0 : index
    %c0_9 = arith.constant 0 : index
    %11 = vector.load %arg5[%c0_8, %c0_9] : memref<4x16xf32, #tpu.memory_space<vmem>>, vector<4x16xf32>
    %cst_10 = arith.constant dense<0.000000e+00> : vector<8x16xf32>
    %12 = tpu.matmul %10, %11, %cst_10 {dimension_numbers = #tpu.dot_dimension_numbers<[1], [0], [0], [1], [0, 0, 1, 1], [], []>} : vector<8x4xf32>, vector<4x16xf32>, vector<8x16xf32> -> vector<8x16xf32>
    %c0_11 = arith.constant 0 : index
    %c0_12 = arith.constant 0 : index
    %13 = vector.load %arg6[%c0_11, %c0_12] : memref<1x16xf32, #tpu.memory_space<vmem>>, vector<1x16xf32>
    %14 = vector.broadcast %13 : vector<1x16xf32> to vector<8x16xf32>
    %15 = arith.mulf %12, %14 : vector<8x16xf32>
    %c0_13 = arith.constant 0 : index
    %c0_14 = arith.constant 0 : index
    %16 = vector.load %arg7[%c0_13, %c0_14] : memref<1x16xf32, #tpu.memory_space<vmem>>, vector<1x16xf32>
    %17 = vector.broadcast %16 : vector<1x16xf32> to vector<8x16xf32>
    %18 = arith.addf %15, %17 : vector<8x16xf32>
    %cst_15 = arith.constant 3.000000e+00 : f32
    %19 = vector.broadcast %cst_15 : f32 to vector<8x16xf32>
    %20 = arith.addf %18, %19 : vector<8x16xf32>
    %cst_16 = arith.constant 0.000000e+00 : f32
    %cst_17 = arith.constant 6.000000e+00 : f32
    %21 = vector.broadcast %cst_16 : f32 to vector<8x16xf32>
    %22 = arith.maximumf %21, %20 : vector<8x16xf32>
    %23 = vector.broadcast %cst_17 : f32 to vector<8x16xf32>
    %24 = arith.minimumf %23, %22 : vector<8x16xf32>
    %cst_18 = arith.constant 0.166666672 : f32
    %25 = vector.broadcast %cst_18 : f32 to vector<8x16xf32>
    %26 = arith.mulf %24, %25 : vector<8x16xf32>
    %c0_19 = arith.constant 0 : index
    %c0_20 = arith.constant 0 : index
    %27 = vector.load %arg8[%c0_19, %c0_20] : memref<8x16xf32, #tpu.memory_space<vmem>>, vector<8x16xf32>
    tpu.vector_store %arg8[%c0_19, %c0_20], %26 {strides = array<i32>} : memref<8x16xf32, #tpu.memory_space<vmem>>, vector<8x16xf32>,
    return
  }
  func.func @transform_0(%arg0: i32) -> (i32, i32) {
    %c0_i32 = arith.constant 0 : i32
    %c0_i32_0 = arith.constant 0 : i32
    %c0_i32_1 = arith.constant 0 : i32
    return %c0_i32, %c0_i32_0 : i32, i32
  }
  func.func @transform_1(%arg0: i32) -> (i32, i32) {
    %c0_i32 = arith.constant 0 : i32
    %c0_i32_0 = arith.constant 0 : i32
    %c0_i32_1 = arith.constant 0 : i32
    return %c0_i32, %c0_i32_0 : i32, i32
  }
  func.func @transform_2(%arg0: i32) -> (i32, i32) {
    %c0_i32 = arith.constant 0 : i32
    %c0_i32_0 = arith.constant 0 : i32
    %c0_i32_1 = arith.constant 0 : i32
    return %c0_i32, %c0_i32_0 : i32, i32
  }
  func.func @transform_3(%arg0: i32) -> (i32, i32) {
    %c0_i32 = arith.constant 0 : i32
    %c0_i32_0 = arith.constant 0 : i32
    %c0_i32_1 = arith.constant 0 : i32
    return %c0_i32, %c0_i32_0 : i32, i32
  }
  func.func @transform_4(%arg0: i32) -> (i32, i32) {
    %c0_i32 = arith.constant 0 : i32
    %c0_i32_0 = arith.constant 0 : i32
    %c0_i32_1 = arith.constant 0 : i32
    return %c0_i32, %c0_i32_0 : i32, i32
  }
  func.func @transform_5(%arg0: i32) -> (i32, i32) {
    %c0_i32 = arith.constant 0 : i32
    %c0_i32_0 = arith.constant 0 : i32
    %c0_i32_1 = arith.constant 0 : i32
    return %c0_i32, %c0_i32_0 : i32, i32
  }
  func.func @transform_6(%arg0: i32) -> (i32, i32) {
    %c0_i32 = arith.constant 0 : i32
    %c0_i32_0 = arith.constant 0 : i32
    %c0_i32_1 = arith.constant 0 : i32
    return %c0_i32, %c0_i32_0 : i32, i32
  }
  func.func @transform_7(%arg0: i32) -> (i32, i32) {
    %c0_i32 = arith.constant 0 : i32
    %c0_i32_0 = arith.constant 0 : i32
    %c0_i32_1 = arith.constant 0 : i32
    return %c0_i32, %c0_i32_0 : i32, i32
  }
}

module attributes {stable_mosaic.version = 11 : i64} {
  func.func @bilstm_layer_kernel(%arg0: i32, %arg1: memref<64x16xf32, #tpu.memory_space<vmem>>, %arg2: memref<16x256xf32, #tpu.memory_space<vmem>>, %arg3: memref<1x256xf32, #tpu.memory_space<vmem>>, %arg4: memref<32x128xf32, #tpu.memory_space<vmem>>, %arg5: memref<32x128xf32, #tpu.memory_space<vmem>>, %arg6: memref<32x128xf32, #tpu.memory_space<vmem>>, %arg7: memref<32x128xf32, #tpu.memory_space<vmem>>, %arg8: memref<1x128xf32, #tpu.memory_space<vmem>>, %arg9: memref<64x128xf32, #tpu.memory_space<vmem>>, %arg10: memref<64x256xf32, #tpu.memory_space<vmem>>, %arg11: memref<64x32xf32, #tpu.memory_space<vmem>>, %arg12: memref<64x32xf32, #tpu.memory_space<vmem>>) attributes {dimension_semantics = [#tpu.dimension_semantics<arbitrary>], iteration_bounds = array<i64: 1>, scalar_prefetch = 0 : i64, scratch_operands = 3 : i64, tpu.core_type = #tpu.core_type<tc>, window_params = [{pipeline_mode = #tpu.pipeline_mode<synchronous>, transform_indices = @transform_0, window_bounds = array<i64: 64, 16>}, {pipeline_mode = #tpu.pipeline_mode<synchronous>, transform_indices = @transform_1, window_bounds = array<i64: 16, 256>}, {pipeline_mode = #tpu.pipeline_mode<synchronous>, transform_indices = @transform_2, window_bounds = array<i64: 1, 256>}, {pipeline_mode = #tpu.pipeline_mode<synchronous>, transform_indices = @transform_3, window_bounds = array<i64: 32, 128>}, {pipeline_mode = #tpu.pipeline_mode<synchronous>, transform_indices = @transform_4, window_bounds = array<i64: 32, 128>}, {pipeline_mode = #tpu.pipeline_mode<synchronous>, transform_indices = @transform_5, window_bounds = array<i64: 32, 128>}, {pipeline_mode = #tpu.pipeline_mode<synchronous>, transform_indices = @transform_6, window_bounds = array<i64: 32, 128>}, {pipeline_mode = #tpu.pipeline_mode<synchronous>, transform_indices = @transform_7, window_bounds = array<i64: 1, 128>}, {pipeline_mode = #tpu.pipeline_mode<synchronous>, transform_indices = @transform_8, window_bounds = array<i64: 64, 128>}]} {
    %c0 = arith.constant 0 : index
    %c0_0 = arith.constant 0 : index
    %0 = vector.load %arg1[%c0, %c0_0] : memref<64x16xf32, #tpu.memory_space<vmem>>, vector<64x16xf32>
    %c0_1 = arith.constant 0 : index
    %c0_2 = arith.constant 0 : index
    %1 = vector.load %arg2[%c0_1, %c0_2] : memref<16x256xf32, #tpu.memory_space<vmem>>, vector<16x256xf32>
    %cst = arith.constant dense<0.000000e+00> : vector<64x256xf32>
    %2 = tpu.matmul %0, %1, %cst {dimension_numbers = #tpu.dot_dimension_numbers<[1], [0], [0], [1], [0, 0, 1, 1], [], []>} : vector<64x16xf32>, vector<16x256xf32>, vector<64x256xf32> -> vector<64x256xf32>
    %c0_3 = arith.constant 0 : index
    %c0_4 = arith.constant 0 : index
    %3 = vector.load %arg3[%c0_3, %c0_4] : memref<1x256xf32, #tpu.memory_space<vmem>>, vector<1x256xf32>
    %4 = vector.broadcast %3 : vector<1x256xf32> to vector<64x256xf32>
    %5 = arith.addf %2, %4 : vector<64x256xf32>
    %c0_5 = arith.constant 0 : index
    %c0_6 = arith.constant 0 : index
    %6 = vector.load %arg10[%c0_5, %c0_6] : memref<64x256xf32, #tpu.memory_space<vmem>>, vector<64x256xf32>
    tpu.vector_store %arg10[%c0_5, %c0_6], %5 {strides = array<i32>} : memref<64x256xf32, #tpu.memory_space<vmem>>, vector<64x256xf32>,
    %cst_7 = arith.constant 0.000000e+00 : f32
    %7 = vector.broadcast %cst_7 : f32 to vector<8x32xf32>
    %c0_i32 = arith.constant 0 : i32
    %c7_i32 = arith.constant 7 : i32
    %8 = arith.subi %c7_i32, %c0_i32 : i32
    %c8_i32 = arith.constant 8 : i32
    %9 = arith.muli %c0_i32, %c8_i32 : i32
    %10 = tpu.assume_multiple %9, 8 : i32
    %c8_i32_8 = arith.constant 8 : i32
    %11 = arith.muli %8, %c8_i32_8 : i32
    %12 = tpu.assume_multiple %11, 8 : i32
    %13 = arith.index_cast %10 : i32 to index
    %c0_9 = arith.constant 0 : index
    %14 = vector.load %arg10[%13, %c0_9] : memref<64x256xf32, #tpu.memory_space<vmem>>, vector<8x128xf32>
    %15 = arith.index_cast %12 : i32 to index
    %c128 = arith.constant 128 : index
    %16 = vector.load %arg10[%15, %c128] : memref<64x256xf32, #tpu.memory_space<vmem>>, vector<8x128xf32>
    %c0_10 = arith.constant 0 : index
    %c0_11 = arith.constant 0 : index
    %17 = vector.load %arg4[%c0_10, %c0_11] : memref<32x128xf32, #tpu.memory_space<vmem>>, vector<32x128xf32>
    %cst_12 = arith.constant dense<0.000000e+00> : vector<8x128xf32>
    %18 = tpu.matmul %7, %17, %cst_12 {dimension_numbers = #tpu.dot_dimension_numbers<[1], [0], [0], [1], [0, 0, 1, 1], [], []>} : vector<8x32xf32>, vector<32x128xf32>, vector<8x128xf32> -> vector<8x128xf32>
    %19 = arith.addf %14, %18 : vector<8x128xf32>
    %c0_13 = arith.constant 0 : index
    %c0_14 = arith.constant 0 : index
    %20 = vector.load %arg5[%c0_13, %c0_14] : memref<32x128xf32, #tpu.memory_space<vmem>>, vector<32x128xf32>
    %cst_15 = arith.constant dense<0.000000e+00> : vector<8x128xf32>
    %21 = tpu.matmul %7, %20, %cst_15 {dimension_numbers = #tpu.dot_dimension_numbers<[1], [0], [0], [1], [0, 0, 1, 1], [], []>} : vector<8x32xf32>, vector<32x128xf32>, vector<8x128xf32> -> vector<8x128xf32>
    %22 = arith.addf %16, %21 : vector<8x128xf32>
    %23 = vector.extract_strided_slice %19 {offsets = [0, 0], sizes = [8, 32], strides = [1, 1]} : vector<8x128xf32> to vector<8x32xf32>
    %cst_16 = arith.constant 5.000000e-01 : f32
    %24 = vector.broadcast %cst_16 : f32 to vector<8x32xf32>
    %25 = arith.mulf %24, %23 : vector<8x32xf32>
    %26 = math.tanh %25 : vector<8x32xf32>
    %cst_17 = arith.constant 5.000000e-01 : f32
    %27 = vector.broadcast %cst_17 : f32 to vector<8x32xf32>
    %28 = arith.mulf %27, %26 : vector<8x32xf32>
    %cst_18 = arith.constant 5.000000e-01 : f32
    %29 = vector.broadcast %cst_18 : f32 to vector<8x32xf32>
    %30 = arith.addf %28, %29 : vector<8x32xf32>
    %31 = vector.extract_strided_slice %19 {offsets = [0, 32], sizes = [8, 32], strides = [1, 1]} : vector<8x128xf32> to vector<8x32xf32>
    %cst_19 = arith.constant 5.000000e-01 : f32
    %32 = vector.broadcast %cst_19 : f32 to vector<8x32xf32>
    %33 = arith.mulf %32, %31 : vector<8x32xf32>
    %34 = math.tanh %33 : vector<8x32xf32>
    %cst_20 = arith.constant 5.000000e-01 : f32
    %35 = vector.broadcast %cst_20 : f32 to vector<8x32xf32>
    %36 = arith.mulf %35, %34 : vector<8x32xf32>
    %cst_21 = arith.constant 5.000000e-01 : f32
    %37 = vector.broadcast %cst_21 : f32 to vector<8x32xf32>
    %38 = arith.addf %36, %37 : vector<8x32xf32>
    %39 = vector.extract_strided_slice %19 {offsets = [0, 64], sizes = [8, 32], strides = [1, 1]} : vector<8x128xf32> to vector<8x32xf32>
    %40 = math.tanh %39 : vector<8x32xf32>
    %41 = vector.extract_strided_slice %19 {offsets = [0, 96], sizes = [8, 32], strides = [1, 1]} : vector<8x128xf32> to vector<8x32xf32>
    %cst_22 = arith.constant 5.000000e-01 : f32
    %42 = vector.broadcast %cst_22 : f32 to vector<8x32xf32>
    %43 = arith.mulf %42, %41 : vector<8x32xf32>
    %44 = math.tanh %43 : vector<8x32xf32>
    %cst_23 = arith.constant 5.000000e-01 : f32
    %45 = vector.broadcast %cst_23 : f32 to vector<8x32xf32>
    %46 = arith.mulf %45, %44 : vector<8x32xf32>
    %cst_24 = arith.constant 5.000000e-01 : f32
    %47 = vector.broadcast %cst_24 : f32 to vector<8x32xf32>
    %48 = arith.addf %46, %47 : vector<8x32xf32>
    %49 = arith.mulf %38, %7 : vector<8x32xf32>
    %50 = arith.mulf %30, %40 : vector<8x32xf32>
    %51 = arith.addf %49, %50 : vector<8x32xf32>
    %52 = math.tanh %51 : vector<8x32xf32>
    %53 = arith.mulf %48, %52 : vector<8x32xf32>
    %54 = vector.extract_strided_slice %22 {offsets = [0, 0], sizes = [8, 32], strides = [1, 1]} : vector<8x128xf32> to vector<8x32xf32>
    %cst_25 = arith.constant 5.000000e-01 : f32
    %55 = vector.broadcast %cst_25 : f32 to vector<8x32xf32>
    %56 = arith.mulf %55, %54 : vector<8x32xf32>
    %57 = math.tanh %56 : vector<8x32xf32>
    %cst_26 = arith.constant 5.000000e-01 : f32
    %58 = vector.broadcast %cst_26 : f32 to vector<8x32xf32>
    %59 = arith.mulf %58, %57 : vector<8x32xf32>
    %cst_27 = arith.constant 5.000000e-01 : f32
    %60 = vector.broadcast %cst_27 : f32 to vector<8x32xf32>
    %61 = arith.addf %59, %60 : vector<8x32xf32>
    %62 = vector.extract_strided_slice %22 {offsets = [0, 32], sizes = [8, 32], strides = [1, 1]} : vector<8x128xf32> to vector<8x32xf32>
    %cst_28 = arith.constant 5.000000e-01 : f32
    %63 = vector.broadcast %cst_28 : f32 to vector<8x32xf32>
    %64 = arith.mulf %63, %62 : vector<8x32xf32>
    %65 = math.tanh %64 : vector<8x32xf32>
    %cst_29 = arith.constant 5.000000e-01 : f32
    %66 = vector.broadcast %cst_29 : f32 to vector<8x32xf32>
    %67 = arith.mulf %66, %65 : vector<8x32xf32>
    %cst_30 = arith.constant 5.000000e-01 : f32
    %68 = vector.broadcast %cst_30 : f32 to vector<8x32xf32>
    %69 = arith.addf %67, %68 : vector<8x32xf32>
    %70 = vector.extract_strided_slice %22 {offsets = [0, 64], sizes = [8, 32], strides = [1, 1]} : vector<8x128xf32> to vector<8x32xf32>
    %71 = math.tanh %70 : vector<8x32xf32>
    %72 = vector.extract_strided_slice %22 {offsets = [0, 96], sizes = [8, 32], strides = [1, 1]} : vector<8x128xf32> to vector<8x32xf32>
    %cst_31 = arith.constant 5.000000e-01 : f32
    %73 = vector.broadcast %cst_31 : f32 to vector<8x32xf32>
    %74 = arith.mulf %73, %72 : vector<8x32xf32>
    %75 = math.tanh %74 : vector<8x32xf32>
    %cst_32 = arith.constant 5.000000e-01 : f32
    %76 = vector.broadcast %cst_32 : f32 to vector<8x32xf32>
    %77 = arith.mulf %76, %75 : vector<8x32xf32>
    %cst_33 = arith.constant 5.000000e-01 : f32
    %78 = vector.broadcast %cst_33 : f32 to vector<8x32xf32>
    %79 = arith.addf %77, %78 : vector<8x32xf32>
    %80 = arith.mulf %69, %7 : vector<8x32xf32>
    %81 = arith.mulf %61, %71 : vector<8x32xf32>
    %82 = arith.addf %80, %81 : vector<8x32xf32>
    %83 = math.tanh %82 : vector<8x32xf32>
    %84 = arith.mulf %79, %83 : vector<8x32xf32>
    %85 = arith.index_cast %10 : i32 to index
    %c0_34 = arith.constant 0 : index
    %86 = vector.load %arg11[%85, %c0_34] : memref<64x32xf32, #tpu.memory_space<vmem>>, vector<8x32xf32>
    tpu.vector_store %arg11[%85, %c0_34], %53 {strides = array<i32>} : memref<64x32xf32, #tpu.memory_space<vmem>>, vector<8x32xf32>,
    %87 = arith.index_cast %12 : i32 to index
    %c0_35 = arith.constant 0 : index
    %88 = vector.load %arg12[%87, %c0_35] : memref<64x32xf32, #tpu.memory_space<vmem>>, vector<8x32xf32>
    tpu.vector_store %arg12[%87, %c0_35], %84 {strides = array<i32>} : memref<64x32xf32, #tpu.memory_space<vmem>>, vector<8x32xf32>,
    %c1_i32 = arith.constant 1 : i32
    %c7_i32_36 = arith.constant 7 : i32
    %89 = arith.subi %c7_i32_36, %c1_i32 : i32
    %c8_i32_37 = arith.constant 8 : i32
    %90 = arith.muli %c1_i32, %c8_i32_37 : i32
    %91 = tpu.assume_multiple %90, 8 : i32
    %c8_i32_38 = arith.constant 8 : i32
    %92 = arith.muli %89, %c8_i32_38 : i32
    %93 = tpu.assume_multiple %92, 8 : i32
    %94 = arith.index_cast %91 : i32 to index
    %c0_39 = arith.constant 0 : index
    %95 = vector.load %arg10[%94, %c0_39] : memref<64x256xf32, #tpu.memory_space<vmem>>, vector<8x128xf32>
    %96 = arith.index_cast %93 : i32 to index
    %c128_40 = arith.constant 128 : index
    %97 = vector.load %arg10[%96, %c128_40] : memref<64x256xf32, #tpu.memory_space<vmem>>, vector<8x128xf32>
    %c0_41 = arith.constant 0 : index
    %c0_42 = arith.constant 0 : index
    %98 = vector.load %arg4[%c0_41, %c0_42] : memref<32x128xf32, #tpu.memory_space<vmem>>, vector<32x128xf32>
    %cst_43 = arith.constant dense<0.000000e+00> : vector<8x128xf32>
    %99 = tpu.matmul %53, %98, %cst_43 {dimension_numbers = #tpu.dot_dimension_numbers<[1], [0], [0], [1], [0, 0, 1, 1], [], []>} : vector<8x32xf32>, vector<32x128xf32>, vector<8x128xf32> -> vector<8x128xf32>
    %100 = arith.addf %95, %99 : vector<8x128xf32>
    %c0_44 = arith.constant 0 : index
    %c0_45 = arith.constant 0 : index
    %101 = vector.load %arg5[%c0_44, %c0_45] : memref<32x128xf32, #tpu.memory_space<vmem>>, vector<32x128xf32>
    %cst_46 = arith.constant dense<0.000000e+00> : vector<8x128xf32>
    %102 = tpu.matmul %84, %101, %cst_46 {dimension_numbers = #tpu.dot_dimension_numbers<[1], [0], [0], [1], [0, 0, 1, 1], [], []>} : vector<8x32xf32>, vector<32x128xf32>, vector<8x128xf32> -> vector<8x128xf32>
    %103 = arith.addf %97, %102 : vector<8x128xf32>
    %104 = vector.extract_strided_slice %100 {offsets = [0, 0], sizes = [8, 32], strides = [1, 1]} : vector<8x128xf32> to vector<8x32xf32>
    %cst_47 = arith.constant 5.000000e-01 : f32
    %105 = vector.broadcast %cst_47 : f32 to vector<8x32xf32>
    %106 = arith.mulf %105, %104 : vector<8x32xf32>
    %107 = math.tanh %106 : vector<8x32xf32>
    %cst_48 = arith.constant 5.000000e-01 : f32
    %108 = vector.broadcast %cst_48 : f32 to vector<8x32xf32>
    %109 = arith.mulf %108, %107 : vector<8x32xf32>
    %cst_49 = arith.constant 5.000000e-01 : f32
    %110 = vector.broadcast %cst_49 : f32 to vector<8x32xf32>
    %111 = arith.addf %109, %110 : vector<8x32xf32>
    %112 = vector.extract_strided_slice %100 {offsets = [0, 32], sizes = [8, 32], strides = [1, 1]} : vector<8x128xf32> to vector<8x32xf32>
    %cst_50 = arith.constant 5.000000e-01 : f32
    %113 = vector.broadcast %cst_50 : f32 to vector<8x32xf32>
    %114 = arith.mulf %113, %112 : vector<8x32xf32>
    %115 = math.tanh %114 : vector<8x32xf32>
    %cst_51 = arith.constant 5.000000e-01 : f32
    %116 = vector.broadcast %cst_51 : f32 to vector<8x32xf32>
    %117 = arith.mulf %116, %115 : vector<8x32xf32>
    %cst_52 = arith.constant 5.000000e-01 : f32
    %118 = vector.broadcast %cst_52 : f32 to vector<8x32xf32>
    %119 = arith.addf %117, %118 : vector<8x32xf32>
    %120 = vector.extract_strided_slice %100 {offsets = [0, 64], sizes = [8, 32], strides = [1, 1]} : vector<8x128xf32> to vector<8x32xf32>
    %121 = math.tanh %120 : vector<8x32xf32>
    %122 = vector.extract_strided_slice %100 {offsets = [0, 96], sizes = [8, 32], strides = [1, 1]} : vector<8x128xf32> to vector<8x32xf32>
    %cst_53 = arith.constant 5.000000e-01 : f32
    %123 = vector.broadcast %cst_53 : f32 to vector<8x32xf32>
    %124 = arith.mulf %123, %122 : vector<8x32xf32>
    %125 = math.tanh %124 : vector<8x32xf32>
    %cst_54 = arith.constant 5.000000e-01 : f32
    %126 = vector.broadcast %cst_54 : f32 to vector<8x32xf32>
    %127 = arith.mulf %126, %125 : vector<8x32xf32>
    %cst_55 = arith.constant 5.000000e-01 : f32
    %128 = vector.broadcast %cst_55 : f32 to vector<8x32xf32>
    %129 = arith.addf %127, %128 : vector<8x32xf32>
    %130 = arith.mulf %119, %51 : vector<8x32xf32>
    %131 = arith.mulf %111, %121 : vector<8x32xf32>
    %132 = arith.addf %130, %131 : vector<8x32xf32>
    %133 = math.tanh %132 : vector<8x32xf32>
    %134 = arith.mulf %129, %133 : vector<8x32xf32>
    %135 = vector.extract_strided_slice %103 {offsets = [0, 0], sizes = [8, 32], strides = [1, 1]} : vector<8x128xf32> to vector<8x32xf32>
    %cst_56 = arith.constant 5.000000e-01 : f32
    %136 = vector.broadcast %cst_56 : f32 to vector<8x32xf32>
    %137 = arith.mulf %136, %135 : vector<8x32xf32>
    %138 = math.tanh %137 : vector<8x32xf32>
    %cst_57 = arith.constant 5.000000e-01 : f32
    %139 = vector.broadcast %cst_57 : f32 to vector<8x32xf32>
    %140 = arith.mulf %139, %138 : vector<8x32xf32>
    %cst_58 = arith.constant 5.000000e-01 : f32
    %141 = vector.broadcast %cst_58 : f32 to vector<8x32xf32>
    %142 = arith.addf %140, %141 : vector<8x32xf32>
    %143 = vector.extract_strided_slice %103 {offsets = [0, 32], sizes = [8, 32], strides = [1, 1]} : vector<8x128xf32> to vector<8x32xf32>
    %cst_59 = arith.constant 5.000000e-01 : f32
    %144 = vector.broadcast %cst_59 : f32 to vector<8x32xf32>
    %145 = arith.mulf %144, %143 : vector<8x32xf32>
    %146 = math.tanh %145 : vector<8x32xf32>
    %cst_60 = arith.constant 5.000000e-01 : f32
    %147 = vector.broadcast %cst_60 : f32 to vector<8x32xf32>
    %148 = arith.mulf %147, %146 : vector<8x32xf32>
    %cst_61 = arith.constant 5.000000e-01 : f32
    %149 = vector.broadcast %cst_61 : f32 to vector<8x32xf32>
    %150 = arith.addf %148, %149 : vector<8x32xf32>
    %151 = vector.extract_strided_slice %103 {offsets = [0, 64], sizes = [8, 32], strides = [1, 1]} : vector<8x128xf32> to vector<8x32xf32>
    %152 = math.tanh %151 : vector<8x32xf32>
    %153 = vector.extract_strided_slice %103 {offsets = [0, 96], sizes = [8, 32], strides = [1, 1]} : vector<8x128xf32> to vector<8x32xf32>
    %cst_62 = arith.constant 5.000000e-01 : f32
    %154 = vector.broadcast %cst_62 : f32 to vector<8x32xf32>
    %155 = arith.mulf %154, %153 : vector<8x32xf32>
    %156 = math.tanh %155 : vector<8x32xf32>
    %cst_63 = arith.constant 5.000000e-01 : f32
    %157 = vector.broadcast %cst_63 : f32 to vector<8x32xf32>
    %158 = arith.mulf %157, %156 : vector<8x32xf32>
    %cst_64 = arith.constant 5.000000e-01 : f32
    %159 = vector.broadcast %cst_64 : f32 to vector<8x32xf32>
    %160 = arith.addf %158, %159 : vector<8x32xf32>
    %161 = arith.mulf %150, %82 : vector<8x32xf32>
    %162 = arith.mulf %142, %152 : vector<8x32xf32>
    %163 = arith.addf %161, %162 : vector<8x32xf32>
    %164 = math.tanh %163 : vector<8x32xf32>
    %165 = arith.mulf %160, %164 : vector<8x32xf32>
    %166 = arith.index_cast %91 : i32 to index
    %c0_65 = arith.constant 0 : index
    %167 = vector.load %arg11[%166, %c0_65] : memref<64x32xf32, #tpu.memory_space<vmem>>, vector<8x32xf32>
    tpu.vector_store %arg11[%166, %c0_65], %134 {strides = array<i32>} : memref<64x32xf32, #tpu.memory_space<vmem>>, vector<8x32xf32>,
    %168 = arith.index_cast %93 : i32 to index
    %c0_66 = arith.constant 0 : index
    %169 = vector.load %arg12[%168, %c0_66] : memref<64x32xf32, #tpu.memory_space<vmem>>, vector<8x32xf32>
    tpu.vector_store %arg12[%168, %c0_66], %165 {strides = array<i32>} : memref<64x32xf32, #tpu.memory_space<vmem>>, vector<8x32xf32>,
    %c2_i32 = arith.constant 2 : i32
    %c7_i32_67 = arith.constant 7 : i32
    %170 = arith.subi %c7_i32_67, %c2_i32 : i32
    %c8_i32_68 = arith.constant 8 : i32
    %171 = arith.muli %c2_i32, %c8_i32_68 : i32
    %172 = tpu.assume_multiple %171, 8 : i32
    %c8_i32_69 = arith.constant 8 : i32
    %173 = arith.muli %170, %c8_i32_69 : i32
    %174 = tpu.assume_multiple %173, 8 : i32
    %175 = arith.index_cast %172 : i32 to index
    %c0_70 = arith.constant 0 : index
    %176 = vector.load %arg10[%175, %c0_70] : memref<64x256xf32, #tpu.memory_space<vmem>>, vector<8x128xf32>
    %177 = arith.index_cast %174 : i32 to index
    %c128_71 = arith.constant 128 : index
    %178 = vector.load %arg10[%177, %c128_71] : memref<64x256xf32, #tpu.memory_space<vmem>>, vector<8x128xf32>
    %c0_72 = arith.constant 0 : index
    %c0_73 = arith.constant 0 : index
    %179 = vector.load %arg4[%c0_72, %c0_73] : memref<32x128xf32, #tpu.memory_space<vmem>>, vector<32x128xf32>
    %cst_74 = arith.constant dense<0.000000e+00> : vector<8x128xf32>
    %180 = tpu.matmul %134, %179, %cst_74 {dimension_numbers = #tpu.dot_dimension_numbers<[1], [0], [0], [1], [0, 0, 1, 1], [], []>} : vector<8x32xf32>, vector<32x128xf32>, vector<8x128xf32> -> vector<8x128xf32>
    %181 = arith.addf %176, %180 : vector<8x128xf32>
    %c0_75 = arith.constant 0 : index
    %c0_76 = arith.constant 0 : index
    %182 = vector.load %arg5[%c0_75, %c0_76] : memref<32x128xf32, #tpu.memory_space<vmem>>, vector<32x128xf32>
    %cst_77 = arith.constant dense<0.000000e+00> : vector<8x128xf32>
    %183 = tpu.matmul %165, %182, %cst_77 {dimension_numbers = #tpu.dot_dimension_numbers<[1], [0], [0], [1], [0, 0, 1, 1], [], []>} : vector<8x32xf32>, vector<32x128xf32>, vector<8x128xf32> -> vector<8x128xf32>
    %184 = arith.addf %178, %183 : vector<8x128xf32>
    %185 = vector.extract_strided_slice %181 {offsets = [0, 0], sizes = [8, 32], strides = [1, 1]} : vector<8x128xf32> to vector<8x32xf32>
    %cst_78 = arith.constant 5.000000e-01 : f32
    %186 = vector.broadcast %cst_78 : f32 to vector<8x32xf32>
    %187 = arith.mulf %186, %185 : vector<8x32xf32>
    %188 = math.tanh %187 : vector<8x32xf32>
    %cst_79 = arith.constant 5.000000e-01 : f32
    %189 = vector.broadcast %cst_79 : f32 to vector<8x32xf32>
    %190 = arith.mulf %189, %188 : vector<8x32xf32>
    %cst_80 = arith.constant 5.000000e-01 : f32
    %191 = vector.broadcast %cst_80 : f32 to vector<8x32xf32>
    %192 = arith.addf %190, %191 : vector<8x32xf32>
    %193 = vector.extract_strided_slice %181 {offsets = [0, 32], sizes = [8, 32], strides = [1, 1]} : vector<8x128xf32> to vector<8x32xf32>
    %cst_81 = arith.constant 5.000000e-01 : f32
    %194 = vector.broadcast %cst_81 : f32 to vector<8x32xf32>
    %195 = arith.mulf %194, %193 : vector<8x32xf32>
    %196 = math.tanh %195 : vector<8x32xf32>
    %cst_82 = arith.constant 5.000000e-01 : f32
    %197 = vector.broadcast %cst_82 : f32 to vector<8x32xf32>
    %198 = arith.mulf %197, %196 : vector<8x32xf32>
    %cst_83 = arith.constant 5.000000e-01 : f32
    %199 = vector.broadcast %cst_83 : f32 to vector<8x32xf32>
    %200 = arith.addf %198, %199 : vector<8x32xf32>
    %201 = vector.extract_strided_slice %181 {offsets = [0, 64], sizes = [8, 32], strides = [1, 1]} : vector<8x128xf32> to vector<8x32xf32>
    %202 = math.tanh %201 : vector<8x32xf32>
    %203 = vector.extract_strided_slice %181 {offsets = [0, 96], sizes = [8, 32], strides = [1, 1]} : vector<8x128xf32> to vector<8x32xf32>
    %cst_84 = arith.constant 5.000000e-01 : f32
    %204 = vector.broadcast %cst_84 : f32 to vector<8x32xf32>
    %205 = arith.mulf %204, %203 : vector<8x32xf32>
    %206 = math.tanh %205 : vector<8x32xf32>
    %cst_85 = arith.constant 5.000000e-01 : f32
    %207 = vector.broadcast %cst_85 : f32 to vector<8x32xf32>
    %208 = arith.mulf %207, %206 : vector<8x32xf32>
    %cst_86 = arith.constant 5.000000e-01 : f32
    %209 = vector.broadcast %cst_86 : f32 to vector<8x32xf32>
    %210 = arith.addf %208, %209 : vector<8x32xf32>
    %211 = arith.mulf %200, %132 : vector<8x32xf32>
    %212 = arith.mulf %192, %202 : vector<8x32xf32>
    %213 = arith.addf %211, %212 : vector<8x32xf32>
    %214 = math.tanh %213 : vector<8x32xf32>
    %215 = arith.mulf %210, %214 : vector<8x32xf32>
    %216 = vector.extract_strided_slice %184 {offsets = [0, 0], sizes = [8, 32], strides = [1, 1]} : vector<8x128xf32> to vector<8x32xf32>
    %cst_87 = arith.constant 5.000000e-01 : f32
    %217 = vector.broadcast %cst_87 : f32 to vector<8x32xf32>
    %218 = arith.mulf %217, %216 : vector<8x32xf32>
    %219 = math.tanh %218 : vector<8x32xf32>
    %cst_88 = arith.constant 5.000000e-01 : f32
    %220 = vector.broadcast %cst_88 : f32 to vector<8x32xf32>
    %221 = arith.mulf %220, %219 : vector<8x32xf32>
    %cst_89 = arith.constant 5.000000e-01 : f32
    %222 = vector.broadcast %cst_89 : f32 to vector<8x32xf32>
    %223 = arith.addf %221, %222 : vector<8x32xf32>
    %224 = vector.extract_strided_slice %184 {offsets = [0, 32], sizes = [8, 32], strides = [1, 1]} : vector<8x128xf32> to vector<8x32xf32>
    %cst_90 = arith.constant 5.000000e-01 : f32
    %225 = vector.broadcast %cst_90 : f32 to vector<8x32xf32>
    %226 = arith.mulf %225, %224 : vector<8x32xf32>
    %227 = math.tanh %226 : vector<8x32xf32>
    %cst_91 = arith.constant 5.000000e-01 : f32
    %228 = vector.broadcast %cst_91 : f32 to vector<8x32xf32>
    %229 = arith.mulf %228, %227 : vector<8x32xf32>
    %cst_92 = arith.constant 5.000000e-01 : f32
    %230 = vector.broadcast %cst_92 : f32 to vector<8x32xf32>
    %231 = arith.addf %229, %230 : vector<8x32xf32>
    %232 = vector.extract_strided_slice %184 {offsets = [0, 64], sizes = [8, 32], strides = [1, 1]} : vector<8x128xf32> to vector<8x32xf32>
    %233 = math.tanh %232 : vector<8x32xf32>
    %234 = vector.extract_strided_slice %184 {offsets = [0, 96], sizes = [8, 32], strides = [1, 1]} : vector<8x128xf32> to vector<8x32xf32>
    %cst_93 = arith.constant 5.000000e-01 : f32
    %235 = vector.broadcast %cst_93 : f32 to vector<8x32xf32>
    %236 = arith.mulf %235, %234 : vector<8x32xf32>
    %237 = math.tanh %236 : vector<8x32xf32>
    %cst_94 = arith.constant 5.000000e-01 : f32
    %238 = vector.broadcast %cst_94 : f32 to vector<8x32xf32>
    %239 = arith.mulf %238, %237 : vector<8x32xf32>
    %cst_95 = arith.constant 5.000000e-01 : f32
    %240 = vector.broadcast %cst_95 : f32 to vector<8x32xf32>
    %241 = arith.addf %239, %240 : vector<8x32xf32>
    %242 = arith.mulf %231, %163 : vector<8x32xf32>
    %243 = arith.mulf %223, %233 : vector<8x32xf32>
    %244 = arith.addf %242, %243 : vector<8x32xf32>
    %245 = math.tanh %244 : vector<8x32xf32>
    %246 = arith.mulf %241, %245 : vector<8x32xf32>
    %247 = arith.index_cast %172 : i32 to index
    %c0_96 = arith.constant 0 : index
    %248 = vector.load %arg11[%247, %c0_96] : memref<64x32xf32, #tpu.memory_space<vmem>>, vector<8x32xf32>
    tpu.vector_store %arg11[%247, %c0_96], %215 {strides = array<i32>} : memref<64x32xf32, #tpu.memory_space<vmem>>, vector<8x32xf32>,
    %249 = arith.index_cast %174 : i32 to index
    %c0_97 = arith.constant 0 : index
    %250 = vector.load %arg12[%249, %c0_97] : memref<64x32xf32, #tpu.memory_space<vmem>>, vector<8x32xf32>
    tpu.vector_store %arg12[%249, %c0_97], %246 {strides = array<i32>} : memref<64x32xf32, #tpu.memory_space<vmem>>, vector<8x32xf32>,
    %c3_i32 = arith.constant 3 : i32
    %c7_i32_98 = arith.constant 7 : i32
    %251 = arith.subi %c7_i32_98, %c3_i32 : i32
    %c8_i32_99 = arith.constant 8 : i32
    %252 = arith.muli %c3_i32, %c8_i32_99 : i32
    %253 = tpu.assume_multiple %252, 8 : i32
    %c8_i32_100 = arith.constant 8 : i32
    %254 = arith.muli %251, %c8_i32_100 : i32
    %255 = tpu.assume_multiple %254, 8 : i32
    %256 = arith.index_cast %253 : i32 to index
    %c0_101 = arith.constant 0 : index
    %257 = vector.load %arg10[%256, %c0_101] : memref<64x256xf32, #tpu.memory_space<vmem>>, vector<8x128xf32>
    %258 = arith.index_cast %255 : i32 to index
    %c128_102 = arith.constant 128 : index
    %259 = vector.load %arg10[%258, %c128_102] : memref<64x256xf32, #tpu.memory_space<vmem>>, vector<8x128xf32>
    %c0_103 = arith.constant 0 : index
    %c0_104 = arith.constant 0 : index
    %260 = vector.load %arg4[%c0_103, %c0_104] : memref<32x128xf32, #tpu.memory_space<vmem>>, vector<32x128xf32>
    %cst_105 = arith.constant dense<0.000000e+00> : vector<8x128xf32>
    %261 = tpu.matmul %215, %260, %cst_105 {dimension_numbers = #tpu.dot_dimension_numbers<[1], [0], [0], [1], [0, 0, 1, 1], [], []>} : vector<8x32xf32>, vector<32x128xf32>, vector<8x128xf32> -> vector<8x128xf32>
    %262 = arith.addf %257, %261 : vector<8x128xf32>
    %c0_106 = arith.constant 0 : index
    %c0_107 = arith.constant 0 : index
    %263 = vector.load %arg5[%c0_106, %c0_107] : memref<32x128xf32, #tpu.memory_space<vmem>>, vector<32x128xf32>
    %cst_108 = arith.constant dense<0.000000e+00> : vector<8x128xf32>
    %264 = tpu.matmul %246, %263, %cst_108 {dimension_numbers = #tpu.dot_dimension_numbers<[1], [0], [0], [1], [0, 0, 1, 1], [], []>} : vector<8x32xf32>, vector<32x128xf32>, vector<8x128xf32> -> vector<8x128xf32>
    %265 = arith.addf %259, %264 : vector<8x128xf32>
    %266 = vector.extract_strided_slice %262 {offsets = [0, 0], sizes = [8, 32], strides = [1, 1]} : vector<8x128xf32> to vector<8x32xf32>
    %cst_109 = arith.constant 5.000000e-01 : f32
    %267 = vector.broadcast %cst_109 : f32 to vector<8x32xf32>
    %268 = arith.mulf %267, %266 : vector<8x32xf32>
    %269 = math.tanh %268 : vector<8x32xf32>
    %cst_110 = arith.constant 5.000000e-01 : f32
    %270 = vector.broadcast %cst_110 : f32 to vector<8x32xf32>
    %271 = arith.mulf %270, %269 : vector<8x32xf32>
    %cst_111 = arith.constant 5.000000e-01 : f32
    %272 = vector.broadcast %cst_111 : f32 to vector<8x32xf32>
    %273 = arith.addf %271, %272 : vector<8x32xf32>
    %274 = vector.extract_strided_slice %262 {offsets = [0, 32], sizes = [8, 32], strides = [1, 1]} : vector<8x128xf32> to vector<8x32xf32>
    %cst_112 = arith.constant 5.000000e-01 : f32
    %275 = vector.broadcast %cst_112 : f32 to vector<8x32xf32>
    %276 = arith.mulf %275, %274 : vector<8x32xf32>
    %277 = math.tanh %276 : vector<8x32xf32>
    %cst_113 = arith.constant 5.000000e-01 : f32
    %278 = vector.broadcast %cst_113 : f32 to vector<8x32xf32>
    %279 = arith.mulf %278, %277 : vector<8x32xf32>
    %cst_114 = arith.constant 5.000000e-01 : f32
    %280 = vector.broadcast %cst_114 : f32 to vector<8x32xf32>
    %281 = arith.addf %279, %280 : vector<8x32xf32>
    %282 = vector.extract_strided_slice %262 {offsets = [0, 64], sizes = [8, 32], strides = [1, 1]} : vector<8x128xf32> to vector<8x32xf32>
    %283 = math.tanh %282 : vector<8x32xf32>
    %284 = vector.extract_strided_slice %262 {offsets = [0, 96], sizes = [8, 32], strides = [1, 1]} : vector<8x128xf32> to vector<8x32xf32>
    %cst_115 = arith.constant 5.000000e-01 : f32
    %285 = vector.broadcast %cst_115 : f32 to vector<8x32xf32>
    %286 = arith.mulf %285, %284 : vector<8x32xf32>
    %287 = math.tanh %286 : vector<8x32xf32>
    %cst_116 = arith.constant 5.000000e-01 : f32
    %288 = vector.broadcast %cst_116 : f32 to vector<8x32xf32>
    %289 = arith.mulf %288, %287 : vector<8x32xf32>
    %cst_117 = arith.constant 5.000000e-01 : f32
    %290 = vector.broadcast %cst_117 : f32 to vector<8x32xf32>
    %291 = arith.addf %289, %290 : vector<8x32xf32>
    %292 = arith.mulf %281, %213 : vector<8x32xf32>
    %293 = arith.mulf %273, %283 : vector<8x32xf32>
    %294 = arith.addf %292, %293 : vector<8x32xf32>
    %295 = math.tanh %294 : vector<8x32xf32>
    %296 = arith.mulf %291, %295 : vector<8x32xf32>
    %297 = vector.extract_strided_slice %265 {offsets = [0, 0], sizes = [8, 32], strides = [1, 1]} : vector<8x128xf32> to vector<8x32xf32>
    %cst_118 = arith.constant 5.000000e-01 : f32
    %298 = vector.broadcast %cst_118 : f32 to vector<8x32xf32>
    %299 = arith.mulf %298, %297 : vector<8x32xf32>
    %300 = math.tanh %299 : vector<8x32xf32>
    %cst_119 = arith.constant 5.000000e-01 : f32
    %301 = vector.broadcast %cst_119 : f32 to vector<8x32xf32>
    %302 = arith.mulf %301, %300 : vector<8x32xf32>
    %cst_120 = arith.constant 5.000000e-01 : f32
    %303 = vector.broadcast %cst_120 : f32 to vector<8x32xf32>
    %304 = arith.addf %302, %303 : vector<8x32xf32>
    %305 = vector.extract_strided_slice %265 {offsets = [0, 32], sizes = [8, 32], strides = [1, 1]} : vector<8x128xf32> to vector<8x32xf32>
    %cst_121 = arith.constant 5.000000e-01 : f32
    %306 = vector.broadcast %cst_121 : f32 to vector<8x32xf32>
    %307 = arith.mulf %306, %305 : vector<8x32xf32>
    %308 = math.tanh %307 : vector<8x32xf32>
    %cst_122 = arith.constant 5.000000e-01 : f32
    %309 = vector.broadcast %cst_122 : f32 to vector<8x32xf32>
    %310 = arith.mulf %309, %308 : vector<8x32xf32>
    %cst_123 = arith.constant 5.000000e-01 : f32
    %311 = vector.broadcast %cst_123 : f32 to vector<8x32xf32>
    %312 = arith.addf %310, %311 : vector<8x32xf32>
    %313 = vector.extract_strided_slice %265 {offsets = [0, 64], sizes = [8, 32], strides = [1, 1]} : vector<8x128xf32> to vector<8x32xf32>
    %314 = math.tanh %313 : vector<8x32xf32>
    %315 = vector.extract_strided_slice %265 {offsets = [0, 96], sizes = [8, 32], strides = [1, 1]} : vector<8x128xf32> to vector<8x32xf32>
    %cst_124 = arith.constant 5.000000e-01 : f32
    %316 = vector.broadcast %cst_124 : f32 to vector<8x32xf32>
    %317 = arith.mulf %316, %315 : vector<8x32xf32>
    %318 = math.tanh %317 : vector<8x32xf32>
    %cst_125 = arith.constant 5.000000e-01 : f32
    %319 = vector.broadcast %cst_125 : f32 to vector<8x32xf32>
    %320 = arith.mulf %319, %318 : vector<8x32xf32>
    %cst_126 = arith.constant 5.000000e-01 : f32
    %321 = vector.broadcast %cst_126 : f32 to vector<8x32xf32>
    %322 = arith.addf %320, %321 : vector<8x32xf32>
    %323 = arith.mulf %312, %244 : vector<8x32xf32>
    %324 = arith.mulf %304, %314 : vector<8x32xf32>
    %325 = arith.addf %323, %324 : vector<8x32xf32>
    %326 = math.tanh %325 : vector<8x32xf32>
    %327 = arith.mulf %322, %326 : vector<8x32xf32>
    %328 = arith.index_cast %253 : i32 to index
    %c0_127 = arith.constant 0 : index
    %329 = vector.load %arg11[%328, %c0_127] : memref<64x32xf32, #tpu.memory_space<vmem>>, vector<8x32xf32>
    tpu.vector_store %arg11[%328, %c0_127], %296 {strides = array<i32>} : memref<64x32xf32, #tpu.memory_space<vmem>>, vector<8x32xf32>,
    %330 = arith.index_cast %255 : i32 to index
    %c0_128 = arith.constant 0 : index
    %331 = vector.load %arg12[%330, %c0_128] : memref<64x32xf32, #tpu.memory_space<vmem>>, vector<8x32xf32>
    tpu.vector_store %arg12[%330, %c0_128], %327 {strides = array<i32>} : memref<64x32xf32, #tpu.memory_space<vmem>>, vector<8x32xf32>,
    %c4_i32 = arith.constant 4 : i32
    %c7_i32_129 = arith.constant 7 : i32
    %332 = arith.subi %c7_i32_129, %c4_i32 : i32
    %c8_i32_130 = arith.constant 8 : i32
    %333 = arith.muli %c4_i32, %c8_i32_130 : i32
    %334 = tpu.assume_multiple %333, 8 : i32
    %c8_i32_131 = arith.constant 8 : i32
    %335 = arith.muli %332, %c8_i32_131 : i32
    %336 = tpu.assume_multiple %335, 8 : i32
    %337 = arith.index_cast %334 : i32 to index
    %c0_132 = arith.constant 0 : index
    %338 = vector.load %arg10[%337, %c0_132] : memref<64x256xf32, #tpu.memory_space<vmem>>, vector<8x128xf32>
    %339 = arith.index_cast %336 : i32 to index
    %c128_133 = arith.constant 128 : index
    %340 = vector.load %arg10[%339, %c128_133] : memref<64x256xf32, #tpu.memory_space<vmem>>, vector<8x128xf32>
    %c0_134 = arith.constant 0 : index
    %c0_135 = arith.constant 0 : index
    %341 = vector.load %arg4[%c0_134, %c0_135] : memref<32x128xf32, #tpu.memory_space<vmem>>, vector<32x128xf32>
    %cst_136 = arith.constant dense<0.000000e+00> : vector<8x128xf32>
    %342 = tpu.matmul %296, %341, %cst_136 {dimension_numbers = #tpu.dot_dimension_numbers<[1], [0], [0], [1], [0, 0, 1, 1], [], []>} : vector<8x32xf32>, vector<32x128xf32>, vector<8x128xf32> -> vector<8x128xf32>
    %343 = arith.addf %338, %342 : vector<8x128xf32>
    %c0_137 = arith.constant 0 : index
    %c0_138 = arith.constant 0 : index
    %344 = vector.load %arg5[%c0_137, %c0_138] : memref<32x128xf32, #tpu.memory_space<vmem>>, vector<32x128xf32>
    %cst_139 = arith.constant dense<0.000000e+00> : vector<8x128xf32>
    %345 = tpu.matmul %327, %344, %cst_139 {dimension_numbers = #tpu.dot_dimension_numbers<[1], [0], [0], [1], [0, 0, 1, 1], [], []>} : vector<8x32xf32>, vector<32x128xf32>, vector<8x128xf32> -> vector<8x128xf32>
    %346 = arith.addf %340, %345 : vector<8x128xf32>
    %347 = vector.extract_strided_slice %343 {offsets = [0, 0], sizes = [8, 32], strides = [1, 1]} : vector<8x128xf32> to vector<8x32xf32>
    %cst_140 = arith.constant 5.000000e-01 : f32
    %348 = vector.broadcast %cst_140 : f32 to vector<8x32xf32>
    %349 = arith.mulf %348, %347 : vector<8x32xf32>
    %350 = math.tanh %349 : vector<8x32xf32>
    %cst_141 = arith.constant 5.000000e-01 : f32
    %351 = vector.broadcast %cst_141 : f32 to vector<8x32xf32>
    %352 = arith.mulf %351, %350 : vector<8x32xf32>
    %cst_142 = arith.constant 5.000000e-01 : f32
    %353 = vector.broadcast %cst_142 : f32 to vector<8x32xf32>
    %354 = arith.addf %352, %353 : vector<8x32xf32>
    %355 = vector.extract_strided_slice %343 {offsets = [0, 32], sizes = [8, 32], strides = [1, 1]} : vector<8x128xf32> to vector<8x32xf32>
    %cst_143 = arith.constant 5.000000e-01 : f32
    %356 = vector.broadcast %cst_143 : f32 to vector<8x32xf32>
    %357 = arith.mulf %356, %355 : vector<8x32xf32>
    %358 = math.tanh %357 : vector<8x32xf32>
    %cst_144 = arith.constant 5.000000e-01 : f32
    %359 = vector.broadcast %cst_144 : f32 to vector<8x32xf32>
    %360 = arith.mulf %359, %358 : vector<8x32xf32>
    %cst_145 = arith.constant 5.000000e-01 : f32
    %361 = vector.broadcast %cst_145 : f32 to vector<8x32xf32>
    %362 = arith.addf %360, %361 : vector<8x32xf32>
    %363 = vector.extract_strided_slice %343 {offsets = [0, 64], sizes = [8, 32], strides = [1, 1]} : vector<8x128xf32> to vector<8x32xf32>
    %364 = math.tanh %363 : vector<8x32xf32>
    %365 = vector.extract_strided_slice %343 {offsets = [0, 96], sizes = [8, 32], strides = [1, 1]} : vector<8x128xf32> to vector<8x32xf32>
    %cst_146 = arith.constant 5.000000e-01 : f32
    %366 = vector.broadcast %cst_146 : f32 to vector<8x32xf32>
    %367 = arith.mulf %366, %365 : vector<8x32xf32>
    %368 = math.tanh %367 : vector<8x32xf32>
    %cst_147 = arith.constant 5.000000e-01 : f32
    %369 = vector.broadcast %cst_147 : f32 to vector<8x32xf32>
    %370 = arith.mulf %369, %368 : vector<8x32xf32>
    %cst_148 = arith.constant 5.000000e-01 : f32
    %371 = vector.broadcast %cst_148 : f32 to vector<8x32xf32>
    %372 = arith.addf %370, %371 : vector<8x32xf32>
    %373 = arith.mulf %362, %294 : vector<8x32xf32>
    %374 = arith.mulf %354, %364 : vector<8x32xf32>
    %375 = arith.addf %373, %374 : vector<8x32xf32>
    %376 = math.tanh %375 : vector<8x32xf32>
    %377 = arith.mulf %372, %376 : vector<8x32xf32>
    %378 = vector.extract_strided_slice %346 {offsets = [0, 0], sizes = [8, 32], strides = [1, 1]} : vector<8x128xf32> to vector<8x32xf32>
    %cst_149 = arith.constant 5.000000e-01 : f32
    %379 = vector.broadcast %cst_149 : f32 to vector<8x32xf32>
    %380 = arith.mulf %379, %378 : vector<8x32xf32>
    %381 = math.tanh %380 : vector<8x32xf32>
    %cst_150 = arith.constant 5.000000e-01 : f32
    %382 = vector.broadcast %cst_150 : f32 to vector<8x32xf32>
    %383 = arith.mulf %382, %381 : vector<8x32xf32>
    %cst_151 = arith.constant 5.000000e-01 : f32
    %384 = vector.broadcast %cst_151 : f32 to vector<8x32xf32>
    %385 = arith.addf %383, %384 : vector<8x32xf32>
    %386 = vector.extract_strided_slice %346 {offsets = [0, 32], sizes = [8, 32], strides = [1, 1]} : vector<8x128xf32> to vector<8x32xf32>
    %cst_152 = arith.constant 5.000000e-01 : f32
    %387 = vector.broadcast %cst_152 : f32 to vector<8x32xf32>
    %388 = arith.mulf %387, %386 : vector<8x32xf32>
    %389 = math.tanh %388 : vector<8x32xf32>
    %cst_153 = arith.constant 5.000000e-01 : f32
    %390 = vector.broadcast %cst_153 : f32 to vector<8x32xf32>
    %391 = arith.mulf %390, %389 : vector<8x32xf32>
    %cst_154 = arith.constant 5.000000e-01 : f32
    %392 = vector.broadcast %cst_154 : f32 to vector<8x32xf32>
    %393 = arith.addf %391, %392 : vector<8x32xf32>
    %394 = vector.extract_strided_slice %346 {offsets = [0, 64], sizes = [8, 32], strides = [1, 1]} : vector<8x128xf32> to vector<8x32xf32>
    %395 = math.tanh %394 : vector<8x32xf32>
    %396 = vector.extract_strided_slice %346 {offsets = [0, 96], sizes = [8, 32], strides = [1, 1]} : vector<8x128xf32> to vector<8x32xf32>
    %cst_155 = arith.constant 5.000000e-01 : f32
    %397 = vector.broadcast %cst_155 : f32 to vector<8x32xf32>
    %398 = arith.mulf %397, %396 : vector<8x32xf32>
    %399 = math.tanh %398 : vector<8x32xf32>
    %cst_156 = arith.constant 5.000000e-01 : f32
    %400 = vector.broadcast %cst_156 : f32 to vector<8x32xf32>
    %401 = arith.mulf %400, %399 : vector<8x32xf32>
    %cst_157 = arith.constant 5.000000e-01 : f32
    %402 = vector.broadcast %cst_157 : f32 to vector<8x32xf32>
    %403 = arith.addf %401, %402 : vector<8x32xf32>
    %404 = arith.mulf %393, %325 : vector<8x32xf32>
    %405 = arith.mulf %385, %395 : vector<8x32xf32>
    %406 = arith.addf %404, %405 : vector<8x32xf32>
    %407 = math.tanh %406 : vector<8x32xf32>
    %408 = arith.mulf %403, %407 : vector<8x32xf32>
    %409 = arith.index_cast %334 : i32 to index
    %c0_158 = arith.constant 0 : index
    %410 = vector.load %arg11[%409, %c0_158] : memref<64x32xf32, #tpu.memory_space<vmem>>, vector<8x32xf32>
    tpu.vector_store %arg11[%409, %c0_158], %377 {strides = array<i32>} : memref<64x32xf32, #tpu.memory_space<vmem>>, vector<8x32xf32>,
    %411 = arith.index_cast %336 : i32 to index
    %c0_159 = arith.constant 0 : index
    %412 = vector.load %arg12[%411, %c0_159] : memref<64x32xf32, #tpu.memory_space<vmem>>, vector<8x32xf32>
    tpu.vector_store %arg12[%411, %c0_159], %408 {strides = array<i32>} : memref<64x32xf32, #tpu.memory_space<vmem>>, vector<8x32xf32>,
    %c5_i32 = arith.constant 5 : i32
    %c7_i32_160 = arith.constant 7 : i32
    %413 = arith.subi %c7_i32_160, %c5_i32 : i32
    %c8_i32_161 = arith.constant 8 : i32
    %414 = arith.muli %c5_i32, %c8_i32_161 : i32
    %415 = tpu.assume_multiple %414, 8 : i32
    %c8_i32_162 = arith.constant 8 : i32
    %416 = arith.muli %413, %c8_i32_162 : i32
    %417 = tpu.assume_multiple %416, 8 : i32
    %418 = arith.index_cast %415 : i32 to index
    %c0_163 = arith.constant 0 : index
    %419 = vector.load %arg10[%418, %c0_163] : memref<64x256xf32, #tpu.memory_space<vmem>>, vector<8x128xf32>
    %420 = arith.index_cast %417 : i32 to index
    %c128_164 = arith.constant 128 : index
    %421 = vector.load %arg10[%420, %c128_164] : memref<64x256xf32, #tpu.memory_space<vmem>>, vector<8x128xf32>
    %c0_165 = arith.constant 0 : index
    %c0_166 = arith.constant 0 : index
    %422 = vector.load %arg4[%c0_165, %c0_166] : memref<32x128xf32, #tpu.memory_space<vmem>>, vector<32x128xf32>
    %cst_167 = arith.constant dense<0.000000e+00> : vector<8x128xf32>
    %423 = tpu.matmul %377, %422, %cst_167 {dimension_numbers = #tpu.dot_dimension_numbers<[1], [0], [0], [1], [0, 0, 1, 1], [], []>} : vector<8x32xf32>, vector<32x128xf32>, vector<8x128xf32> -> vector<8x128xf32>
    %424 = arith.addf %419, %423 : vector<8x128xf32>
    %c0_168 = arith.constant 0 : index
    %c0_169 = arith.constant 0 : index
    %425 = vector.load %arg5[%c0_168, %c0_169] : memref<32x128xf32, #tpu.memory_space<vmem>>, vector<32x128xf32>
    %cst_170 = arith.constant dense<0.000000e+00> : vector<8x128xf32>
    %426 = tpu.matmul %408, %425, %cst_170 {dimension_numbers = #tpu.dot_dimension_numbers<[1], [0], [0], [1], [0, 0, 1, 1], [], []>} : vector<8x32xf32>, vector<32x128xf32>, vector<8x128xf32> -> vector<8x128xf32>
    %427 = arith.addf %421, %426 : vector<8x128xf32>
    %428 = vector.extract_strided_slice %424 {offsets = [0, 0], sizes = [8, 32], strides = [1, 1]} : vector<8x128xf32> to vector<8x32xf32>
    %cst_171 = arith.constant 5.000000e-01 : f32
    %429 = vector.broadcast %cst_171 : f32 to vector<8x32xf32>
    %430 = arith.mulf %429, %428 : vector<8x32xf32>
    %431 = math.tanh %430 : vector<8x32xf32>
    %cst_172 = arith.constant 5.000000e-01 : f32
    %432 = vector.broadcast %cst_172 : f32 to vector<8x32xf32>
    %433 = arith.mulf %432, %431 : vector<8x32xf32>
    %cst_173 = arith.constant 5.000000e-01 : f32
    %434 = vector.broadcast %cst_173 : f32 to vector<8x32xf32>
    %435 = arith.addf %433, %434 : vector<8x32xf32>
    %436 = vector.extract_strided_slice %424 {offsets = [0, 32], sizes = [8, 32], strides = [1, 1]} : vector<8x128xf32> to vector<8x32xf32>
    %cst_174 = arith.constant 5.000000e-01 : f32
    %437 = vector.broadcast %cst_174 : f32 to vector<8x32xf32>
    %438 = arith.mulf %437, %436 : vector<8x32xf32>
    %439 = math.tanh %438 : vector<8x32xf32>
    %cst_175 = arith.constant 5.000000e-01 : f32
    %440 = vector.broadcast %cst_175 : f32 to vector<8x32xf32>
    %441 = arith.mulf %440, %439 : vector<8x32xf32>
    %cst_176 = arith.constant 5.000000e-01 : f32
    %442 = vector.broadcast %cst_176 : f32 to vector<8x32xf32>
    %443 = arith.addf %441, %442 : vector<8x32xf32>
    %444 = vector.extract_strided_slice %424 {offsets = [0, 64], sizes = [8, 32], strides = [1, 1]} : vector<8x128xf32> to vector<8x32xf32>
    %445 = math.tanh %444 : vector<8x32xf32>
    %446 = vector.extract_strided_slice %424 {offsets = [0, 96], sizes = [8, 32], strides = [1, 1]} : vector<8x128xf32> to vector<8x32xf32>
    %cst_177 = arith.constant 5.000000e-01 : f32
    %447 = vector.broadcast %cst_177 : f32 to vector<8x32xf32>
    %448 = arith.mulf %447, %446 : vector<8x32xf32>
    %449 = math.tanh %448 : vector<8x32xf32>
    %cst_178 = arith.constant 5.000000e-01 : f32
    %450 = vector.broadcast %cst_178 : f32 to vector<8x32xf32>
    %451 = arith.mulf %450, %449 : vector<8x32xf32>
    %cst_179 = arith.constant 5.000000e-01 : f32
    %452 = vector.broadcast %cst_179 : f32 to vector<8x32xf32>
    %453 = arith.addf %451, %452 : vector<8x32xf32>
    %454 = arith.mulf %443, %375 : vector<8x32xf32>
    %455 = arith.mulf %435, %445 : vector<8x32xf32>
    %456 = arith.addf %454, %455 : vector<8x32xf32>
    %457 = math.tanh %456 : vector<8x32xf32>
    %458 = arith.mulf %453, %457 : vector<8x32xf32>
    %459 = vector.extract_strided_slice %427 {offsets = [0, 0], sizes = [8, 32], strides = [1, 1]} : vector<8x128xf32> to vector<8x32xf32>
    %cst_180 = arith.constant 5.000000e-01 : f32
    %460 = vector.broadcast %cst_180 : f32 to vector<8x32xf32>
    %461 = arith.mulf %460, %459 : vector<8x32xf32>
    %462 = math.tanh %461 : vector<8x32xf32>
    %cst_181 = arith.constant 5.000000e-01 : f32
    %463 = vector.broadcast %cst_181 : f32 to vector<8x32xf32>
    %464 = arith.mulf %463, %462 : vector<8x32xf32>
    %cst_182 = arith.constant 5.000000e-01 : f32
    %465 = vector.broadcast %cst_182 : f32 to vector<8x32xf32>
    %466 = arith.addf %464, %465 : vector<8x32xf32>
    %467 = vector.extract_strided_slice %427 {offsets = [0, 32], sizes = [8, 32], strides = [1, 1]} : vector<8x128xf32> to vector<8x32xf32>
    %cst_183 = arith.constant 5.000000e-01 : f32
    %468 = vector.broadcast %cst_183 : f32 to vector<8x32xf32>
    %469 = arith.mulf %468, %467 : vector<8x32xf32>
    %470 = math.tanh %469 : vector<8x32xf32>
    %cst_184 = arith.constant 5.000000e-01 : f32
    %471 = vector.broadcast %cst_184 : f32 to vector<8x32xf32>
    %472 = arith.mulf %471, %470 : vector<8x32xf32>
    %cst_185 = arith.constant 5.000000e-01 : f32
    %473 = vector.broadcast %cst_185 : f32 to vector<8x32xf32>
    %474 = arith.addf %472, %473 : vector<8x32xf32>
    %475 = vector.extract_strided_slice %427 {offsets = [0, 64], sizes = [8, 32], strides = [1, 1]} : vector<8x128xf32> to vector<8x32xf32>
    %476 = math.tanh %475 : vector<8x32xf32>
    %477 = vector.extract_strided_slice %427 {offsets = [0, 96], sizes = [8, 32], strides = [1, 1]} : vector<8x128xf32> to vector<8x32xf32>
    %cst_186 = arith.constant 5.000000e-01 : f32
    %478 = vector.broadcast %cst_186 : f32 to vector<8x32xf32>
    %479 = arith.mulf %478, %477 : vector<8x32xf32>
    %480 = math.tanh %479 : vector<8x32xf32>
    %cst_187 = arith.constant 5.000000e-01 : f32
    %481 = vector.broadcast %cst_187 : f32 to vector<8x32xf32>
    %482 = arith.mulf %481, %480 : vector<8x32xf32>
    %cst_188 = arith.constant 5.000000e-01 : f32
    %483 = vector.broadcast %cst_188 : f32 to vector<8x32xf32>
    %484 = arith.addf %482, %483 : vector<8x32xf32>
    %485 = arith.mulf %474, %406 : vector<8x32xf32>
    %486 = arith.mulf %466, %476 : vector<8x32xf32>
    %487 = arith.addf %485, %486 : vector<8x32xf32>
    %488 = math.tanh %487 : vector<8x32xf32>
    %489 = arith.mulf %484, %488 : vector<8x32xf32>
    %490 = arith.index_cast %415 : i32 to index
    %c0_189 = arith.constant 0 : index
    %491 = vector.load %arg11[%490, %c0_189] : memref<64x32xf32, #tpu.memory_space<vmem>>, vector<8x32xf32>
    tpu.vector_store %arg11[%490, %c0_189], %458 {strides = array<i32>} : memref<64x32xf32, #tpu.memory_space<vmem>>, vector<8x32xf32>,
    %492 = arith.index_cast %417 : i32 to index
    %c0_190 = arith.constant 0 : index
    %493 = vector.load %arg12[%492, %c0_190] : memref<64x32xf32, #tpu.memory_space<vmem>>, vector<8x32xf32>
    tpu.vector_store %arg12[%492, %c0_190], %489 {strides = array<i32>} : memref<64x32xf32, #tpu.memory_space<vmem>>, vector<8x32xf32>,
    %c6_i32 = arith.constant 6 : i32
    %c7_i32_191 = arith.constant 7 : i32
    %494 = arith.subi %c7_i32_191, %c6_i32 : i32
    %c8_i32_192 = arith.constant 8 : i32
    %495 = arith.muli %c6_i32, %c8_i32_192 : i32
    %496 = tpu.assume_multiple %495, 8 : i32
    %c8_i32_193 = arith.constant 8 : i32
    %497 = arith.muli %494, %c8_i32_193 : i32
    %498 = tpu.assume_multiple %497, 8 : i32
    %499 = arith.index_cast %496 : i32 to index
    %c0_194 = arith.constant 0 : index
    %500 = vector.load %arg10[%499, %c0_194] : memref<64x256xf32, #tpu.memory_space<vmem>>, vector<8x128xf32>
    %501 = arith.index_cast %498 : i32 to index
    %c128_195 = arith.constant 128 : index
    %502 = vector.load %arg10[%501, %c128_195] : memref<64x256xf32, #tpu.memory_space<vmem>>, vector<8x128xf32>
    %c0_196 = arith.constant 0 : index
    %c0_197 = arith.constant 0 : index
    %503 = vector.load %arg4[%c0_196, %c0_197] : memref<32x128xf32, #tpu.memory_space<vmem>>, vector<32x128xf32>
    %cst_198 = arith.constant dense<0.000000e+00> : vector<8x128xf32>
    %504 = tpu.matmul %458, %503, %cst_198 {dimension_numbers = #tpu.dot_dimension_numbers<[1], [0], [0], [1], [0, 0, 1, 1], [], []>} : vector<8x32xf32>, vector<32x128xf32>, vector<8x128xf32> -> vector<8x128xf32>
    %505 = arith.addf %500, %504 : vector<8x128xf32>
    %c0_199 = arith.constant 0 : index
    %c0_200 = arith.constant 0 : index
    %506 = vector.load %arg5[%c0_199, %c0_200] : memref<32x128xf32, #tpu.memory_space<vmem>>, vector<32x128xf32>
    %cst_201 = arith.constant dense<0.000000e+00> : vector<8x128xf32>
    %507 = tpu.matmul %489, %506, %cst_201 {dimension_numbers = #tpu.dot_dimension_numbers<[1], [0], [0], [1], [0, 0, 1, 1], [], []>} : vector<8x32xf32>, vector<32x128xf32>, vector<8x128xf32> -> vector<8x128xf32>
    %508 = arith.addf %502, %507 : vector<8x128xf32>
    %509 = vector.extract_strided_slice %505 {offsets = [0, 0], sizes = [8, 32], strides = [1, 1]} : vector<8x128xf32> to vector<8x32xf32>
    %cst_202 = arith.constant 5.000000e-01 : f32
    %510 = vector.broadcast %cst_202 : f32 to vector<8x32xf32>
    %511 = arith.mulf %510, %509 : vector<8x32xf32>
    %512 = math.tanh %511 : vector<8x32xf32>
    %cst_203 = arith.constant 5.000000e-01 : f32
    %513 = vector.broadcast %cst_203 : f32 to vector<8x32xf32>
    %514 = arith.mulf %513, %512 : vector<8x32xf32>
    %cst_204 = arith.constant 5.000000e-01 : f32
    %515 = vector.broadcast %cst_204 : f32 to vector<8x32xf32>
    %516 = arith.addf %514, %515 : vector<8x32xf32>
    %517 = vector.extract_strided_slice %505 {offsets = [0, 32], sizes = [8, 32], strides = [1, 1]} : vector<8x128xf32> to vector<8x32xf32>
    %cst_205 = arith.constant 5.000000e-01 : f32
    %518 = vector.broadcast %cst_205 : f32 to vector<8x32xf32>
    %519 = arith.mulf %518, %517 : vector<8x32xf32>
    %520 = math.tanh %519 : vector<8x32xf32>
    %cst_206 = arith.constant 5.000000e-01 : f32
    %521 = vector.broadcast %cst_206 : f32 to vector<8x32xf32>
    %522 = arith.mulf %521, %520 : vector<8x32xf32>
    %cst_207 = arith.constant 5.000000e-01 : f32
    %523 = vector.broadcast %cst_207 : f32 to vector<8x32xf32>
    %524 = arith.addf %522, %523 : vector<8x32xf32>
    %525 = vector.extract_strided_slice %505 {offsets = [0, 64], sizes = [8, 32], strides = [1, 1]} : vector<8x128xf32> to vector<8x32xf32>
    %526 = math.tanh %525 : vector<8x32xf32>
    %527 = vector.extract_strided_slice %505 {offsets = [0, 96], sizes = [8, 32], strides = [1, 1]} : vector<8x128xf32> to vector<8x32xf32>
    %cst_208 = arith.constant 5.000000e-01 : f32
    %528 = vector.broadcast %cst_208 : f32 to vector<8x32xf32>
    %529 = arith.mulf %528, %527 : vector<8x32xf32>
    %530 = math.tanh %529 : vector<8x32xf32>
    %cst_209 = arith.constant 5.000000e-01 : f32
    %531 = vector.broadcast %cst_209 : f32 to vector<8x32xf32>
    %532 = arith.mulf %531, %530 : vector<8x32xf32>
    %cst_210 = arith.constant 5.000000e-01 : f32
    %533 = vector.broadcast %cst_210 : f32 to vector<8x32xf32>
    %534 = arith.addf %532, %533 : vector<8x32xf32>
    %535 = arith.mulf %524, %456 : vector<8x32xf32>
    %536 = arith.mulf %516, %526 : vector<8x32xf32>
    %537 = arith.addf %535, %536 : vector<8x32xf32>
    %538 = math.tanh %537 : vector<8x32xf32>
    %539 = arith.mulf %534, %538 : vector<8x32xf32>
    %540 = vector.extract_strided_slice %508 {offsets = [0, 0], sizes = [8, 32], strides = [1, 1]} : vector<8x128xf32> to vector<8x32xf32>
    %cst_211 = arith.constant 5.000000e-01 : f32
    %541 = vector.broadcast %cst_211 : f32 to vector<8x32xf32>
    %542 = arith.mulf %541, %540 : vector<8x32xf32>
    %543 = math.tanh %542 : vector<8x32xf32>
    %cst_212 = arith.constant 5.000000e-01 : f32
    %544 = vector.broadcast %cst_212 : f32 to vector<8x32xf32>
    %545 = arith.mulf %544, %543 : vector<8x32xf32>
    %cst_213 = arith.constant 5.000000e-01 : f32
    %546 = vector.broadcast %cst_213 : f32 to vector<8x32xf32>
    %547 = arith.addf %545, %546 : vector<8x32xf32>
    %548 = vector.extract_strided_slice %508 {offsets = [0, 32], sizes = [8, 32], strides = [1, 1]} : vector<8x128xf32> to vector<8x32xf32>
    %cst_214 = arith.constant 5.000000e-01 : f32
    %549 = vector.broadcast %cst_214 : f32 to vector<8x32xf32>
    %550 = arith.mulf %549, %548 : vector<8x32xf32>
    %551 = math.tanh %550 : vector<8x32xf32>
    %cst_215 = arith.constant 5.000000e-01 : f32
    %552 = vector.broadcast %cst_215 : f32 to vector<8x32xf32>
    %553 = arith.mulf %552, %551 : vector<8x32xf32>
    %cst_216 = arith.constant 5.000000e-01 : f32
    %554 = vector.broadcast %cst_216 : f32 to vector<8x32xf32>
    %555 = arith.addf %553, %554 : vector<8x32xf32>
    %556 = vector.extract_strided_slice %508 {offsets = [0, 64], sizes = [8, 32], strides = [1, 1]} : vector<8x128xf32> to vector<8x32xf32>
    %557 = math.tanh %556 : vector<8x32xf32>
    %558 = vector.extract_strided_slice %508 {offsets = [0, 96], sizes = [8, 32], strides = [1, 1]} : vector<8x128xf32> to vector<8x32xf32>
    %cst_217 = arith.constant 5.000000e-01 : f32
    %559 = vector.broadcast %cst_217 : f32 to vector<8x32xf32>
    %560 = arith.mulf %559, %558 : vector<8x32xf32>
    %561 = math.tanh %560 : vector<8x32xf32>
    %cst_218 = arith.constant 5.000000e-01 : f32
    %562 = vector.broadcast %cst_218 : f32 to vector<8x32xf32>
    %563 = arith.mulf %562, %561 : vector<8x32xf32>
    %cst_219 = arith.constant 5.000000e-01 : f32
    %564 = vector.broadcast %cst_219 : f32 to vector<8x32xf32>
    %565 = arith.addf %563, %564 : vector<8x32xf32>
    %566 = arith.mulf %555, %487 : vector<8x32xf32>
    %567 = arith.mulf %547, %557 : vector<8x32xf32>
    %568 = arith.addf %566, %567 : vector<8x32xf32>
    %569 = math.tanh %568 : vector<8x32xf32>
    %570 = arith.mulf %565, %569 : vector<8x32xf32>
    %571 = arith.index_cast %496 : i32 to index
    %c0_220 = arith.constant 0 : index
    %572 = vector.load %arg11[%571, %c0_220] : memref<64x32xf32, #tpu.memory_space<vmem>>, vector<8x32xf32>
    tpu.vector_store %arg11[%571, %c0_220], %539 {strides = array<i32>} : memref<64x32xf32, #tpu.memory_space<vmem>>, vector<8x32xf32>,
    %573 = arith.index_cast %498 : i32 to index
    %c0_221 = arith.constant 0 : index
    %574 = vector.load %arg12[%573, %c0_221] : memref<64x32xf32, #tpu.memory_space<vmem>>, vector<8x32xf32>
    tpu.vector_store %arg12[%573, %c0_221], %570 {strides = array<i32>} : memref<64x32xf32, #tpu.memory_space<vmem>>, vector<8x32xf32>,
    %c7_i32_222 = arith.constant 7 : i32
    %c7_i32_223 = arith.constant 7 : i32
    %575 = arith.subi %c7_i32_223, %c7_i32_222 : i32
    %c8_i32_224 = arith.constant 8 : i32
    %576 = arith.muli %c7_i32_222, %c8_i32_224 : i32
    %577 = tpu.assume_multiple %576, 8 : i32
    %c8_i32_225 = arith.constant 8 : i32
    %578 = arith.muli %575, %c8_i32_225 : i32
    %579 = tpu.assume_multiple %578, 8 : i32
    %580 = arith.index_cast %577 : i32 to index
    %c0_226 = arith.constant 0 : index
    %581 = vector.load %arg10[%580, %c0_226] : memref<64x256xf32, #tpu.memory_space<vmem>>, vector<8x128xf32>
    %582 = arith.index_cast %579 : i32 to index
    %c128_227 = arith.constant 128 : index
    %583 = vector.load %arg10[%582, %c128_227] : memref<64x256xf32, #tpu.memory_space<vmem>>, vector<8x128xf32>
    %c0_228 = arith.constant 0 : index
    %c0_229 = arith.constant 0 : index
    %584 = vector.load %arg4[%c0_228, %c0_229] : memref<32x128xf32, #tpu.memory_space<vmem>>, vector<32x128xf32>
    %cst_230 = arith.constant dense<0.000000e+00> : vector<8x128xf32>
    %585 = tpu.matmul %539, %584, %cst_230 {dimension_numbers = #tpu.dot_dimension_numbers<[1], [0], [0], [1], [0, 0, 1, 1], [], []>} : vector<8x32xf32>, vector<32x128xf32>, vector<8x128xf32> -> vector<8x128xf32>
    %586 = arith.addf %581, %585 : vector<8x128xf32>
    %c0_231 = arith.constant 0 : index
    %c0_232 = arith.constant 0 : index
    %587 = vector.load %arg5[%c0_231, %c0_232] : memref<32x128xf32, #tpu.memory_space<vmem>>, vector<32x128xf32>
    %cst_233 = arith.constant dense<0.000000e+00> : vector<8x128xf32>
    %588 = tpu.matmul %570, %587, %cst_233 {dimension_numbers = #tpu.dot_dimension_numbers<[1], [0], [0], [1], [0, 0, 1, 1], [], []>} : vector<8x32xf32>, vector<32x128xf32>, vector<8x128xf32> -> vector<8x128xf32>
    %589 = arith.addf %583, %588 : vector<8x128xf32>
    %590 = vector.extract_strided_slice %586 {offsets = [0, 0], sizes = [8, 32], strides = [1, 1]} : vector<8x128xf32> to vector<8x32xf32>
    %cst_234 = arith.constant 5.000000e-01 : f32
    %591 = vector.broadcast %cst_234 : f32 to vector<8x32xf32>
    %592 = arith.mulf %591, %590 : vector<8x32xf32>
    %593 = math.tanh %592 : vector<8x32xf32>
    %cst_235 = arith.constant 5.000000e-01 : f32
    %594 = vector.broadcast %cst_235 : f32 to vector<8x32xf32>
    %595 = arith.mulf %594, %593 : vector<8x32xf32>
    %cst_236 = arith.constant 5.000000e-01 : f32
    %596 = vector.broadcast %cst_236 : f32 to vector<8x32xf32>
    %597 = arith.addf %595, %596 : vector<8x32xf32>
    %598 = vector.extract_strided_slice %586 {offsets = [0, 32], sizes = [8, 32], strides = [1, 1]} : vector<8x128xf32> to vector<8x32xf32>
    %cst_237 = arith.constant 5.000000e-01 : f32
    %599 = vector.broadcast %cst_237 : f32 to vector<8x32xf32>
    %600 = arith.mulf %599, %598 : vector<8x32xf32>
    %601 = math.tanh %600 : vector<8x32xf32>
    %cst_238 = arith.constant 5.000000e-01 : f32
    %602 = vector.broadcast %cst_238 : f32 to vector<8x32xf32>
    %603 = arith.mulf %602, %601 : vector<8x32xf32>
    %cst_239 = arith.constant 5.000000e-01 : f32
    %604 = vector.broadcast %cst_239 : f32 to vector<8x32xf32>
    %605 = arith.addf %603, %604 : vector<8x32xf32>
    %606 = vector.extract_strided_slice %586 {offsets = [0, 64], sizes = [8, 32], strides = [1, 1]} : vector<8x128xf32> to vector<8x32xf32>
    %607 = math.tanh %606 : vector<8x32xf32>
    %608 = vector.extract_strided_slice %586 {offsets = [0, 96], sizes = [8, 32], strides = [1, 1]} : vector<8x128xf32> to vector<8x32xf32>
    %cst_240 = arith.constant 5.000000e-01 : f32
    %609 = vector.broadcast %cst_240 : f32 to vector<8x32xf32>
    %610 = arith.mulf %609, %608 : vector<8x32xf32>
    %611 = math.tanh %610 : vector<8x32xf32>
    %cst_241 = arith.constant 5.000000e-01 : f32
    %612 = vector.broadcast %cst_241 : f32 to vector<8x32xf32>
    %613 = arith.mulf %612, %611 : vector<8x32xf32>
    %cst_242 = arith.constant 5.000000e-01 : f32
    %614 = vector.broadcast %cst_242 : f32 to vector<8x32xf32>
    %615 = arith.addf %613, %614 : vector<8x32xf32>
    %616 = arith.mulf %605, %537 : vector<8x32xf32>
    %617 = arith.mulf %597, %607 : vector<8x32xf32>
    %618 = arith.addf %616, %617 : vector<8x32xf32>
    %619 = math.tanh %618 : vector<8x32xf32>
    %620 = arith.mulf %615, %619 : vector<8x32xf32>
    %621 = vector.extract_strided_slice %589 {offsets = [0, 0], sizes = [8, 32], strides = [1, 1]} : vector<8x128xf32> to vector<8x32xf32>
    %cst_243 = arith.constant 5.000000e-01 : f32
    %622 = vector.broadcast %cst_243 : f32 to vector<8x32xf32>
    %623 = arith.mulf %622, %621 : vector<8x32xf32>
    %624 = math.tanh %623 : vector<8x32xf32>
    %cst_244 = arith.constant 5.000000e-01 : f32
    %625 = vector.broadcast %cst_244 : f32 to vector<8x32xf32>
    %626 = arith.mulf %625, %624 : vector<8x32xf32>
    %cst_245 = arith.constant 5.000000e-01 : f32
    %627 = vector.broadcast %cst_245 : f32 to vector<8x32xf32>
    %628 = arith.addf %626, %627 : vector<8x32xf32>
    %629 = vector.extract_strided_slice %589 {offsets = [0, 32], sizes = [8, 32], strides = [1, 1]} : vector<8x128xf32> to vector<8x32xf32>
    %cst_246 = arith.constant 5.000000e-01 : f32
    %630 = vector.broadcast %cst_246 : f32 to vector<8x32xf32>
    %631 = arith.mulf %630, %629 : vector<8x32xf32>
    %632 = math.tanh %631 : vector<8x32xf32>
    %cst_247 = arith.constant 5.000000e-01 : f32
    %633 = vector.broadcast %cst_247 : f32 to vector<8x32xf32>
    %634 = arith.mulf %633, %632 : vector<8x32xf32>
    %cst_248 = arith.constant 5.000000e-01 : f32
    %635 = vector.broadcast %cst_248 : f32 to vector<8x32xf32>
    %636 = arith.addf %634, %635 : vector<8x32xf32>
    %637 = vector.extract_strided_slice %589 {offsets = [0, 64], sizes = [8, 32], strides = [1, 1]} : vector<8x128xf32> to vector<8x32xf32>
    %638 = math.tanh %637 : vector<8x32xf32>
    %639 = vector.extract_strided_slice %589 {offsets = [0, 96], sizes = [8, 32], strides = [1, 1]} : vector<8x128xf32> to vector<8x32xf32>
    %cst_249 = arith.constant 5.000000e-01 : f32
    %640 = vector.broadcast %cst_249 : f32 to vector<8x32xf32>
    %641 = arith.mulf %640, %639 : vector<8x32xf32>
    %642 = math.tanh %641 : vector<8x32xf32>
    %cst_250 = arith.constant 5.000000e-01 : f32
    %643 = vector.broadcast %cst_250 : f32 to vector<8x32xf32>
    %644 = arith.mulf %643, %642 : vector<8x32xf32>
    %cst_251 = arith.constant 5.000000e-01 : f32
    %645 = vector.broadcast %cst_251 : f32 to vector<8x32xf32>
    %646 = arith.addf %644, %645 : vector<8x32xf32>
    %647 = arith.mulf %636, %568 : vector<8x32xf32>
    %648 = arith.mulf %628, %638 : vector<8x32xf32>
    %649 = arith.addf %647, %648 : vector<8x32xf32>
    %650 = math.tanh %649 : vector<8x32xf32>
    %651 = arith.mulf %646, %650 : vector<8x32xf32>
    %652 = arith.index_cast %577 : i32 to index
    %c0_252 = arith.constant 0 : index
    %653 = vector.load %arg11[%652, %c0_252] : memref<64x32xf32, #tpu.memory_space<vmem>>, vector<8x32xf32>
    tpu.vector_store %arg11[%652, %c0_252], %620 {strides = array<i32>} : memref<64x32xf32, #tpu.memory_space<vmem>>, vector<8x32xf32>,
    %654 = arith.index_cast %579 : i32 to index
    %c0_253 = arith.constant 0 : index
    %655 = vector.load %arg12[%654, %c0_253] : memref<64x32xf32, #tpu.memory_space<vmem>>, vector<8x32xf32>
    tpu.vector_store %arg12[%654, %c0_253], %651 {strides = array<i32>} : memref<64x32xf32, #tpu.memory_space<vmem>>, vector<8x32xf32>,
    %c8_i32_254 = arith.constant 8 : i32
    %c0_255 = arith.constant 0 : index
    %c0_256 = arith.constant 0 : index
    %656 = vector.load %arg11[%c0_255, %c0_256] : memref<64x32xf32, #tpu.memory_space<vmem>>, vector<64x32xf32>
    %c0_257 = arith.constant 0 : index
    %c0_258 = arith.constant 0 : index
    %657 = vector.load %arg6[%c0_257, %c0_258] : memref<32x128xf32, #tpu.memory_space<vmem>>, vector<32x128xf32>
    %cst_259 = arith.constant dense<0.000000e+00> : vector<64x128xf32>
    %658 = tpu.matmul %656, %657, %cst_259 {dimension_numbers = #tpu.dot_dimension_numbers<[1], [0], [0], [1], [0, 0, 1, 1], [], []>} : vector<64x32xf32>, vector<32x128xf32>, vector<64x128xf32> -> vector<64x128xf32>
    %c0_260 = arith.constant 0 : index
    %c0_261 = arith.constant 0 : index
    %659 = vector.load %arg12[%c0_260, %c0_261] : memref<64x32xf32, #tpu.memory_space<vmem>>, vector<64x32xf32>
    %c0_262 = arith.constant 0 : index
    %c0_263 = arith.constant 0 : index
    %660 = vector.load %arg7[%c0_262, %c0_263] : memref<32x128xf32, #tpu.memory_space<vmem>>, vector<32x128xf32>
    %cst_264 = arith.constant dense<0.000000e+00> : vector<64x128xf32>
    %661 = tpu.matmul %659, %660, %cst_264 {dimension_numbers = #tpu.dot_dimension_numbers<[1], [0], [0], [1], [0, 0, 1, 1], [], []>} : vector<64x32xf32>, vector<32x128xf32>, vector<64x128xf32> -> vector<64x128xf32>
    %662 = arith.addf %658, %661 : vector<64x128xf32>
    %c0_265 = arith.constant 0 : index
    %c0_266 = arith.constant 0 : index
    %663 = vector.load %arg8[%c0_265, %c0_266] : memref<1x128xf32, #tpu.memory_space<vmem>>, vector<1x128xf32>
    %664 = vector.broadcast %663 : vector<1x128xf32> to vector<64x128xf32>
    %665 = arith.addf %662, %664 : vector<64x128xf32>
    %c0_267 = arith.constant 0 : index
    %c0_268 = arith.constant 0 : index
    %666 = vector.load %arg9[%c0_267, %c0_268] : memref<64x128xf32, #tpu.memory_space<vmem>>, vector<64x128xf32>
    tpu.vector_store %arg9[%c0_267, %c0_268], %665 {strides = array<i32>} : memref<64x128xf32, #tpu.memory_space<vmem>>, vector<64x128xf32>,
    return
  }
  func.func @transform_0(%arg0: i32) -> (i32, i32) {
    %c0_i32 = arith.constant 0 : i32
    %c0_i32_0 = arith.constant 0 : i32
    %c0_i32_1 = arith.constant 0 : i32
    return %c0_i32, %c0_i32_0 : i32, i32
  }
  func.func @transform_1(%arg0: i32) -> (i32, i32) {
    %c0_i32 = arith.constant 0 : i32
    %c0_i32_0 = arith.constant 0 : i32
    %c0_i32_1 = arith.constant 0 : i32
    return %c0_i32, %c0_i32_0 : i32, i32
  }
  func.func @transform_2(%arg0: i32) -> (i32, i32) {
    %c0_i32 = arith.constant 0 : i32
    %c0_i32_0 = arith.constant 0 : i32
    %c0_i32_1 = arith.constant 0 : i32
    return %c0_i32, %c0_i32_0 : i32, i32
  }
  func.func @transform_3(%arg0: i32) -> (i32, i32) {
    %c0_i32 = arith.constant 0 : i32
    %c0_i32_0 = arith.constant 0 : i32
    %c0_i32_1 = arith.constant 0 : i32
    return %c0_i32, %c0_i32_0 : i32, i32
  }
  func.func @transform_4(%arg0: i32) -> (i32, i32) {
    %c0_i32 = arith.constant 0 : i32
    %c0_i32_0 = arith.constant 0 : i32
    %c0_i32_1 = arith.constant 0 : i32
    return %c0_i32, %c0_i32_0 : i32, i32
  }
  func.func @transform_5(%arg0: i32) -> (i32, i32) {
    %c0_i32 = arith.constant 0 : i32
    %c0_i32_0 = arith.constant 0 : i32
    %c0_i32_1 = arith.constant 0 : i32
    return %c0_i32, %c0_i32_0 : i32, i32
  }
  func.func @transform_6(%arg0: i32) -> (i32, i32) {
    %c0_i32 = arith.constant 0 : i32
    %c0_i32_0 = arith.constant 0 : i32
    %c0_i32_1 = arith.constant 0 : i32
    return %c0_i32, %c0_i32_0 : i32, i32
  }
  func.func @transform_7(%arg0: i32) -> (i32, i32) {
    %c0_i32 = arith.constant 0 : i32
    %c0_i32_0 = arith.constant 0 : i32
    %c0_i32_1 = arith.constant 0 : i32
    return %c0_i32, %c0_i32_0 : i32, i32
  }
  func.func @transform_8(%arg0: i32) -> (i32, i32) {
    %c0_i32 = arith.constant 0 : i32
    %c0_i32_0 = arith.constant 0 : i32
    %c0_i32_1 = arith.constant 0 : i32
    return %c0_i32, %c0_i32_0 : i32, i32
  }
}

module attributes {stable_mosaic.version = 11 : i64} {
  func.func @bilstm_layer_kernel(%arg0: i32, %arg1: memref<64x128xf32, #tpu.memory_space<vmem>>, %arg2: memref<128x256xf32, #tpu.memory_space<vmem>>, %arg3: memref<1x256xf32, #tpu.memory_space<vmem>>, %arg4: memref<32x128xf32, #tpu.memory_space<vmem>>, %arg5: memref<32x128xf32, #tpu.memory_space<vmem>>, %arg6: memref<32x128xf32, #tpu.memory_space<vmem>>, %arg7: memref<32x128xf32, #tpu.memory_space<vmem>>, %arg8: memref<1x128xf32, #tpu.memory_space<vmem>>, %arg9: memref<64x128xf32, #tpu.memory_space<vmem>>, %arg10: memref<64x256xf32, #tpu.memory_space<vmem>>, %arg11: memref<64x32xf32, #tpu.memory_space<vmem>>, %arg12: memref<64x32xf32, #tpu.memory_space<vmem>>) attributes {dimension_semantics = [#tpu.dimension_semantics<arbitrary>], iteration_bounds = array<i64: 1>, scalar_prefetch = 0 : i64, scratch_operands = 3 : i64, tpu.core_type = #tpu.core_type<tc>, window_params = [{pipeline_mode = #tpu.pipeline_mode<synchronous>, transform_indices = @transform_0, window_bounds = array<i64: 64, 128>}, {pipeline_mode = #tpu.pipeline_mode<synchronous>, transform_indices = @transform_1, window_bounds = array<i64: 128, 256>}, {pipeline_mode = #tpu.pipeline_mode<synchronous>, transform_indices = @transform_2, window_bounds = array<i64: 1, 256>}, {pipeline_mode = #tpu.pipeline_mode<synchronous>, transform_indices = @transform_3, window_bounds = array<i64: 32, 128>}, {pipeline_mode = #tpu.pipeline_mode<synchronous>, transform_indices = @transform_4, window_bounds = array<i64: 32, 128>}, {pipeline_mode = #tpu.pipeline_mode<synchronous>, transform_indices = @transform_5, window_bounds = array<i64: 32, 128>}, {pipeline_mode = #tpu.pipeline_mode<synchronous>, transform_indices = @transform_6, window_bounds = array<i64: 32, 128>}, {pipeline_mode = #tpu.pipeline_mode<synchronous>, transform_indices = @transform_7, window_bounds = array<i64: 1, 128>}, {pipeline_mode = #tpu.pipeline_mode<synchronous>, transform_indices = @transform_8, window_bounds = array<i64: 64, 128>}]} {
    %c0 = arith.constant 0 : index
    %c0_0 = arith.constant 0 : index
    %0 = vector.load %arg1[%c0, %c0_0] : memref<64x128xf32, #tpu.memory_space<vmem>>, vector<64x128xf32>
    %c0_1 = arith.constant 0 : index
    %c0_2 = arith.constant 0 : index
    %1 = vector.load %arg2[%c0_1, %c0_2] : memref<128x256xf32, #tpu.memory_space<vmem>>, vector<128x256xf32>
    %cst = arith.constant dense<0.000000e+00> : vector<64x256xf32>
    %2 = tpu.matmul %0, %1, %cst {dimension_numbers = #tpu.dot_dimension_numbers<[1], [0], [0], [1], [0, 0, 1, 1], [], []>} : vector<64x128xf32>, vector<128x256xf32>, vector<64x256xf32> -> vector<64x256xf32>
    %c0_3 = arith.constant 0 : index
    %c0_4 = arith.constant 0 : index
    %3 = vector.load %arg3[%c0_3, %c0_4] : memref<1x256xf32, #tpu.memory_space<vmem>>, vector<1x256xf32>
    %4 = vector.broadcast %3 : vector<1x256xf32> to vector<64x256xf32>
    %5 = arith.addf %2, %4 : vector<64x256xf32>
    %c0_5 = arith.constant 0 : index
    %c0_6 = arith.constant 0 : index
    %6 = vector.load %arg10[%c0_5, %c0_6] : memref<64x256xf32, #tpu.memory_space<vmem>>, vector<64x256xf32>
    tpu.vector_store %arg10[%c0_5, %c0_6], %5 {strides = array<i32>} : memref<64x256xf32, #tpu.memory_space<vmem>>, vector<64x256xf32>,
    %cst_7 = arith.constant 0.000000e+00 : f32
    %7 = vector.broadcast %cst_7 : f32 to vector<8x32xf32>
    %c0_i32 = arith.constant 0 : i32
    %c7_i32 = arith.constant 7 : i32
    %8 = arith.subi %c7_i32, %c0_i32 : i32
    %c8_i32 = arith.constant 8 : i32
    %9 = arith.muli %c0_i32, %c8_i32 : i32
    %10 = tpu.assume_multiple %9, 8 : i32
    %c8_i32_8 = arith.constant 8 : i32
    %11 = arith.muli %8, %c8_i32_8 : i32
    %12 = tpu.assume_multiple %11, 8 : i32
    %13 = arith.index_cast %10 : i32 to index
    %c0_9 = arith.constant 0 : index
    %14 = vector.load %arg10[%13, %c0_9] : memref<64x256xf32, #tpu.memory_space<vmem>>, vector<8x128xf32>
    %15 = arith.index_cast %12 : i32 to index
    %c128 = arith.constant 128 : index
    %16 = vector.load %arg10[%15, %c128] : memref<64x256xf32, #tpu.memory_space<vmem>>, vector<8x128xf32>
    %c0_10 = arith.constant 0 : index
    %c0_11 = arith.constant 0 : index
    %17 = vector.load %arg4[%c0_10, %c0_11] : memref<32x128xf32, #tpu.memory_space<vmem>>, vector<32x128xf32>
    %cst_12 = arith.constant dense<0.000000e+00> : vector<8x128xf32>
    %18 = tpu.matmul %7, %17, %cst_12 {dimension_numbers = #tpu.dot_dimension_numbers<[1], [0], [0], [1], [0, 0, 1, 1], [], []>} : vector<8x32xf32>, vector<32x128xf32>, vector<8x128xf32> -> vector<8x128xf32>
    %19 = arith.addf %14, %18 : vector<8x128xf32>
    %c0_13 = arith.constant 0 : index
    %c0_14 = arith.constant 0 : index
    %20 = vector.load %arg5[%c0_13, %c0_14] : memref<32x128xf32, #tpu.memory_space<vmem>>, vector<32x128xf32>
    %cst_15 = arith.constant dense<0.000000e+00> : vector<8x128xf32>
    %21 = tpu.matmul %7, %20, %cst_15 {dimension_numbers = #tpu.dot_dimension_numbers<[1], [0], [0], [1], [0, 0, 1, 1], [], []>} : vector<8x32xf32>, vector<32x128xf32>, vector<8x128xf32> -> vector<8x128xf32>
    %22 = arith.addf %16, %21 : vector<8x128xf32>
    %23 = vector.extract_strided_slice %19 {offsets = [0, 0], sizes = [8, 32], strides = [1, 1]} : vector<8x128xf32> to vector<8x32xf32>
    %cst_16 = arith.constant 5.000000e-01 : f32
    %24 = vector.broadcast %cst_16 : f32 to vector<8x32xf32>
    %25 = arith.mulf %24, %23 : vector<8x32xf32>
    %26 = math.tanh %25 : vector<8x32xf32>
    %cst_17 = arith.constant 5.000000e-01 : f32
    %27 = vector.broadcast %cst_17 : f32 to vector<8x32xf32>
    %28 = arith.mulf %27, %26 : vector<8x32xf32>
    %cst_18 = arith.constant 5.000000e-01 : f32
    %29 = vector.broadcast %cst_18 : f32 to vector<8x32xf32>
    %30 = arith.addf %28, %29 : vector<8x32xf32>
    %31 = vector.extract_strided_slice %19 {offsets = [0, 32], sizes = [8, 32], strides = [1, 1]} : vector<8x128xf32> to vector<8x32xf32>
    %cst_19 = arith.constant 5.000000e-01 : f32
    %32 = vector.broadcast %cst_19 : f32 to vector<8x32xf32>
    %33 = arith.mulf %32, %31 : vector<8x32xf32>
    %34 = math.tanh %33 : vector<8x32xf32>
    %cst_20 = arith.constant 5.000000e-01 : f32
    %35 = vector.broadcast %cst_20 : f32 to vector<8x32xf32>
    %36 = arith.mulf %35, %34 : vector<8x32xf32>
    %cst_21 = arith.constant 5.000000e-01 : f32
    %37 = vector.broadcast %cst_21 : f32 to vector<8x32xf32>
    %38 = arith.addf %36, %37 : vector<8x32xf32>
    %39 = vector.extract_strided_slice %19 {offsets = [0, 64], sizes = [8, 32], strides = [1, 1]} : vector<8x128xf32> to vector<8x32xf32>
    %40 = math.tanh %39 : vector<8x32xf32>
    %41 = vector.extract_strided_slice %19 {offsets = [0, 96], sizes = [8, 32], strides = [1, 1]} : vector<8x128xf32> to vector<8x32xf32>
    %cst_22 = arith.constant 5.000000e-01 : f32
    %42 = vector.broadcast %cst_22 : f32 to vector<8x32xf32>
    %43 = arith.mulf %42, %41 : vector<8x32xf32>
    %44 = math.tanh %43 : vector<8x32xf32>
    %cst_23 = arith.constant 5.000000e-01 : f32
    %45 = vector.broadcast %cst_23 : f32 to vector<8x32xf32>
    %46 = arith.mulf %45, %44 : vector<8x32xf32>
    %cst_24 = arith.constant 5.000000e-01 : f32
    %47 = vector.broadcast %cst_24 : f32 to vector<8x32xf32>
    %48 = arith.addf %46, %47 : vector<8x32xf32>
    %49 = arith.mulf %38, %7 : vector<8x32xf32>
    %50 = arith.mulf %30, %40 : vector<8x32xf32>
    %51 = arith.addf %49, %50 : vector<8x32xf32>
    %52 = math.tanh %51 : vector<8x32xf32>
    %53 = arith.mulf %48, %52 : vector<8x32xf32>
    %54 = vector.extract_strided_slice %22 {offsets = [0, 0], sizes = [8, 32], strides = [1, 1]} : vector<8x128xf32> to vector<8x32xf32>
    %cst_25 = arith.constant 5.000000e-01 : f32
    %55 = vector.broadcast %cst_25 : f32 to vector<8x32xf32>
    %56 = arith.mulf %55, %54 : vector<8x32xf32>
    %57 = math.tanh %56 : vector<8x32xf32>
    %cst_26 = arith.constant 5.000000e-01 : f32
    %58 = vector.broadcast %cst_26 : f32 to vector<8x32xf32>
    %59 = arith.mulf %58, %57 : vector<8x32xf32>
    %cst_27 = arith.constant 5.000000e-01 : f32
    %60 = vector.broadcast %cst_27 : f32 to vector<8x32xf32>
    %61 = arith.addf %59, %60 : vector<8x32xf32>
    %62 = vector.extract_strided_slice %22 {offsets = [0, 32], sizes = [8, 32], strides = [1, 1]} : vector<8x128xf32> to vector<8x32xf32>
    %cst_28 = arith.constant 5.000000e-01 : f32
    %63 = vector.broadcast %cst_28 : f32 to vector<8x32xf32>
    %64 = arith.mulf %63, %62 : vector<8x32xf32>
    %65 = math.tanh %64 : vector<8x32xf32>
    %cst_29 = arith.constant 5.000000e-01 : f32
    %66 = vector.broadcast %cst_29 : f32 to vector<8x32xf32>
    %67 = arith.mulf %66, %65 : vector<8x32xf32>
    %cst_30 = arith.constant 5.000000e-01 : f32
    %68 = vector.broadcast %cst_30 : f32 to vector<8x32xf32>
    %69 = arith.addf %67, %68 : vector<8x32xf32>
    %70 = vector.extract_strided_slice %22 {offsets = [0, 64], sizes = [8, 32], strides = [1, 1]} : vector<8x128xf32> to vector<8x32xf32>
    %71 = math.tanh %70 : vector<8x32xf32>
    %72 = vector.extract_strided_slice %22 {offsets = [0, 96], sizes = [8, 32], strides = [1, 1]} : vector<8x128xf32> to vector<8x32xf32>
    %cst_31 = arith.constant 5.000000e-01 : f32
    %73 = vector.broadcast %cst_31 : f32 to vector<8x32xf32>
    %74 = arith.mulf %73, %72 : vector<8x32xf32>
    %75 = math.tanh %74 : vector<8x32xf32>
    %cst_32 = arith.constant 5.000000e-01 : f32
    %76 = vector.broadcast %cst_32 : f32 to vector<8x32xf32>
    %77 = arith.mulf %76, %75 : vector<8x32xf32>
    %cst_33 = arith.constant 5.000000e-01 : f32
    %78 = vector.broadcast %cst_33 : f32 to vector<8x32xf32>
    %79 = arith.addf %77, %78 : vector<8x32xf32>
    %80 = arith.mulf %69, %7 : vector<8x32xf32>
    %81 = arith.mulf %61, %71 : vector<8x32xf32>
    %82 = arith.addf %80, %81 : vector<8x32xf32>
    %83 = math.tanh %82 : vector<8x32xf32>
    %84 = arith.mulf %79, %83 : vector<8x32xf32>
    %85 = arith.index_cast %10 : i32 to index
    %c0_34 = arith.constant 0 : index
    %86 = vector.load %arg11[%85, %c0_34] : memref<64x32xf32, #tpu.memory_space<vmem>>, vector<8x32xf32>
    tpu.vector_store %arg11[%85, %c0_34], %53 {strides = array<i32>} : memref<64x32xf32, #tpu.memory_space<vmem>>, vector<8x32xf32>,
    %87 = arith.index_cast %12 : i32 to index
    %c0_35 = arith.constant 0 : index
    %88 = vector.load %arg12[%87, %c0_35] : memref<64x32xf32, #tpu.memory_space<vmem>>, vector<8x32xf32>
    tpu.vector_store %arg12[%87, %c0_35], %84 {strides = array<i32>} : memref<64x32xf32, #tpu.memory_space<vmem>>, vector<8x32xf32>,
    %c1_i32 = arith.constant 1 : i32
    %c7_i32_36 = arith.constant 7 : i32
    %89 = arith.subi %c7_i32_36, %c1_i32 : i32
    %c8_i32_37 = arith.constant 8 : i32
    %90 = arith.muli %c1_i32, %c8_i32_37 : i32
    %91 = tpu.assume_multiple %90, 8 : i32
    %c8_i32_38 = arith.constant 8 : i32
    %92 = arith.muli %89, %c8_i32_38 : i32
    %93 = tpu.assume_multiple %92, 8 : i32
    %94 = arith.index_cast %91 : i32 to index
    %c0_39 = arith.constant 0 : index
    %95 = vector.load %arg10[%94, %c0_39] : memref<64x256xf32, #tpu.memory_space<vmem>>, vector<8x128xf32>
    %96 = arith.index_cast %93 : i32 to index
    %c128_40 = arith.constant 128 : index
    %97 = vector.load %arg10[%96, %c128_40] : memref<64x256xf32, #tpu.memory_space<vmem>>, vector<8x128xf32>
    %c0_41 = arith.constant 0 : index
    %c0_42 = arith.constant 0 : index
    %98 = vector.load %arg4[%c0_41, %c0_42] : memref<32x128xf32, #tpu.memory_space<vmem>>, vector<32x128xf32>
    %cst_43 = arith.constant dense<0.000000e+00> : vector<8x128xf32>
    %99 = tpu.matmul %53, %98, %cst_43 {dimension_numbers = #tpu.dot_dimension_numbers<[1], [0], [0], [1], [0, 0, 1, 1], [], []>} : vector<8x32xf32>, vector<32x128xf32>, vector<8x128xf32> -> vector<8x128xf32>
    %100 = arith.addf %95, %99 : vector<8x128xf32>
    %c0_44 = arith.constant 0 : index
    %c0_45 = arith.constant 0 : index
    %101 = vector.load %arg5[%c0_44, %c0_45] : memref<32x128xf32, #tpu.memory_space<vmem>>, vector<32x128xf32>
    %cst_46 = arith.constant dense<0.000000e+00> : vector<8x128xf32>
    %102 = tpu.matmul %84, %101, %cst_46 {dimension_numbers = #tpu.dot_dimension_numbers<[1], [0], [0], [1], [0, 0, 1, 1], [], []>} : vector<8x32xf32>, vector<32x128xf32>, vector<8x128xf32> -> vector<8x128xf32>
    %103 = arith.addf %97, %102 : vector<8x128xf32>
    %104 = vector.extract_strided_slice %100 {offsets = [0, 0], sizes = [8, 32], strides = [1, 1]} : vector<8x128xf32> to vector<8x32xf32>
    %cst_47 = arith.constant 5.000000e-01 : f32
    %105 = vector.broadcast %cst_47 : f32 to vector<8x32xf32>
    %106 = arith.mulf %105, %104 : vector<8x32xf32>
    %107 = math.tanh %106 : vector<8x32xf32>
    %cst_48 = arith.constant 5.000000e-01 : f32
    %108 = vector.broadcast %cst_48 : f32 to vector<8x32xf32>
    %109 = arith.mulf %108, %107 : vector<8x32xf32>
    %cst_49 = arith.constant 5.000000e-01 : f32
    %110 = vector.broadcast %cst_49 : f32 to vector<8x32xf32>
    %111 = arith.addf %109, %110 : vector<8x32xf32>
    %112 = vector.extract_strided_slice %100 {offsets = [0, 32], sizes = [8, 32], strides = [1, 1]} : vector<8x128xf32> to vector<8x32xf32>
    %cst_50 = arith.constant 5.000000e-01 : f32
    %113 = vector.broadcast %cst_50 : f32 to vector<8x32xf32>
    %114 = arith.mulf %113, %112 : vector<8x32xf32>
    %115 = math.tanh %114 : vector<8x32xf32>
    %cst_51 = arith.constant 5.000000e-01 : f32
    %116 = vector.broadcast %cst_51 : f32 to vector<8x32xf32>
    %117 = arith.mulf %116, %115 : vector<8x32xf32>
    %cst_52 = arith.constant 5.000000e-01 : f32
    %118 = vector.broadcast %cst_52 : f32 to vector<8x32xf32>
    %119 = arith.addf %117, %118 : vector<8x32xf32>
    %120 = vector.extract_strided_slice %100 {offsets = [0, 64], sizes = [8, 32], strides = [1, 1]} : vector<8x128xf32> to vector<8x32xf32>
    %121 = math.tanh %120 : vector<8x32xf32>
    %122 = vector.extract_strided_slice %100 {offsets = [0, 96], sizes = [8, 32], strides = [1, 1]} : vector<8x128xf32> to vector<8x32xf32>
    %cst_53 = arith.constant 5.000000e-01 : f32
    %123 = vector.broadcast %cst_53 : f32 to vector<8x32xf32>
    %124 = arith.mulf %123, %122 : vector<8x32xf32>
    %125 = math.tanh %124 : vector<8x32xf32>
    %cst_54 = arith.constant 5.000000e-01 : f32
    %126 = vector.broadcast %cst_54 : f32 to vector<8x32xf32>
    %127 = arith.mulf %126, %125 : vector<8x32xf32>
    %cst_55 = arith.constant 5.000000e-01 : f32
    %128 = vector.broadcast %cst_55 : f32 to vector<8x32xf32>
    %129 = arith.addf %127, %128 : vector<8x32xf32>
    %130 = arith.mulf %119, %51 : vector<8x32xf32>
    %131 = arith.mulf %111, %121 : vector<8x32xf32>
    %132 = arith.addf %130, %131 : vector<8x32xf32>
    %133 = math.tanh %132 : vector<8x32xf32>
    %134 = arith.mulf %129, %133 : vector<8x32xf32>
    %135 = vector.extract_strided_slice %103 {offsets = [0, 0], sizes = [8, 32], strides = [1, 1]} : vector<8x128xf32> to vector<8x32xf32>
    %cst_56 = arith.constant 5.000000e-01 : f32
    %136 = vector.broadcast %cst_56 : f32 to vector<8x32xf32>
    %137 = arith.mulf %136, %135 : vector<8x32xf32>
    %138 = math.tanh %137 : vector<8x32xf32>
    %cst_57 = arith.constant 5.000000e-01 : f32
    %139 = vector.broadcast %cst_57 : f32 to vector<8x32xf32>
    %140 = arith.mulf %139, %138 : vector<8x32xf32>
    %cst_58 = arith.constant 5.000000e-01 : f32
    %141 = vector.broadcast %cst_58 : f32 to vector<8x32xf32>
    %142 = arith.addf %140, %141 : vector<8x32xf32>
    %143 = vector.extract_strided_slice %103 {offsets = [0, 32], sizes = [8, 32], strides = [1, 1]} : vector<8x128xf32> to vector<8x32xf32>
    %cst_59 = arith.constant 5.000000e-01 : f32
    %144 = vector.broadcast %cst_59 : f32 to vector<8x32xf32>
    %145 = arith.mulf %144, %143 : vector<8x32xf32>
    %146 = math.tanh %145 : vector<8x32xf32>
    %cst_60 = arith.constant 5.000000e-01 : f32
    %147 = vector.broadcast %cst_60 : f32 to vector<8x32xf32>
    %148 = arith.mulf %147, %146 : vector<8x32xf32>
    %cst_61 = arith.constant 5.000000e-01 : f32
    %149 = vector.broadcast %cst_61 : f32 to vector<8x32xf32>
    %150 = arith.addf %148, %149 : vector<8x32xf32>
    %151 = vector.extract_strided_slice %103 {offsets = [0, 64], sizes = [8, 32], strides = [1, 1]} : vector<8x128xf32> to vector<8x32xf32>
    %152 = math.tanh %151 : vector<8x32xf32>
    %153 = vector.extract_strided_slice %103 {offsets = [0, 96], sizes = [8, 32], strides = [1, 1]} : vector<8x128xf32> to vector<8x32xf32>
    %cst_62 = arith.constant 5.000000e-01 : f32
    %154 = vector.broadcast %cst_62 : f32 to vector<8x32xf32>
    %155 = arith.mulf %154, %153 : vector<8x32xf32>
    %156 = math.tanh %155 : vector<8x32xf32>
    %cst_63 = arith.constant 5.000000e-01 : f32
    %157 = vector.broadcast %cst_63 : f32 to vector<8x32xf32>
    %158 = arith.mulf %157, %156 : vector<8x32xf32>
    %cst_64 = arith.constant 5.000000e-01 : f32
    %159 = vector.broadcast %cst_64 : f32 to vector<8x32xf32>
    %160 = arith.addf %158, %159 : vector<8x32xf32>
    %161 = arith.mulf %150, %82 : vector<8x32xf32>
    %162 = arith.mulf %142, %152 : vector<8x32xf32>
    %163 = arith.addf %161, %162 : vector<8x32xf32>
    %164 = math.tanh %163 : vector<8x32xf32>
    %165 = arith.mulf %160, %164 : vector<8x32xf32>
    %166 = arith.index_cast %91 : i32 to index
    %c0_65 = arith.constant 0 : index
    %167 = vector.load %arg11[%166, %c0_65] : memref<64x32xf32, #tpu.memory_space<vmem>>, vector<8x32xf32>
    tpu.vector_store %arg11[%166, %c0_65], %134 {strides = array<i32>} : memref<64x32xf32, #tpu.memory_space<vmem>>, vector<8x32xf32>,
    %168 = arith.index_cast %93 : i32 to index
    %c0_66 = arith.constant 0 : index
    %169 = vector.load %arg12[%168, %c0_66] : memref<64x32xf32, #tpu.memory_space<vmem>>, vector<8x32xf32>
    tpu.vector_store %arg12[%168, %c0_66], %165 {strides = array<i32>} : memref<64x32xf32, #tpu.memory_space<vmem>>, vector<8x32xf32>,
    %c2_i32 = arith.constant 2 : i32
    %c7_i32_67 = arith.constant 7 : i32
    %170 = arith.subi %c7_i32_67, %c2_i32 : i32
    %c8_i32_68 = arith.constant 8 : i32
    %171 = arith.muli %c2_i32, %c8_i32_68 : i32
    %172 = tpu.assume_multiple %171, 8 : i32
    %c8_i32_69 = arith.constant 8 : i32
    %173 = arith.muli %170, %c8_i32_69 : i32
    %174 = tpu.assume_multiple %173, 8 : i32
    %175 = arith.index_cast %172 : i32 to index
    %c0_70 = arith.constant 0 : index
    %176 = vector.load %arg10[%175, %c0_70] : memref<64x256xf32, #tpu.memory_space<vmem>>, vector<8x128xf32>
    %177 = arith.index_cast %174 : i32 to index
    %c128_71 = arith.constant 128 : index
    %178 = vector.load %arg10[%177, %c128_71] : memref<64x256xf32, #tpu.memory_space<vmem>>, vector<8x128xf32>
    %c0_72 = arith.constant 0 : index
    %c0_73 = arith.constant 0 : index
    %179 = vector.load %arg4[%c0_72, %c0_73] : memref<32x128xf32, #tpu.memory_space<vmem>>, vector<32x128xf32>
    %cst_74 = arith.constant dense<0.000000e+00> : vector<8x128xf32>
    %180 = tpu.matmul %134, %179, %cst_74 {dimension_numbers = #tpu.dot_dimension_numbers<[1], [0], [0], [1], [0, 0, 1, 1], [], []>} : vector<8x32xf32>, vector<32x128xf32>, vector<8x128xf32> -> vector<8x128xf32>
    %181 = arith.addf %176, %180 : vector<8x128xf32>
    %c0_75 = arith.constant 0 : index
    %c0_76 = arith.constant 0 : index
    %182 = vector.load %arg5[%c0_75, %c0_76] : memref<32x128xf32, #tpu.memory_space<vmem>>, vector<32x128xf32>
    %cst_77 = arith.constant dense<0.000000e+00> : vector<8x128xf32>
    %183 = tpu.matmul %165, %182, %cst_77 {dimension_numbers = #tpu.dot_dimension_numbers<[1], [0], [0], [1], [0, 0, 1, 1], [], []>} : vector<8x32xf32>, vector<32x128xf32>, vector<8x128xf32> -> vector<8x128xf32>
    %184 = arith.addf %178, %183 : vector<8x128xf32>
    %185 = vector.extract_strided_slice %181 {offsets = [0, 0], sizes = [8, 32], strides = [1, 1]} : vector<8x128xf32> to vector<8x32xf32>
    %cst_78 = arith.constant 5.000000e-01 : f32
    %186 = vector.broadcast %cst_78 : f32 to vector<8x32xf32>
    %187 = arith.mulf %186, %185 : vector<8x32xf32>
    %188 = math.tanh %187 : vector<8x32xf32>
    %cst_79 = arith.constant 5.000000e-01 : f32
    %189 = vector.broadcast %cst_79 : f32 to vector<8x32xf32>
    %190 = arith.mulf %189, %188 : vector<8x32xf32>
    %cst_80 = arith.constant 5.000000e-01 : f32
    %191 = vector.broadcast %cst_80 : f32 to vector<8x32xf32>
    %192 = arith.addf %190, %191 : vector<8x32xf32>
    %193 = vector.extract_strided_slice %181 {offsets = [0, 32], sizes = [8, 32], strides = [1, 1]} : vector<8x128xf32> to vector<8x32xf32>
    %cst_81 = arith.constant 5.000000e-01 : f32
    %194 = vector.broadcast %cst_81 : f32 to vector<8x32xf32>
    %195 = arith.mulf %194, %193 : vector<8x32xf32>
    %196 = math.tanh %195 : vector<8x32xf32>
    %cst_82 = arith.constant 5.000000e-01 : f32
    %197 = vector.broadcast %cst_82 : f32 to vector<8x32xf32>
    %198 = arith.mulf %197, %196 : vector<8x32xf32>
    %cst_83 = arith.constant 5.000000e-01 : f32
    %199 = vector.broadcast %cst_83 : f32 to vector<8x32xf32>
    %200 = arith.addf %198, %199 : vector<8x32xf32>
    %201 = vector.extract_strided_slice %181 {offsets = [0, 64], sizes = [8, 32], strides = [1, 1]} : vector<8x128xf32> to vector<8x32xf32>
    %202 = math.tanh %201 : vector<8x32xf32>
    %203 = vector.extract_strided_slice %181 {offsets = [0, 96], sizes = [8, 32], strides = [1, 1]} : vector<8x128xf32> to vector<8x32xf32>
    %cst_84 = arith.constant 5.000000e-01 : f32
    %204 = vector.broadcast %cst_84 : f32 to vector<8x32xf32>
    %205 = arith.mulf %204, %203 : vector<8x32xf32>
    %206 = math.tanh %205 : vector<8x32xf32>
    %cst_85 = arith.constant 5.000000e-01 : f32
    %207 = vector.broadcast %cst_85 : f32 to vector<8x32xf32>
    %208 = arith.mulf %207, %206 : vector<8x32xf32>
    %cst_86 = arith.constant 5.000000e-01 : f32
    %209 = vector.broadcast %cst_86 : f32 to vector<8x32xf32>
    %210 = arith.addf %208, %209 : vector<8x32xf32>
    %211 = arith.mulf %200, %132 : vector<8x32xf32>
    %212 = arith.mulf %192, %202 : vector<8x32xf32>
    %213 = arith.addf %211, %212 : vector<8x32xf32>
    %214 = math.tanh %213 : vector<8x32xf32>
    %215 = arith.mulf %210, %214 : vector<8x32xf32>
    %216 = vector.extract_strided_slice %184 {offsets = [0, 0], sizes = [8, 32], strides = [1, 1]} : vector<8x128xf32> to vector<8x32xf32>
    %cst_87 = arith.constant 5.000000e-01 : f32
    %217 = vector.broadcast %cst_87 : f32 to vector<8x32xf32>
    %218 = arith.mulf %217, %216 : vector<8x32xf32>
    %219 = math.tanh %218 : vector<8x32xf32>
    %cst_88 = arith.constant 5.000000e-01 : f32
    %220 = vector.broadcast %cst_88 : f32 to vector<8x32xf32>
    %221 = arith.mulf %220, %219 : vector<8x32xf32>
    %cst_89 = arith.constant 5.000000e-01 : f32
    %222 = vector.broadcast %cst_89 : f32 to vector<8x32xf32>
    %223 = arith.addf %221, %222 : vector<8x32xf32>
    %224 = vector.extract_strided_slice %184 {offsets = [0, 32], sizes = [8, 32], strides = [1, 1]} : vector<8x128xf32> to vector<8x32xf32>
    %cst_90 = arith.constant 5.000000e-01 : f32
    %225 = vector.broadcast %cst_90 : f32 to vector<8x32xf32>
    %226 = arith.mulf %225, %224 : vector<8x32xf32>
    %227 = math.tanh %226 : vector<8x32xf32>
    %cst_91 = arith.constant 5.000000e-01 : f32
    %228 = vector.broadcast %cst_91 : f32 to vector<8x32xf32>
    %229 = arith.mulf %228, %227 : vector<8x32xf32>
    %cst_92 = arith.constant 5.000000e-01 : f32
    %230 = vector.broadcast %cst_92 : f32 to vector<8x32xf32>
    %231 = arith.addf %229, %230 : vector<8x32xf32>
    %232 = vector.extract_strided_slice %184 {offsets = [0, 64], sizes = [8, 32], strides = [1, 1]} : vector<8x128xf32> to vector<8x32xf32>
    %233 = math.tanh %232 : vector<8x32xf32>
    %234 = vector.extract_strided_slice %184 {offsets = [0, 96], sizes = [8, 32], strides = [1, 1]} : vector<8x128xf32> to vector<8x32xf32>
    %cst_93 = arith.constant 5.000000e-01 : f32
    %235 = vector.broadcast %cst_93 : f32 to vector<8x32xf32>
    %236 = arith.mulf %235, %234 : vector<8x32xf32>
    %237 = math.tanh %236 : vector<8x32xf32>
    %cst_94 = arith.constant 5.000000e-01 : f32
    %238 = vector.broadcast %cst_94 : f32 to vector<8x32xf32>
    %239 = arith.mulf %238, %237 : vector<8x32xf32>
    %cst_95 = arith.constant 5.000000e-01 : f32
    %240 = vector.broadcast %cst_95 : f32 to vector<8x32xf32>
    %241 = arith.addf %239, %240 : vector<8x32xf32>
    %242 = arith.mulf %231, %163 : vector<8x32xf32>
    %243 = arith.mulf %223, %233 : vector<8x32xf32>
    %244 = arith.addf %242, %243 : vector<8x32xf32>
    %245 = math.tanh %244 : vector<8x32xf32>
    %246 = arith.mulf %241, %245 : vector<8x32xf32>
    %247 = arith.index_cast %172 : i32 to index
    %c0_96 = arith.constant 0 : index
    %248 = vector.load %arg11[%247, %c0_96] : memref<64x32xf32, #tpu.memory_space<vmem>>, vector<8x32xf32>
    tpu.vector_store %arg11[%247, %c0_96], %215 {strides = array<i32>} : memref<64x32xf32, #tpu.memory_space<vmem>>, vector<8x32xf32>,
    %249 = arith.index_cast %174 : i32 to index
    %c0_97 = arith.constant 0 : index
    %250 = vector.load %arg12[%249, %c0_97] : memref<64x32xf32, #tpu.memory_space<vmem>>, vector<8x32xf32>
    tpu.vector_store %arg12[%249, %c0_97], %246 {strides = array<i32>} : memref<64x32xf32, #tpu.memory_space<vmem>>, vector<8x32xf32>,
    %c3_i32 = arith.constant 3 : i32
    %c7_i32_98 = arith.constant 7 : i32
    %251 = arith.subi %c7_i32_98, %c3_i32 : i32
    %c8_i32_99 = arith.constant 8 : i32
    %252 = arith.muli %c3_i32, %c8_i32_99 : i32
    %253 = tpu.assume_multiple %252, 8 : i32
    %c8_i32_100 = arith.constant 8 : i32
    %254 = arith.muli %251, %c8_i32_100 : i32
    %255 = tpu.assume_multiple %254, 8 : i32
    %256 = arith.index_cast %253 : i32 to index
    %c0_101 = arith.constant 0 : index
    %257 = vector.load %arg10[%256, %c0_101] : memref<64x256xf32, #tpu.memory_space<vmem>>, vector<8x128xf32>
    %258 = arith.index_cast %255 : i32 to index
    %c128_102 = arith.constant 128 : index
    %259 = vector.load %arg10[%258, %c128_102] : memref<64x256xf32, #tpu.memory_space<vmem>>, vector<8x128xf32>
    %c0_103 = arith.constant 0 : index
    %c0_104 = arith.constant 0 : index
    %260 = vector.load %arg4[%c0_103, %c0_104] : memref<32x128xf32, #tpu.memory_space<vmem>>, vector<32x128xf32>
    %cst_105 = arith.constant dense<0.000000e+00> : vector<8x128xf32>
    %261 = tpu.matmul %215, %260, %cst_105 {dimension_numbers = #tpu.dot_dimension_numbers<[1], [0], [0], [1], [0, 0, 1, 1], [], []>} : vector<8x32xf32>, vector<32x128xf32>, vector<8x128xf32> -> vector<8x128xf32>
    %262 = arith.addf %257, %261 : vector<8x128xf32>
    %c0_106 = arith.constant 0 : index
    %c0_107 = arith.constant 0 : index
    %263 = vector.load %arg5[%c0_106, %c0_107] : memref<32x128xf32, #tpu.memory_space<vmem>>, vector<32x128xf32>
    %cst_108 = arith.constant dense<0.000000e+00> : vector<8x128xf32>
    %264 = tpu.matmul %246, %263, %cst_108 {dimension_numbers = #tpu.dot_dimension_numbers<[1], [0], [0], [1], [0, 0, 1, 1], [], []>} : vector<8x32xf32>, vector<32x128xf32>, vector<8x128xf32> -> vector<8x128xf32>
    %265 = arith.addf %259, %264 : vector<8x128xf32>
    %266 = vector.extract_strided_slice %262 {offsets = [0, 0], sizes = [8, 32], strides = [1, 1]} : vector<8x128xf32> to vector<8x32xf32>
    %cst_109 = arith.constant 5.000000e-01 : f32
    %267 = vector.broadcast %cst_109 : f32 to vector<8x32xf32>
    %268 = arith.mulf %267, %266 : vector<8x32xf32>
    %269 = math.tanh %268 : vector<8x32xf32>
    %cst_110 = arith.constant 5.000000e-01 : f32
    %270 = vector.broadcast %cst_110 : f32 to vector<8x32xf32>
    %271 = arith.mulf %270, %269 : vector<8x32xf32>
    %cst_111 = arith.constant 5.000000e-01 : f32
    %272 = vector.broadcast %cst_111 : f32 to vector<8x32xf32>
    %273 = arith.addf %271, %272 : vector<8x32xf32>
    %274 = vector.extract_strided_slice %262 {offsets = [0, 32], sizes = [8, 32], strides = [1, 1]} : vector<8x128xf32> to vector<8x32xf32>
    %cst_112 = arith.constant 5.000000e-01 : f32
    %275 = vector.broadcast %cst_112 : f32 to vector<8x32xf32>
    %276 = arith.mulf %275, %274 : vector<8x32xf32>
    %277 = math.tanh %276 : vector<8x32xf32>
    %cst_113 = arith.constant 5.000000e-01 : f32
    %278 = vector.broadcast %cst_113 : f32 to vector<8x32xf32>
    %279 = arith.mulf %278, %277 : vector<8x32xf32>
    %cst_114 = arith.constant 5.000000e-01 : f32
    %280 = vector.broadcast %cst_114 : f32 to vector<8x32xf32>
    %281 = arith.addf %279, %280 : vector<8x32xf32>
    %282 = vector.extract_strided_slice %262 {offsets = [0, 64], sizes = [8, 32], strides = [1, 1]} : vector<8x128xf32> to vector<8x32xf32>
    %283 = math.tanh %282 : vector<8x32xf32>
    %284 = vector.extract_strided_slice %262 {offsets = [0, 96], sizes = [8, 32], strides = [1, 1]} : vector<8x128xf32> to vector<8x32xf32>
    %cst_115 = arith.constant 5.000000e-01 : f32
    %285 = vector.broadcast %cst_115 : f32 to vector<8x32xf32>
    %286 = arith.mulf %285, %284 : vector<8x32xf32>
    %287 = math.tanh %286 : vector<8x32xf32>
    %cst_116 = arith.constant 5.000000e-01 : f32
    %288 = vector.broadcast %cst_116 : f32 to vector<8x32xf32>
    %289 = arith.mulf %288, %287 : vector<8x32xf32>
    %cst_117 = arith.constant 5.000000e-01 : f32
    %290 = vector.broadcast %cst_117 : f32 to vector<8x32xf32>
    %291 = arith.addf %289, %290 : vector<8x32xf32>
    %292 = arith.mulf %281, %213 : vector<8x32xf32>
    %293 = arith.mulf %273, %283 : vector<8x32xf32>
    %294 = arith.addf %292, %293 : vector<8x32xf32>
    %295 = math.tanh %294 : vector<8x32xf32>
    %296 = arith.mulf %291, %295 : vector<8x32xf32>
    %297 = vector.extract_strided_slice %265 {offsets = [0, 0], sizes = [8, 32], strides = [1, 1]} : vector<8x128xf32> to vector<8x32xf32>
    %cst_118 = arith.constant 5.000000e-01 : f32
    %298 = vector.broadcast %cst_118 : f32 to vector<8x32xf32>
    %299 = arith.mulf %298, %297 : vector<8x32xf32>
    %300 = math.tanh %299 : vector<8x32xf32>
    %cst_119 = arith.constant 5.000000e-01 : f32
    %301 = vector.broadcast %cst_119 : f32 to vector<8x32xf32>
    %302 = arith.mulf %301, %300 : vector<8x32xf32>
    %cst_120 = arith.constant 5.000000e-01 : f32
    %303 = vector.broadcast %cst_120 : f32 to vector<8x32xf32>
    %304 = arith.addf %302, %303 : vector<8x32xf32>
    %305 = vector.extract_strided_slice %265 {offsets = [0, 32], sizes = [8, 32], strides = [1, 1]} : vector<8x128xf32> to vector<8x32xf32>
    %cst_121 = arith.constant 5.000000e-01 : f32
    %306 = vector.broadcast %cst_121 : f32 to vector<8x32xf32>
    %307 = arith.mulf %306, %305 : vector<8x32xf32>
    %308 = math.tanh %307 : vector<8x32xf32>
    %cst_122 = arith.constant 5.000000e-01 : f32
    %309 = vector.broadcast %cst_122 : f32 to vector<8x32xf32>
    %310 = arith.mulf %309, %308 : vector<8x32xf32>
    %cst_123 = arith.constant 5.000000e-01 : f32
    %311 = vector.broadcast %cst_123 : f32 to vector<8x32xf32>
    %312 = arith.addf %310, %311 : vector<8x32xf32>
    %313 = vector.extract_strided_slice %265 {offsets = [0, 64], sizes = [8, 32], strides = [1, 1]} : vector<8x128xf32> to vector<8x32xf32>
    %314 = math.tanh %313 : vector<8x32xf32>
    %315 = vector.extract_strided_slice %265 {offsets = [0, 96], sizes = [8, 32], strides = [1, 1]} : vector<8x128xf32> to vector<8x32xf32>
    %cst_124 = arith.constant 5.000000e-01 : f32
    %316 = vector.broadcast %cst_124 : f32 to vector<8x32xf32>
    %317 = arith.mulf %316, %315 : vector<8x32xf32>
    %318 = math.tanh %317 : vector<8x32xf32>
    %cst_125 = arith.constant 5.000000e-01 : f32
    %319 = vector.broadcast %cst_125 : f32 to vector<8x32xf32>
    %320 = arith.mulf %319, %318 : vector<8x32xf32>
    %cst_126 = arith.constant 5.000000e-01 : f32
    %321 = vector.broadcast %cst_126 : f32 to vector<8x32xf32>
    %322 = arith.addf %320, %321 : vector<8x32xf32>
    %323 = arith.mulf %312, %244 : vector<8x32xf32>
    %324 = arith.mulf %304, %314 : vector<8x32xf32>
    %325 = arith.addf %323, %324 : vector<8x32xf32>
    %326 = math.tanh %325 : vector<8x32xf32>
    %327 = arith.mulf %322, %326 : vector<8x32xf32>
    %328 = arith.index_cast %253 : i32 to index
    %c0_127 = arith.constant 0 : index
    %329 = vector.load %arg11[%328, %c0_127] : memref<64x32xf32, #tpu.memory_space<vmem>>, vector<8x32xf32>
    tpu.vector_store %arg11[%328, %c0_127], %296 {strides = array<i32>} : memref<64x32xf32, #tpu.memory_space<vmem>>, vector<8x32xf32>,
    %330 = arith.index_cast %255 : i32 to index
    %c0_128 = arith.constant 0 : index
    %331 = vector.load %arg12[%330, %c0_128] : memref<64x32xf32, #tpu.memory_space<vmem>>, vector<8x32xf32>
    tpu.vector_store %arg12[%330, %c0_128], %327 {strides = array<i32>} : memref<64x32xf32, #tpu.memory_space<vmem>>, vector<8x32xf32>,
    %c4_i32 = arith.constant 4 : i32
    %c7_i32_129 = arith.constant 7 : i32
    %332 = arith.subi %c7_i32_129, %c4_i32 : i32
    %c8_i32_130 = arith.constant 8 : i32
    %333 = arith.muli %c4_i32, %c8_i32_130 : i32
    %334 = tpu.assume_multiple %333, 8 : i32
    %c8_i32_131 = arith.constant 8 : i32
    %335 = arith.muli %332, %c8_i32_131 : i32
    %336 = tpu.assume_multiple %335, 8 : i32
    %337 = arith.index_cast %334 : i32 to index
    %c0_132 = arith.constant 0 : index
    %338 = vector.load %arg10[%337, %c0_132] : memref<64x256xf32, #tpu.memory_space<vmem>>, vector<8x128xf32>
    %339 = arith.index_cast %336 : i32 to index
    %c128_133 = arith.constant 128 : index
    %340 = vector.load %arg10[%339, %c128_133] : memref<64x256xf32, #tpu.memory_space<vmem>>, vector<8x128xf32>
    %c0_134 = arith.constant 0 : index
    %c0_135 = arith.constant 0 : index
    %341 = vector.load %arg4[%c0_134, %c0_135] : memref<32x128xf32, #tpu.memory_space<vmem>>, vector<32x128xf32>
    %cst_136 = arith.constant dense<0.000000e+00> : vector<8x128xf32>
    %342 = tpu.matmul %296, %341, %cst_136 {dimension_numbers = #tpu.dot_dimension_numbers<[1], [0], [0], [1], [0, 0, 1, 1], [], []>} : vector<8x32xf32>, vector<32x128xf32>, vector<8x128xf32> -> vector<8x128xf32>
    %343 = arith.addf %338, %342 : vector<8x128xf32>
    %c0_137 = arith.constant 0 : index
    %c0_138 = arith.constant 0 : index
    %344 = vector.load %arg5[%c0_137, %c0_138] : memref<32x128xf32, #tpu.memory_space<vmem>>, vector<32x128xf32>
    %cst_139 = arith.constant dense<0.000000e+00> : vector<8x128xf32>
    %345 = tpu.matmul %327, %344, %cst_139 {dimension_numbers = #tpu.dot_dimension_numbers<[1], [0], [0], [1], [0, 0, 1, 1], [], []>} : vector<8x32xf32>, vector<32x128xf32>, vector<8x128xf32> -> vector<8x128xf32>
    %346 = arith.addf %340, %345 : vector<8x128xf32>
    %347 = vector.extract_strided_slice %343 {offsets = [0, 0], sizes = [8, 32], strides = [1, 1]} : vector<8x128xf32> to vector<8x32xf32>
    %cst_140 = arith.constant 5.000000e-01 : f32
    %348 = vector.broadcast %cst_140 : f32 to vector<8x32xf32>
    %349 = arith.mulf %348, %347 : vector<8x32xf32>
    %350 = math.tanh %349 : vector<8x32xf32>
    %cst_141 = arith.constant 5.000000e-01 : f32
    %351 = vector.broadcast %cst_141 : f32 to vector<8x32xf32>
    %352 = arith.mulf %351, %350 : vector<8x32xf32>
    %cst_142 = arith.constant 5.000000e-01 : f32
    %353 = vector.broadcast %cst_142 : f32 to vector<8x32xf32>
    %354 = arith.addf %352, %353 : vector<8x32xf32>
    %355 = vector.extract_strided_slice %343 {offsets = [0, 32], sizes = [8, 32], strides = [1, 1]} : vector<8x128xf32> to vector<8x32xf32>
    %cst_143 = arith.constant 5.000000e-01 : f32
    %356 = vector.broadcast %cst_143 : f32 to vector<8x32xf32>
    %357 = arith.mulf %356, %355 : vector<8x32xf32>
    %358 = math.tanh %357 : vector<8x32xf32>
    %cst_144 = arith.constant 5.000000e-01 : f32
    %359 = vector.broadcast %cst_144 : f32 to vector<8x32xf32>
    %360 = arith.mulf %359, %358 : vector<8x32xf32>
    %cst_145 = arith.constant 5.000000e-01 : f32
    %361 = vector.broadcast %cst_145 : f32 to vector<8x32xf32>
    %362 = arith.addf %360, %361 : vector<8x32xf32>
    %363 = vector.extract_strided_slice %343 {offsets = [0, 64], sizes = [8, 32], strides = [1, 1]} : vector<8x128xf32> to vector<8x32xf32>
    %364 = math.tanh %363 : vector<8x32xf32>
    %365 = vector.extract_strided_slice %343 {offsets = [0, 96], sizes = [8, 32], strides = [1, 1]} : vector<8x128xf32> to vector<8x32xf32>
    %cst_146 = arith.constant 5.000000e-01 : f32
    %366 = vector.broadcast %cst_146 : f32 to vector<8x32xf32>
    %367 = arith.mulf %366, %365 : vector<8x32xf32>
    %368 = math.tanh %367 : vector<8x32xf32>
    %cst_147 = arith.constant 5.000000e-01 : f32
    %369 = vector.broadcast %cst_147 : f32 to vector<8x32xf32>
    %370 = arith.mulf %369, %368 : vector<8x32xf32>
    %cst_148 = arith.constant 5.000000e-01 : f32
    %371 = vector.broadcast %cst_148 : f32 to vector<8x32xf32>
    %372 = arith.addf %370, %371 : vector<8x32xf32>
    %373 = arith.mulf %362, %294 : vector<8x32xf32>
    %374 = arith.mulf %354, %364 : vector<8x32xf32>
    %375 = arith.addf %373, %374 : vector<8x32xf32>
    %376 = math.tanh %375 : vector<8x32xf32>
    %377 = arith.mulf %372, %376 : vector<8x32xf32>
    %378 = vector.extract_strided_slice %346 {offsets = [0, 0], sizes = [8, 32], strides = [1, 1]} : vector<8x128xf32> to vector<8x32xf32>
    %cst_149 = arith.constant 5.000000e-01 : f32
    %379 = vector.broadcast %cst_149 : f32 to vector<8x32xf32>
    %380 = arith.mulf %379, %378 : vector<8x32xf32>
    %381 = math.tanh %380 : vector<8x32xf32>
    %cst_150 = arith.constant 5.000000e-01 : f32
    %382 = vector.broadcast %cst_150 : f32 to vector<8x32xf32>
    %383 = arith.mulf %382, %381 : vector<8x32xf32>
    %cst_151 = arith.constant 5.000000e-01 : f32
    %384 = vector.broadcast %cst_151 : f32 to vector<8x32xf32>
    %385 = arith.addf %383, %384 : vector<8x32xf32>
    %386 = vector.extract_strided_slice %346 {offsets = [0, 32], sizes = [8, 32], strides = [1, 1]} : vector<8x128xf32> to vector<8x32xf32>
    %cst_152 = arith.constant 5.000000e-01 : f32
    %387 = vector.broadcast %cst_152 : f32 to vector<8x32xf32>
    %388 = arith.mulf %387, %386 : vector<8x32xf32>
    %389 = math.tanh %388 : vector<8x32xf32>
    %cst_153 = arith.constant 5.000000e-01 : f32
    %390 = vector.broadcast %cst_153 : f32 to vector<8x32xf32>
    %391 = arith.mulf %390, %389 : vector<8x32xf32>
    %cst_154 = arith.constant 5.000000e-01 : f32
    %392 = vector.broadcast %cst_154 : f32 to vector<8x32xf32>
    %393 = arith.addf %391, %392 : vector<8x32xf32>
    %394 = vector.extract_strided_slice %346 {offsets = [0, 64], sizes = [8, 32], strides = [1, 1]} : vector<8x128xf32> to vector<8x32xf32>
    %395 = math.tanh %394 : vector<8x32xf32>
    %396 = vector.extract_strided_slice %346 {offsets = [0, 96], sizes = [8, 32], strides = [1, 1]} : vector<8x128xf32> to vector<8x32xf32>
    %cst_155 = arith.constant 5.000000e-01 : f32
    %397 = vector.broadcast %cst_155 : f32 to vector<8x32xf32>
    %398 = arith.mulf %397, %396 : vector<8x32xf32>
    %399 = math.tanh %398 : vector<8x32xf32>
    %cst_156 = arith.constant 5.000000e-01 : f32
    %400 = vector.broadcast %cst_156 : f32 to vector<8x32xf32>
    %401 = arith.mulf %400, %399 : vector<8x32xf32>
    %cst_157 = arith.constant 5.000000e-01 : f32
    %402 = vector.broadcast %cst_157 : f32 to vector<8x32xf32>
    %403 = arith.addf %401, %402 : vector<8x32xf32>
    %404 = arith.mulf %393, %325 : vector<8x32xf32>
    %405 = arith.mulf %385, %395 : vector<8x32xf32>
    %406 = arith.addf %404, %405 : vector<8x32xf32>
    %407 = math.tanh %406 : vector<8x32xf32>
    %408 = arith.mulf %403, %407 : vector<8x32xf32>
    %409 = arith.index_cast %334 : i32 to index
    %c0_158 = arith.constant 0 : index
    %410 = vector.load %arg11[%409, %c0_158] : memref<64x32xf32, #tpu.memory_space<vmem>>, vector<8x32xf32>
    tpu.vector_store %arg11[%409, %c0_158], %377 {strides = array<i32>} : memref<64x32xf32, #tpu.memory_space<vmem>>, vector<8x32xf32>,
    %411 = arith.index_cast %336 : i32 to index
    %c0_159 = arith.constant 0 : index
    %412 = vector.load %arg12[%411, %c0_159] : memref<64x32xf32, #tpu.memory_space<vmem>>, vector<8x32xf32>
    tpu.vector_store %arg12[%411, %c0_159], %408 {strides = array<i32>} : memref<64x32xf32, #tpu.memory_space<vmem>>, vector<8x32xf32>,
    %c5_i32 = arith.constant 5 : i32
    %c7_i32_160 = arith.constant 7 : i32
    %413 = arith.subi %c7_i32_160, %c5_i32 : i32
    %c8_i32_161 = arith.constant 8 : i32
    %414 = arith.muli %c5_i32, %c8_i32_161 : i32
    %415 = tpu.assume_multiple %414, 8 : i32
    %c8_i32_162 = arith.constant 8 : i32
    %416 = arith.muli %413, %c8_i32_162 : i32
    %417 = tpu.assume_multiple %416, 8 : i32
    %418 = arith.index_cast %415 : i32 to index
    %c0_163 = arith.constant 0 : index
    %419 = vector.load %arg10[%418, %c0_163] : memref<64x256xf32, #tpu.memory_space<vmem>>, vector<8x128xf32>
    %420 = arith.index_cast %417 : i32 to index
    %c128_164 = arith.constant 128 : index
    %421 = vector.load %arg10[%420, %c128_164] : memref<64x256xf32, #tpu.memory_space<vmem>>, vector<8x128xf32>
    %c0_165 = arith.constant 0 : index
    %c0_166 = arith.constant 0 : index
    %422 = vector.load %arg4[%c0_165, %c0_166] : memref<32x128xf32, #tpu.memory_space<vmem>>, vector<32x128xf32>
    %cst_167 = arith.constant dense<0.000000e+00> : vector<8x128xf32>
    %423 = tpu.matmul %377, %422, %cst_167 {dimension_numbers = #tpu.dot_dimension_numbers<[1], [0], [0], [1], [0, 0, 1, 1], [], []>} : vector<8x32xf32>, vector<32x128xf32>, vector<8x128xf32> -> vector<8x128xf32>
    %424 = arith.addf %419, %423 : vector<8x128xf32>
    %c0_168 = arith.constant 0 : index
    %c0_169 = arith.constant 0 : index
    %425 = vector.load %arg5[%c0_168, %c0_169] : memref<32x128xf32, #tpu.memory_space<vmem>>, vector<32x128xf32>
    %cst_170 = arith.constant dense<0.000000e+00> : vector<8x128xf32>
    %426 = tpu.matmul %408, %425, %cst_170 {dimension_numbers = #tpu.dot_dimension_numbers<[1], [0], [0], [1], [0, 0, 1, 1], [], []>} : vector<8x32xf32>, vector<32x128xf32>, vector<8x128xf32> -> vector<8x128xf32>
    %427 = arith.addf %421, %426 : vector<8x128xf32>
    %428 = vector.extract_strided_slice %424 {offsets = [0, 0], sizes = [8, 32], strides = [1, 1]} : vector<8x128xf32> to vector<8x32xf32>
    %cst_171 = arith.constant 5.000000e-01 : f32
    %429 = vector.broadcast %cst_171 : f32 to vector<8x32xf32>
    %430 = arith.mulf %429, %428 : vector<8x32xf32>
    %431 = math.tanh %430 : vector<8x32xf32>
    %cst_172 = arith.constant 5.000000e-01 : f32
    %432 = vector.broadcast %cst_172 : f32 to vector<8x32xf32>
    %433 = arith.mulf %432, %431 : vector<8x32xf32>
    %cst_173 = arith.constant 5.000000e-01 : f32
    %434 = vector.broadcast %cst_173 : f32 to vector<8x32xf32>
    %435 = arith.addf %433, %434 : vector<8x32xf32>
    %436 = vector.extract_strided_slice %424 {offsets = [0, 32], sizes = [8, 32], strides = [1, 1]} : vector<8x128xf32> to vector<8x32xf32>
    %cst_174 = arith.constant 5.000000e-01 : f32
    %437 = vector.broadcast %cst_174 : f32 to vector<8x32xf32>
    %438 = arith.mulf %437, %436 : vector<8x32xf32>
    %439 = math.tanh %438 : vector<8x32xf32>
    %cst_175 = arith.constant 5.000000e-01 : f32
    %440 = vector.broadcast %cst_175 : f32 to vector<8x32xf32>
    %441 = arith.mulf %440, %439 : vector<8x32xf32>
    %cst_176 = arith.constant 5.000000e-01 : f32
    %442 = vector.broadcast %cst_176 : f32 to vector<8x32xf32>
    %443 = arith.addf %441, %442 : vector<8x32xf32>
    %444 = vector.extract_strided_slice %424 {offsets = [0, 64], sizes = [8, 32], strides = [1, 1]} : vector<8x128xf32> to vector<8x32xf32>
    %445 = math.tanh %444 : vector<8x32xf32>
    %446 = vector.extract_strided_slice %424 {offsets = [0, 96], sizes = [8, 32], strides = [1, 1]} : vector<8x128xf32> to vector<8x32xf32>
    %cst_177 = arith.constant 5.000000e-01 : f32
    %447 = vector.broadcast %cst_177 : f32 to vector<8x32xf32>
    %448 = arith.mulf %447, %446 : vector<8x32xf32>
    %449 = math.tanh %448 : vector<8x32xf32>
    %cst_178 = arith.constant 5.000000e-01 : f32
    %450 = vector.broadcast %cst_178 : f32 to vector<8x32xf32>
    %451 = arith.mulf %450, %449 : vector<8x32xf32>
    %cst_179 = arith.constant 5.000000e-01 : f32
    %452 = vector.broadcast %cst_179 : f32 to vector<8x32xf32>
    %453 = arith.addf %451, %452 : vector<8x32xf32>
    %454 = arith.mulf %443, %375 : vector<8x32xf32>
    %455 = arith.mulf %435, %445 : vector<8x32xf32>
    %456 = arith.addf %454, %455 : vector<8x32xf32>
    %457 = math.tanh %456 : vector<8x32xf32>
    %458 = arith.mulf %453, %457 : vector<8x32xf32>
    %459 = vector.extract_strided_slice %427 {offsets = [0, 0], sizes = [8, 32], strides = [1, 1]} : vector<8x128xf32> to vector<8x32xf32>
    %cst_180 = arith.constant 5.000000e-01 : f32
    %460 = vector.broadcast %cst_180 : f32 to vector<8x32xf32>
    %461 = arith.mulf %460, %459 : vector<8x32xf32>
    %462 = math.tanh %461 : vector<8x32xf32>
    %cst_181 = arith.constant 5.000000e-01 : f32
    %463 = vector.broadcast %cst_181 : f32 to vector<8x32xf32>
    %464 = arith.mulf %463, %462 : vector<8x32xf32>
    %cst_182 = arith.constant 5.000000e-01 : f32
    %465 = vector.broadcast %cst_182 : f32 to vector<8x32xf32>
    %466 = arith.addf %464, %465 : vector<8x32xf32>
    %467 = vector.extract_strided_slice %427 {offsets = [0, 32], sizes = [8, 32], strides = [1, 1]} : vector<8x128xf32> to vector<8x32xf32>
    %cst_183 = arith.constant 5.000000e-01 : f32
    %468 = vector.broadcast %cst_183 : f32 to vector<8x32xf32>
    %469 = arith.mulf %468, %467 : vector<8x32xf32>
    %470 = math.tanh %469 : vector<8x32xf32>
    %cst_184 = arith.constant 5.000000e-01 : f32
    %471 = vector.broadcast %cst_184 : f32 to vector<8x32xf32>
    %472 = arith.mulf %471, %470 : vector<8x32xf32>
    %cst_185 = arith.constant 5.000000e-01 : f32
    %473 = vector.broadcast %cst_185 : f32 to vector<8x32xf32>
    %474 = arith.addf %472, %473 : vector<8x32xf32>
    %475 = vector.extract_strided_slice %427 {offsets = [0, 64], sizes = [8, 32], strides = [1, 1]} : vector<8x128xf32> to vector<8x32xf32>
    %476 = math.tanh %475 : vector<8x32xf32>
    %477 = vector.extract_strided_slice %427 {offsets = [0, 96], sizes = [8, 32], strides = [1, 1]} : vector<8x128xf32> to vector<8x32xf32>
    %cst_186 = arith.constant 5.000000e-01 : f32
    %478 = vector.broadcast %cst_186 : f32 to vector<8x32xf32>
    %479 = arith.mulf %478, %477 : vector<8x32xf32>
    %480 = math.tanh %479 : vector<8x32xf32>
    %cst_187 = arith.constant 5.000000e-01 : f32
    %481 = vector.broadcast %cst_187 : f32 to vector<8x32xf32>
    %482 = arith.mulf %481, %480 : vector<8x32xf32>
    %cst_188 = arith.constant 5.000000e-01 : f32
    %483 = vector.broadcast %cst_188 : f32 to vector<8x32xf32>
    %484 = arith.addf %482, %483 : vector<8x32xf32>
    %485 = arith.mulf %474, %406 : vector<8x32xf32>
    %486 = arith.mulf %466, %476 : vector<8x32xf32>
    %487 = arith.addf %485, %486 : vector<8x32xf32>
    %488 = math.tanh %487 : vector<8x32xf32>
    %489 = arith.mulf %484, %488 : vector<8x32xf32>
    %490 = arith.index_cast %415 : i32 to index
    %c0_189 = arith.constant 0 : index
    %491 = vector.load %arg11[%490, %c0_189] : memref<64x32xf32, #tpu.memory_space<vmem>>, vector<8x32xf32>
    tpu.vector_store %arg11[%490, %c0_189], %458 {strides = array<i32>} : memref<64x32xf32, #tpu.memory_space<vmem>>, vector<8x32xf32>,
    %492 = arith.index_cast %417 : i32 to index
    %c0_190 = arith.constant 0 : index
    %493 = vector.load %arg12[%492, %c0_190] : memref<64x32xf32, #tpu.memory_space<vmem>>, vector<8x32xf32>
    tpu.vector_store %arg12[%492, %c0_190], %489 {strides = array<i32>} : memref<64x32xf32, #tpu.memory_space<vmem>>, vector<8x32xf32>,
    %c6_i32 = arith.constant 6 : i32
    %c7_i32_191 = arith.constant 7 : i32
    %494 = arith.subi %c7_i32_191, %c6_i32 : i32
    %c8_i32_192 = arith.constant 8 : i32
    %495 = arith.muli %c6_i32, %c8_i32_192 : i32
    %496 = tpu.assume_multiple %495, 8 : i32
    %c8_i32_193 = arith.constant 8 : i32
    %497 = arith.muli %494, %c8_i32_193 : i32
    %498 = tpu.assume_multiple %497, 8 : i32
    %499 = arith.index_cast %496 : i32 to index
    %c0_194 = arith.constant 0 : index
    %500 = vector.load %arg10[%499, %c0_194] : memref<64x256xf32, #tpu.memory_space<vmem>>, vector<8x128xf32>
    %501 = arith.index_cast %498 : i32 to index
    %c128_195 = arith.constant 128 : index
    %502 = vector.load %arg10[%501, %c128_195] : memref<64x256xf32, #tpu.memory_space<vmem>>, vector<8x128xf32>
    %c0_196 = arith.constant 0 : index
    %c0_197 = arith.constant 0 : index
    %503 = vector.load %arg4[%c0_196, %c0_197] : memref<32x128xf32, #tpu.memory_space<vmem>>, vector<32x128xf32>
    %cst_198 = arith.constant dense<0.000000e+00> : vector<8x128xf32>
    %504 = tpu.matmul %458, %503, %cst_198 {dimension_numbers = #tpu.dot_dimension_numbers<[1], [0], [0], [1], [0, 0, 1, 1], [], []>} : vector<8x32xf32>, vector<32x128xf32>, vector<8x128xf32> -> vector<8x128xf32>
    %505 = arith.addf %500, %504 : vector<8x128xf32>
    %c0_199 = arith.constant 0 : index
    %c0_200 = arith.constant 0 : index
    %506 = vector.load %arg5[%c0_199, %c0_200] : memref<32x128xf32, #tpu.memory_space<vmem>>, vector<32x128xf32>
    %cst_201 = arith.constant dense<0.000000e+00> : vector<8x128xf32>
    %507 = tpu.matmul %489, %506, %cst_201 {dimension_numbers = #tpu.dot_dimension_numbers<[1], [0], [0], [1], [0, 0, 1, 1], [], []>} : vector<8x32xf32>, vector<32x128xf32>, vector<8x128xf32> -> vector<8x128xf32>
    %508 = arith.addf %502, %507 : vector<8x128xf32>
    %509 = vector.extract_strided_slice %505 {offsets = [0, 0], sizes = [8, 32], strides = [1, 1]} : vector<8x128xf32> to vector<8x32xf32>
    %cst_202 = arith.constant 5.000000e-01 : f32
    %510 = vector.broadcast %cst_202 : f32 to vector<8x32xf32>
    %511 = arith.mulf %510, %509 : vector<8x32xf32>
    %512 = math.tanh %511 : vector<8x32xf32>
    %cst_203 = arith.constant 5.000000e-01 : f32
    %513 = vector.broadcast %cst_203 : f32 to vector<8x32xf32>
    %514 = arith.mulf %513, %512 : vector<8x32xf32>
    %cst_204 = arith.constant 5.000000e-01 : f32
    %515 = vector.broadcast %cst_204 : f32 to vector<8x32xf32>
    %516 = arith.addf %514, %515 : vector<8x32xf32>
    %517 = vector.extract_strided_slice %505 {offsets = [0, 32], sizes = [8, 32], strides = [1, 1]} : vector<8x128xf32> to vector<8x32xf32>
    %cst_205 = arith.constant 5.000000e-01 : f32
    %518 = vector.broadcast %cst_205 : f32 to vector<8x32xf32>
    %519 = arith.mulf %518, %517 : vector<8x32xf32>
    %520 = math.tanh %519 : vector<8x32xf32>
    %cst_206 = arith.constant 5.000000e-01 : f32
    %521 = vector.broadcast %cst_206 : f32 to vector<8x32xf32>
    %522 = arith.mulf %521, %520 : vector<8x32xf32>
    %cst_207 = arith.constant 5.000000e-01 : f32
    %523 = vector.broadcast %cst_207 : f32 to vector<8x32xf32>
    %524 = arith.addf %522, %523 : vector<8x32xf32>
    %525 = vector.extract_strided_slice %505 {offsets = [0, 64], sizes = [8, 32], strides = [1, 1]} : vector<8x128xf32> to vector<8x32xf32>
    %526 = math.tanh %525 : vector<8x32xf32>
    %527 = vector.extract_strided_slice %505 {offsets = [0, 96], sizes = [8, 32], strides = [1, 1]} : vector<8x128xf32> to vector<8x32xf32>
    %cst_208 = arith.constant 5.000000e-01 : f32
    %528 = vector.broadcast %cst_208 : f32 to vector<8x32xf32>
    %529 = arith.mulf %528, %527 : vector<8x32xf32>
    %530 = math.tanh %529 : vector<8x32xf32>
    %cst_209 = arith.constant 5.000000e-01 : f32
    %531 = vector.broadcast %cst_209 : f32 to vector<8x32xf32>
    %532 = arith.mulf %531, %530 : vector<8x32xf32>
    %cst_210 = arith.constant 5.000000e-01 : f32
    %533 = vector.broadcast %cst_210 : f32 to vector<8x32xf32>
    %534 = arith.addf %532, %533 : vector<8x32xf32>
    %535 = arith.mulf %524, %456 : vector<8x32xf32>
    %536 = arith.mulf %516, %526 : vector<8x32xf32>
    %537 = arith.addf %535, %536 : vector<8x32xf32>
    %538 = math.tanh %537 : vector<8x32xf32>
    %539 = arith.mulf %534, %538 : vector<8x32xf32>
    %540 = vector.extract_strided_slice %508 {offsets = [0, 0], sizes = [8, 32], strides = [1, 1]} : vector<8x128xf32> to vector<8x32xf32>
    %cst_211 = arith.constant 5.000000e-01 : f32
    %541 = vector.broadcast %cst_211 : f32 to vector<8x32xf32>
    %542 = arith.mulf %541, %540 : vector<8x32xf32>
    %543 = math.tanh %542 : vector<8x32xf32>
    %cst_212 = arith.constant 5.000000e-01 : f32
    %544 = vector.broadcast %cst_212 : f32 to vector<8x32xf32>
    %545 = arith.mulf %544, %543 : vector<8x32xf32>
    %cst_213 = arith.constant 5.000000e-01 : f32
    %546 = vector.broadcast %cst_213 : f32 to vector<8x32xf32>
    %547 = arith.addf %545, %546 : vector<8x32xf32>
    %548 = vector.extract_strided_slice %508 {offsets = [0, 32], sizes = [8, 32], strides = [1, 1]} : vector<8x128xf32> to vector<8x32xf32>
    %cst_214 = arith.constant 5.000000e-01 : f32
    %549 = vector.broadcast %cst_214 : f32 to vector<8x32xf32>
    %550 = arith.mulf %549, %548 : vector<8x32xf32>
    %551 = math.tanh %550 : vector<8x32xf32>
    %cst_215 = arith.constant 5.000000e-01 : f32
    %552 = vector.broadcast %cst_215 : f32 to vector<8x32xf32>
    %553 = arith.mulf %552, %551 : vector<8x32xf32>
    %cst_216 = arith.constant 5.000000e-01 : f32
    %554 = vector.broadcast %cst_216 : f32 to vector<8x32xf32>
    %555 = arith.addf %553, %554 : vector<8x32xf32>
    %556 = vector.extract_strided_slice %508 {offsets = [0, 64], sizes = [8, 32], strides = [1, 1]} : vector<8x128xf32> to vector<8x32xf32>
    %557 = math.tanh %556 : vector<8x32xf32>
    %558 = vector.extract_strided_slice %508 {offsets = [0, 96], sizes = [8, 32], strides = [1, 1]} : vector<8x128xf32> to vector<8x32xf32>
    %cst_217 = arith.constant 5.000000e-01 : f32
    %559 = vector.broadcast %cst_217 : f32 to vector<8x32xf32>
    %560 = arith.mulf %559, %558 : vector<8x32xf32>
    %561 = math.tanh %560 : vector<8x32xf32>
    %cst_218 = arith.constant 5.000000e-01 : f32
    %562 = vector.broadcast %cst_218 : f32 to vector<8x32xf32>
    %563 = arith.mulf %562, %561 : vector<8x32xf32>
    %cst_219 = arith.constant 5.000000e-01 : f32
    %564 = vector.broadcast %cst_219 : f32 to vector<8x32xf32>
    %565 = arith.addf %563, %564 : vector<8x32xf32>
    %566 = arith.mulf %555, %487 : vector<8x32xf32>
    %567 = arith.mulf %547, %557 : vector<8x32xf32>
    %568 = arith.addf %566, %567 : vector<8x32xf32>
    %569 = math.tanh %568 : vector<8x32xf32>
    %570 = arith.mulf %565, %569 : vector<8x32xf32>
    %571 = arith.index_cast %496 : i32 to index
    %c0_220 = arith.constant 0 : index
    %572 = vector.load %arg11[%571, %c0_220] : memref<64x32xf32, #tpu.memory_space<vmem>>, vector<8x32xf32>
    tpu.vector_store %arg11[%571, %c0_220], %539 {strides = array<i32>} : memref<64x32xf32, #tpu.memory_space<vmem>>, vector<8x32xf32>,
    %573 = arith.index_cast %498 : i32 to index
    %c0_221 = arith.constant 0 : index
    %574 = vector.load %arg12[%573, %c0_221] : memref<64x32xf32, #tpu.memory_space<vmem>>, vector<8x32xf32>
    tpu.vector_store %arg12[%573, %c0_221], %570 {strides = array<i32>} : memref<64x32xf32, #tpu.memory_space<vmem>>, vector<8x32xf32>,
    %c7_i32_222 = arith.constant 7 : i32
    %c7_i32_223 = arith.constant 7 : i32
    %575 = arith.subi %c7_i32_223, %c7_i32_222 : i32
    %c8_i32_224 = arith.constant 8 : i32
    %576 = arith.muli %c7_i32_222, %c8_i32_224 : i32
    %577 = tpu.assume_multiple %576, 8 : i32
    %c8_i32_225 = arith.constant 8 : i32
    %578 = arith.muli %575, %c8_i32_225 : i32
    %579 = tpu.assume_multiple %578, 8 : i32
    %580 = arith.index_cast %577 : i32 to index
    %c0_226 = arith.constant 0 : index
    %581 = vector.load %arg10[%580, %c0_226] : memref<64x256xf32, #tpu.memory_space<vmem>>, vector<8x128xf32>
    %582 = arith.index_cast %579 : i32 to index
    %c128_227 = arith.constant 128 : index
    %583 = vector.load %arg10[%582, %c128_227] : memref<64x256xf32, #tpu.memory_space<vmem>>, vector<8x128xf32>
    %c0_228 = arith.constant 0 : index
    %c0_229 = arith.constant 0 : index
    %584 = vector.load %arg4[%c0_228, %c0_229] : memref<32x128xf32, #tpu.memory_space<vmem>>, vector<32x128xf32>
    %cst_230 = arith.constant dense<0.000000e+00> : vector<8x128xf32>
    %585 = tpu.matmul %539, %584, %cst_230 {dimension_numbers = #tpu.dot_dimension_numbers<[1], [0], [0], [1], [0, 0, 1, 1], [], []>} : vector<8x32xf32>, vector<32x128xf32>, vector<8x128xf32> -> vector<8x128xf32>
    %586 = arith.addf %581, %585 : vector<8x128xf32>
    %c0_231 = arith.constant 0 : index
    %c0_232 = arith.constant 0 : index
    %587 = vector.load %arg5[%c0_231, %c0_232] : memref<32x128xf32, #tpu.memory_space<vmem>>, vector<32x128xf32>
    %cst_233 = arith.constant dense<0.000000e+00> : vector<8x128xf32>
    %588 = tpu.matmul %570, %587, %cst_233 {dimension_numbers = #tpu.dot_dimension_numbers<[1], [0], [0], [1], [0, 0, 1, 1], [], []>} : vector<8x32xf32>, vector<32x128xf32>, vector<8x128xf32> -> vector<8x128xf32>
    %589 = arith.addf %583, %588 : vector<8x128xf32>
    %590 = vector.extract_strided_slice %586 {offsets = [0, 0], sizes = [8, 32], strides = [1, 1]} : vector<8x128xf32> to vector<8x32xf32>
    %cst_234 = arith.constant 5.000000e-01 : f32
    %591 = vector.broadcast %cst_234 : f32 to vector<8x32xf32>
    %592 = arith.mulf %591, %590 : vector<8x32xf32>
    %593 = math.tanh %592 : vector<8x32xf32>
    %cst_235 = arith.constant 5.000000e-01 : f32
    %594 = vector.broadcast %cst_235 : f32 to vector<8x32xf32>
    %595 = arith.mulf %594, %593 : vector<8x32xf32>
    %cst_236 = arith.constant 5.000000e-01 : f32
    %596 = vector.broadcast %cst_236 : f32 to vector<8x32xf32>
    %597 = arith.addf %595, %596 : vector<8x32xf32>
    %598 = vector.extract_strided_slice %586 {offsets = [0, 32], sizes = [8, 32], strides = [1, 1]} : vector<8x128xf32> to vector<8x32xf32>
    %cst_237 = arith.constant 5.000000e-01 : f32
    %599 = vector.broadcast %cst_237 : f32 to vector<8x32xf32>
    %600 = arith.mulf %599, %598 : vector<8x32xf32>
    %601 = math.tanh %600 : vector<8x32xf32>
    %cst_238 = arith.constant 5.000000e-01 : f32
    %602 = vector.broadcast %cst_238 : f32 to vector<8x32xf32>
    %603 = arith.mulf %602, %601 : vector<8x32xf32>
    %cst_239 = arith.constant 5.000000e-01 : f32
    %604 = vector.broadcast %cst_239 : f32 to vector<8x32xf32>
    %605 = arith.addf %603, %604 : vector<8x32xf32>
    %606 = vector.extract_strided_slice %586 {offsets = [0, 64], sizes = [8, 32], strides = [1, 1]} : vector<8x128xf32> to vector<8x32xf32>
    %607 = math.tanh %606 : vector<8x32xf32>
    %608 = vector.extract_strided_slice %586 {offsets = [0, 96], sizes = [8, 32], strides = [1, 1]} : vector<8x128xf32> to vector<8x32xf32>
    %cst_240 = arith.constant 5.000000e-01 : f32
    %609 = vector.broadcast %cst_240 : f32 to vector<8x32xf32>
    %610 = arith.mulf %609, %608 : vector<8x32xf32>
    %611 = math.tanh %610 : vector<8x32xf32>
    %cst_241 = arith.constant 5.000000e-01 : f32
    %612 = vector.broadcast %cst_241 : f32 to vector<8x32xf32>
    %613 = arith.mulf %612, %611 : vector<8x32xf32>
    %cst_242 = arith.constant 5.000000e-01 : f32
    %614 = vector.broadcast %cst_242 : f32 to vector<8x32xf32>
    %615 = arith.addf %613, %614 : vector<8x32xf32>
    %616 = arith.mulf %605, %537 : vector<8x32xf32>
    %617 = arith.mulf %597, %607 : vector<8x32xf32>
    %618 = arith.addf %616, %617 : vector<8x32xf32>
    %619 = math.tanh %618 : vector<8x32xf32>
    %620 = arith.mulf %615, %619 : vector<8x32xf32>
    %621 = vector.extract_strided_slice %589 {offsets = [0, 0], sizes = [8, 32], strides = [1, 1]} : vector<8x128xf32> to vector<8x32xf32>
    %cst_243 = arith.constant 5.000000e-01 : f32
    %622 = vector.broadcast %cst_243 : f32 to vector<8x32xf32>
    %623 = arith.mulf %622, %621 : vector<8x32xf32>
    %624 = math.tanh %623 : vector<8x32xf32>
    %cst_244 = arith.constant 5.000000e-01 : f32
    %625 = vector.broadcast %cst_244 : f32 to vector<8x32xf32>
    %626 = arith.mulf %625, %624 : vector<8x32xf32>
    %cst_245 = arith.constant 5.000000e-01 : f32
    %627 = vector.broadcast %cst_245 : f32 to vector<8x32xf32>
    %628 = arith.addf %626, %627 : vector<8x32xf32>
    %629 = vector.extract_strided_slice %589 {offsets = [0, 32], sizes = [8, 32], strides = [1, 1]} : vector<8x128xf32> to vector<8x32xf32>
    %cst_246 = arith.constant 5.000000e-01 : f32
    %630 = vector.broadcast %cst_246 : f32 to vector<8x32xf32>
    %631 = arith.mulf %630, %629 : vector<8x32xf32>
    %632 = math.tanh %631 : vector<8x32xf32>
    %cst_247 = arith.constant 5.000000e-01 : f32
    %633 = vector.broadcast %cst_247 : f32 to vector<8x32xf32>
    %634 = arith.mulf %633, %632 : vector<8x32xf32>
    %cst_248 = arith.constant 5.000000e-01 : f32
    %635 = vector.broadcast %cst_248 : f32 to vector<8x32xf32>
    %636 = arith.addf %634, %635 : vector<8x32xf32>
    %637 = vector.extract_strided_slice %589 {offsets = [0, 64], sizes = [8, 32], strides = [1, 1]} : vector<8x128xf32> to vector<8x32xf32>
    %638 = math.tanh %637 : vector<8x32xf32>
    %639 = vector.extract_strided_slice %589 {offsets = [0, 96], sizes = [8, 32], strides = [1, 1]} : vector<8x128xf32> to vector<8x32xf32>
    %cst_249 = arith.constant 5.000000e-01 : f32
    %640 = vector.broadcast %cst_249 : f32 to vector<8x32xf32>
    %641 = arith.mulf %640, %639 : vector<8x32xf32>
    %642 = math.tanh %641 : vector<8x32xf32>
    %cst_250 = arith.constant 5.000000e-01 : f32
    %643 = vector.broadcast %cst_250 : f32 to vector<8x32xf32>
    %644 = arith.mulf %643, %642 : vector<8x32xf32>
    %cst_251 = arith.constant 5.000000e-01 : f32
    %645 = vector.broadcast %cst_251 : f32 to vector<8x32xf32>
    %646 = arith.addf %644, %645 : vector<8x32xf32>
    %647 = arith.mulf %636, %568 : vector<8x32xf32>
    %648 = arith.mulf %628, %638 : vector<8x32xf32>
    %649 = arith.addf %647, %648 : vector<8x32xf32>
    %650 = math.tanh %649 : vector<8x32xf32>
    %651 = arith.mulf %646, %650 : vector<8x32xf32>
    %652 = arith.index_cast %577 : i32 to index
    %c0_252 = arith.constant 0 : index
    %653 = vector.load %arg11[%652, %c0_252] : memref<64x32xf32, #tpu.memory_space<vmem>>, vector<8x32xf32>
    tpu.vector_store %arg11[%652, %c0_252], %620 {strides = array<i32>} : memref<64x32xf32, #tpu.memory_space<vmem>>, vector<8x32xf32>,
    %654 = arith.index_cast %579 : i32 to index
    %c0_253 = arith.constant 0 : index
    %655 = vector.load %arg12[%654, %c0_253] : memref<64x32xf32, #tpu.memory_space<vmem>>, vector<8x32xf32>
    tpu.vector_store %arg12[%654, %c0_253], %651 {strides = array<i32>} : memref<64x32xf32, #tpu.memory_space<vmem>>, vector<8x32xf32>,
    %c8_i32_254 = arith.constant 8 : i32
    %c0_255 = arith.constant 0 : index
    %c0_256 = arith.constant 0 : index
    %656 = vector.load %arg11[%c0_255, %c0_256] : memref<64x32xf32, #tpu.memory_space<vmem>>, vector<64x32xf32>
    %c0_257 = arith.constant 0 : index
    %c0_258 = arith.constant 0 : index
    %657 = vector.load %arg6[%c0_257, %c0_258] : memref<32x128xf32, #tpu.memory_space<vmem>>, vector<32x128xf32>
    %cst_259 = arith.constant dense<0.000000e+00> : vector<64x128xf32>
    %658 = tpu.matmul %656, %657, %cst_259 {dimension_numbers = #tpu.dot_dimension_numbers<[1], [0], [0], [1], [0, 0, 1, 1], [], []>} : vector<64x32xf32>, vector<32x128xf32>, vector<64x128xf32> -> vector<64x128xf32>
    %c0_260 = arith.constant 0 : index
    %c0_261 = arith.constant 0 : index
    %659 = vector.load %arg12[%c0_260, %c0_261] : memref<64x32xf32, #tpu.memory_space<vmem>>, vector<64x32xf32>
    %c0_262 = arith.constant 0 : index
    %c0_263 = arith.constant 0 : index
    %660 = vector.load %arg7[%c0_262, %c0_263] : memref<32x128xf32, #tpu.memory_space<vmem>>, vector<32x128xf32>
    %cst_264 = arith.constant dense<0.000000e+00> : vector<64x128xf32>
    %661 = tpu.matmul %659, %660, %cst_264 {dimension_numbers = #tpu.dot_dimension_numbers<[1], [0], [0], [1], [0, 0, 1, 1], [], []>} : vector<64x32xf32>, vector<32x128xf32>, vector<64x128xf32> -> vector<64x128xf32>
    %662 = arith.addf %658, %661 : vector<64x128xf32>
    %c0_265 = arith.constant 0 : index
    %c0_266 = arith.constant 0 : index
    %663 = vector.load %arg8[%c0_265, %c0_266] : memref<1x128xf32, #tpu.memory_space<vmem>>, vector<1x128xf32>
    %664 = vector.broadcast %663 : vector<1x128xf32> to vector<64x128xf32>
    %665 = arith.addf %662, %664 : vector<64x128xf32>
    %c0_267 = arith.constant 0 : index
    %c0_268 = arith.constant 0 : index
    %666 = vector.load %arg9[%c0_267, %c0_268] : memref<64x128xf32, #tpu.memory_space<vmem>>, vector<64x128xf32>
    tpu.vector_store %arg9[%c0_267, %c0_268], %665 {strides = array<i32>} : memref<64x128xf32, #tpu.memory_space<vmem>>, vector<64x128xf32>,
    return
  }
  func.func @transform_0(%arg0: i32) -> (i32, i32) {
    %c0_i32 = arith.constant 0 : i32
    %c0_i32_0 = arith.constant 0 : i32
    %c0_i32_1 = arith.constant 0 : i32
    return %c0_i32, %c0_i32_0 : i32, i32
  }
  func.func @transform_1(%arg0: i32) -> (i32, i32) {
    %c0_i32 = arith.constant 0 : i32
    %c0_i32_0 = arith.constant 0 : i32
    %c0_i32_1 = arith.constant 0 : i32
    return %c0_i32, %c0_i32_0 : i32, i32
  }
  func.func @transform_2(%arg0: i32) -> (i32, i32) {
    %c0_i32 = arith.constant 0 : i32
    %c0_i32_0 = arith.constant 0 : i32
    %c0_i32_1 = arith.constant 0 : i32
    return %c0_i32, %c0_i32_0 : i32, i32
  }
  func.func @transform_3(%arg0: i32) -> (i32, i32) {
    %c0_i32 = arith.constant 0 : i32
    %c0_i32_0 = arith.constant 0 : i32
    %c0_i32_1 = arith.constant 0 : i32
    return %c0_i32, %c0_i32_0 : i32, i32
  }
  func.func @transform_4(%arg0: i32) -> (i32, i32) {
    %c0_i32 = arith.constant 0 : i32
    %c0_i32_0 = arith.constant 0 : i32
    %c0_i32_1 = arith.constant 0 : i32
    return %c0_i32, %c0_i32_0 : i32, i32
  }
  func.func @transform_5(%arg0: i32) -> (i32, i32) {
    %c0_i32 = arith.constant 0 : i32
    %c0_i32_0 = arith.constant 0 : i32
    %c0_i32_1 = arith.constant 0 : i32
    return %c0_i32, %c0_i32_0 : i32, i32
  }
  func.func @transform_6(%arg0: i32) -> (i32, i32) {
    %c0_i32 = arith.constant 0 : i32
    %c0_i32_0 = arith.constant 0 : i32
    %c0_i32_1 = arith.constant 0 : i32
    return %c0_i32, %c0_i32_0 : i32, i32
  }
  func.func @transform_7(%arg0: i32) -> (i32, i32) {
    %c0_i32 = arith.constant 0 : i32
    %c0_i32_0 = arith.constant 0 : i32
    %c0_i32_1 = arith.constant 0 : i32
    return %c0_i32, %c0_i32_0 : i32, i32
  }
  func.func @transform_8(%arg0: i32) -> (i32, i32) {
    %c0_i32 = arith.constant 0 : i32
    %c0_i32_0 = arith.constant 0 : i32
    %c0_i32_1 = arith.constant 0 : i32
    return %c0_i32, %c0_i32_0 : i32, i32
  }
}

</mosaic_0001>

<bundles_post_ra>
// kernel: crnn_head_forward.3
= control target key start
LH: loop header
LB: loop body
LE: loop exit
PB: predicated region body
PF: predicated region fallthrough
CT: control target
= control target key end

     0   :  { %vm29_vm0 = vcmask 130048   ;;  %vm69_vm1 = vcmask 1043456   ;;  %vm65_vm2 = vcmask 31744   ;;  %s188_s1 = inlined_call_operand.vmem [shape: f32[16,4], index: 1, kind: input, shape index: {}]   ;;  %s189_s0 = inlined_call_operand.vmem [shape: f32[8,16], index: 0, kind: input, shape index: {}]   ;;  %s190_s2 = inlined_call_operand.vmem [shape: f32[1,4], index: 2, kind: input, shape index: {}]   ;;  %s191_s3 = inlined_call_operand.vmem [shape: f32[1,4], index: 3, kind: input, shape index: {}]   ;;  %s192_s5 = inlined_call_operand.vmem [shape: f32[1,16], index: 5, kind: input, shape index: {}]   ;;  %s193_s6 = inlined_call_operand.vmem [shape: f32[1,16], index: 6, kind: input, shape index: {}]   ;;  %s194_s4 = inlined_call_operand.vmem [shape: f32[4,16], index: 4, kind: input, shape index: {}]   ;;  %s195_s7 = inlined_call_operand.vmem [shape: f32[8,16], index: 7, kind: output, shape index: {}]  }
   0x1   :  { %v28_v0 = vld [vmem:[%s188_s1 + $0x8] sm:$0xff]  ;;  %v27_v1 = vld [vmem:[%s188_s1] sm:$0xff] }
   0x2   :  { %47 = vmatpush.msra.mxu0 %v28_v0  ;;  %v26_v2 = vld [vmem:[%s189_s0] sm:$0xff] }
   0x3   :  { %v64_v3 = vld [vmem:[%s194_s4] sm:$0xf] }
   0x4   :  { %48 = vmatpush.msra.mxu0 %v27_v1  ;;  %113 = vmatpush.msk.msra.mxu1 %vm69_vm1, %v64_v3  ;;  %v115_v4 = vld [vmem:[%s190_s2] ss:$0 sm:$0xff] }
   0x5   :  { %112 = vmatmul.msk.f32.vlgmr.msra.gmra.mxu0 %vm29_vm0, %v26_v2  ;;  %v116_v5 = vld [vmem:[%s191_s3] ss:$0 sm:$0xff] }
   0x6   :  { %v117_v10 = vld [vmem:[%s192_s5] ss:$0 sm:$0xff] }
   0x7   :  { %v118_v11 = vld [vmem:[%s193_s6] ss:$0 sm:$0xff] }
  0x82   :  { %v50_v6 = vpop.f32.mrf.mxu0 }
  0x83   :  { %v57_v7 = vmul.f32 %v115_v4, %v50_v6 }
  0x85   :  { %v62_v8 = vadd.f32 %v116_v5, %v57_v7 }
  0x87   :  { %v63_v9 = vmax.f32 %v62_v8, 0.0 }
  0x89   :  { %114 = vmatmul.msk.f32.vlgmr.msra.gmra.mxu1 %vm65_vm2, %v63_v9 }
 0x106   :  { %v90_v12 = vpop.f32.mrf.mxu1 }
 0x107   :  { %v97_v13 = vmul.f32 %v117_v10, %v90_v12 }
 0x109   :  { %v102_v14 = vadd.f32 %v118_v11, %v97_v13 }
 0x10b   :  { %v103_v15 = vadd.f32 3.0, %v102_v14 }
 0x10d   :  { %v104_v16 = vmax.f32 %v103_v15, 0.0 }
 0x10f   :  { %v105_v17 = vmin.f32 %v104_v16, 6.0 }
 0x111   :  { %v106_v18 = vmul.f32 0.16666667, %v105_v17 }
 0x113   :  { %107 = vst.msk [vmem:[%s195_s7] sm:$0xff] %vm29_vm0, %v106_v18 }

// kernel: crnn_head_forward.4
= control target key start
LH: loop header
LB: loop body
LE: loop exit
PB: predicated region body
PF: predicated region fallthrough
CT: control target
= control target key end

     0   :  { %13 = vsyncpa [#allocation6], 0  ;;  %s1943_s0 = inlined_call_operand.vmem [shape: f32[64,16], index: 0, kind: input, shape index: {}]   ;;  %s1944_s1 = inlined_call_operand.vmem [shape: f32[16,256], index: 1, kind: input, shape index: {}]   ;;  %s1945_s2 = inlined_call_operand.hbm [shape: f32[1,256], index: 2, kind: input, shape index: {}]   ;;  %s1946_s3 = inlined_call_operand.vmem [shape: f32[32,128], index: 3, kind: input, shape index: {}]   ;;  %s1947_s4 = inlined_call_operand.vmem [shape: f32[32,128], index: 4, kind: input, shape index: {}]   ;;  %s1948_s5 = inlined_call_operand.vmem [shape: f32[32,128], index: 5, kind: input, shape index: {}]   ;;  %s1949_s6 = inlined_call_operand.vmem [shape: f32[32,128], index: 6, kind: input, shape index: {}]   ;;  %s1950_s7 = inlined_call_operand.hbm [shape: f32[1,128], index: 7, kind: input, shape index: {}]   ;;  %s1951_s8 = inlined_call_operand.vmem [shape: f32[64,128], index: 8, kind: output, shape index: {}]  }
   0x1   :  { %s24_s29 = sshll.u32 %s1945_s2, 4  ;;  %s25_s29 = int_to_ptr.hbm [resolvable:$true] %s24_s29 }
   0x2   :  { %14 = vsyncpa [#allocation8], 0  ;;  %s1507_s30 = smov [#allocation5]   ;;  %s43_s12 = sshll.u32 %s1950_s7, 4  ;;  %s44_s12 = int_to_ptr.hbm [resolvable:$true] %s43_s12 }
   0x3   :  { %s26_s9 = sshll.u32 %s1507_s30, 4  ;;  %s1508_s13 = smov [#allocation7]   ;;  %s27_s9 = int_to_ptr.vmem [resolvable:$true] %s26_s9 }
   0x4   :  { %29 = dma.hbm_to_vmem [thread:$0]  %s25_s29, 32, %s27_s9, [#allocation6]  }
   0x5   :  { %s45_s14 = sshll.u32 %s1508_s13, 4  ;;  %s46_s14 = int_to_ptr.vmem [resolvable:$true] %s45_s14 }
   0x6   :  { %48 = dma.hbm_to_vmem [thread:$0]  %s44_s12, 16, %s46_s14, [#allocation8]  }
   0x7   :  { %1503 = dma.done.wait [#allocation6], 32  }
   0x8   :  { %1504 = vsyncadd [#allocation6], 4294967264 }
   0x9   :  { %1505 = dma.done.wait [#allocation8], 16  }
   0xa   :  { %1506 = vsyncadd [#allocation8], 4294967280  ;;  %v67_v0 = vld [vmem:[%s1944_s1 + $0x10] sm:$0xff]  ;;  %v68_v1 = vld [vmem:[%s1944_s1 + $0x18] sm:$0xff]  ;;  %vm75_vm0 = vcmask 130048   ;;  %v1509_v17 = vmov 0.0  }
   0xb   :  { %v65_v2 = vld [vmem:[%s1944_s1] sm:$0xff]  ;;  %1349 = vmatpush.msra.mxu2 %v67_v0  ;;  %1351 = vmatpush.msra.mxu3 %v68_v1  ;;  %v66_v3 = vld [vmem:[%s1944_s1 + $0x8] sm:$0xff]  ;;  %v1581_v5 = vld [vmem:[%s1947_s4 + $0x18] sm:$0xff]  ;;  %s1510_s20 = smov 64   ;;  %s1511_s21 = smov 32   ;;  %vm210_vm1 = vcmask 261120  }
   0xc   :  { %v61_v4 = vld [vmem:[%s1943_s0 + $0x20] sm:$0xff]  ;;  %114 = vmatpush.msra.mxu0 %v67_v0  ;;  %155 = vmatpush.msra.mxu1 %v68_v1  ;;  %v1588_v6 = vld [vmem:[%s1947_s4 + $0x10] sm:$0xff]  ;;  %v1593_v7 = vld [vmem:[%s1946_s3 + $0x18] sm:$0xff] }
   0xd   :  { %1350 = vmatpush.msra.mxu2 %v65_v2  ;;  %1352 = vmatpush.msra.mxu3 %v66_v3  ;;  %v1598_v8 = vld [vmem:[%s1946_s3 + $0x10] sm:$0xff]  ;;  %v57_v9 = vld [vmem:[%s1943_s0] sm:$0xff]  ;;  %v1608_v10 = vld [vmem:[%s1947_s4 + $0x8] sm:$0xff] }
   0xe   :  { %1307 = vmatmul.msk.f32.vlgmr.msra.gmra.mxu2 %vm75_vm0, %v61_v4  ;;  %1315 = vmatmul.msk.f32.vlgmr.msra.gmra.mxu3 %vm75_vm0, %v61_v4  ;;  %v1613_v11 = vld [vmem:[%s1946_s3 + $0x8] sm:$0xff]  ;;  %v1620_v12 = vld [vmem:[%s1947_s4] sm:$0xff]  ;;  %v63_v15 = vld [vmem:[%s1943_s0 + $0x30] sm:$0xff] }
   0xf   :  { %251 = vmatpush.msrb.mxu3 %v1581_v5  ;;  %226 = vmatpush.msrb.mxu2 %v1593_v7  ;;  %v1625_v13 = vld [vmem:[%s1946_s3] sm:$0xff]  ;;  %v62_v14 = vld [vmem:[%s1943_s0 + $0x28] sm:$0xff]  ;;  %v64_v16 = vld [vmem:[%s1943_s0 + $0x38] sm:$0xff] }
  0x10   :  { %115 = vmatpush.msra.mxu0 %v65_v2  ;;  %156 = vmatpush.msra.mxu1 %v66_v3  ;;  %v69_v24 = vld [vmem:[#allocation5] sm:$0x3]  ;;  %v58_v58 = vld [vmem:[%s1943_s0 + $0x8] sm:$0xff]  ;;  %v59_v61 = vld [vmem:[%s1943_s0 + $0x10] sm:$0xff] }
  0x11   :  { %252 = vmatpush.msrb.mxu3 %v1588_v6  ;;  %227 = vmatpush.msrb.mxu2 %v1598_v8  ;;  %v1678_v27 = vperm.slane %v69_v24, 0  ;;  %v1680_v29 = vperm.slane %v69_v24, 1  ;;  %v60_v0 = vld [vmem:[%s1943_s0 + $0x18] sm:$0xff]  ;;  %v1126_v2 = vld [vmem:[%s1948_s5 + $0x10] sm:$0xff]  ;;  %v1125_v3 = vld [vmem:[%s1948_s5 + $0x8] sm:$0xff] }
  0x12   :  { %1303 = vmatmul.msk.f32.vlgmr.msra.gmra.mxu0 %vm75_vm0, %v57_v9  ;;  %1311 = vmatmul.msk.f32.vlgmr.msra.gmra.mxu1 %vm75_vm0, %v57_v9  ;;  %v1127_v1 = vld [vmem:[%s1948_s5 + $0x18] sm:$0xff]  ;;  %v1124_v4 = vld [vmem:[%s1948_s5] sm:$0xff] }
  0x13   :  { %253 = vmatpush.msrb.mxu3 %v1608_v10  ;;  %228 = vmatpush.msrb.mxu2 %v1613_v11 }
  0x14   :  { %1241 = vmatpush.msrb.mxu1 %v1127_v1 }
  0x15   :  { %254 = vmatpush.msrb.mxu3 %v1620_v12  ;;  %229 = vmatpush.msrb.mxu2 %v1625_v13 }
  0x16   :  { %1308 = vmatmul.msk.f32.gmra.mxu2 %vm75_vm0, %v62_v14  ;;  %1316 = vmatmul.msk.f32.gmra.mxu3 %vm75_vm0, %v62_v14 }
  0x17   :  { %368 = vmatpush.msra.mxu3 %v1581_v5  ;;  %341 = vmatpush.msra.mxu2 %v1593_v7 }
  0x18   :  { %1242 = vmatpush.msrb.mxu1 %v1126_v2 }
  0x19   :  { %369 = vmatpush.msra.mxu3 %v1588_v6  ;;  %342 = vmatpush.msra.mxu2 %v1598_v8 }
  0x1a   :  { %1312 = vmatmul.msk.f32.gmra.mxu1 %vm75_vm0, %v58_v58  ;;  %1304 = vmatmul.msk.f32.gmra.mxu0 %vm75_vm0, %v58_v58 }
  0x1b   :  { %370 = vmatpush.msra.mxu3 %v1608_v10  ;;  %343 = vmatpush.msra.mxu2 %v1613_v11 }
  0x1c   :  { %1243 = vmatpush.msrb.mxu1 %v1125_v3 }
  0x1d   :  { %371 = vmatpush.msra.mxu3 %v1620_v12  ;;  %344 = vmatpush.msra.mxu2 %v1625_v13 }
  0x1e   :  { %1309 = vmatmul.msk.f32.gmra.mxu2 %vm75_vm0, %v63_v15  ;;  %1317 = vmatmul.msk.f32.gmra.mxu3 %vm75_vm0, %v63_v15 }
  0x1f   :  { %1244 = vmatpush.msrb.mxu1 %v1124_v4 }
  0x22   :  { %1313 = vmatmul.msk.f32.gmra.mxu1 %vm75_vm0, %v59_v61  ;;  %1305 = vmatmul.msk.f32.gmra.mxu0 %vm75_vm0, %v59_v61 }
  0x26   :  { %1310 = vmatmul.msk.f32.gmra.mxu2 %vm75_vm0, %v64_v16  ;;  %1318 = vmatmul.msk.f32.gmra.mxu3 %vm75_vm0, %v64_v16 }
  0x2a   :  { %1314 = vmatmul.msk.f32.gmra.mxu1 %vm75_vm0, %v60_v0  ;;  %1306 = vmatmul.msk.f32.gmra.mxu0 %vm75_vm0, %v60_v0 }
  0x2e   :  { %230 = vmatmul.f32.vlgmr.msrb.gmra.mxu2 %v1509_v17  ;;  %255 = vmatmul.f32.vlgmr.msrb.gmra.mxu3 %v1509_v17 }
  0x2f   :  { %486 = vmatpush.msrb.mxu3 %v1581_v5  ;;  %459 = vmatpush.msrb.mxu2 %v1593_v7 }
  0x31   :  { %487 = vmatpush.msrb.mxu3 %v1588_v6  ;;  %460 = vmatpush.msrb.mxu2 %v1598_v8 }
  0x33   :  { %488 = vmatpush.msrb.mxu3 %v1608_v10  ;;  %461 = vmatpush.msrb.mxu2 %v1613_v11 }
  0x35   :  { %489 = vmatpush.msrb.mxu3 %v1620_v12  ;;  %462 = vmatpush.msrb.mxu2 %v1625_v13 }
  0x8f   :  { %v117_v28 = vpop.f32.mrf.mxu0 }
  0x90   :  { %v118_v30 = vadd.f32 %v117_v28, %v1678_v27 }
  0x91   :  { %v1664_v18 = vpop.f32.mrf.mxu2  ;;  %v1666_v19 = vpop.f32.mrf.mxu3 }
  0x97   :  { %v120_v16 = vpop.f32.mrf.mxu0 }
  0x98   :  { %v121_v17 = vadd.f32 %v120_v16, %v1678_v27 }
  0x99   :  { %v1668_v20 = vpop.f32.mrf.mxu2  ;;  %v1670_v21 = vpop.f32.mrf.mxu3 }
  0x9f   :  { %v123_v0 = vpop.f32.mrf.mxu0 }
  0xa0   :  { %v124_v1 = vadd.f32 %v123_v0, %v1678_v27 }
  0xa1   :  { %v1672_v22 = vpop.f32.mrf.mxu2  ;;  %v1674_v23 = vpop.f32.mrf.mxu3 }
  0xa2   :  { %v177_v24 = vadd.f32 %v1674_v23, %v1680_v29 }
  0xa9   :  { %v1676_v25 = vpop.f32.mrf.mxu2  ;;  %v179_v26 = vpop.f32.mrf.mxu3 }
  0xaa   :  { %v180_v31 = vadd.f32 %v179_v26, %v1680_v29 }
  0xb1   :  { %v231_v32 = vpop.f32.mrf.mxu2  ;;  %v256_v33 = vpop.f32.mrf.mxu3 }
  0xb2   :  { %v234_v34 = vadd.f32 %v231_v32, %v118_v30  ;;  %v259_v35 = vadd.f32 %v256_v33, %v180_v31 }
  0xb4   :  { %1359 = vtanh.f32 %v234_v34  ;;  %v260_v38 = vmul.f32 0.5, %v234_v34  ;;  %v282_v39 = vmul.f32 0.5, %v259_v35 }
  0xb5   :  { %1361 = vtanh.f32 %v259_v35 }
  0xb6   :  { %1363 = vtanh.f32 %v260_v38 }
  0xb7   :  { %1365 = vtanh.f32 %v282_v39 }
  0xba   :  { %v1360_v36 = vpop.eup %1359 }
  0xbb   :  { %v1362_v37 = vpop.eup %1361  ;;  %267 = vrot.lane.b32.xlu1 %v1360_v36, %s1510_s20 }
  0xbc   :  { %289 = vrot.lane.b32.xlu0 %v1362_v37, %s1510_s20  ;;  %v1364_v40 = vpop.eup %1363 }
  0xbd   :  { %v1366_v41 = vpop.eup %1365  ;;  %v262_v42 = vmul.f32 0.5, %v1364_v40 }
  0xbe   :  { %v284_v43 = vmul.f32 0.5, %v1366_v41 }
  0xbf   :  { %v263_v44 = vadd.f32 0.5, %v262_v42 }
  0xc0   :  { %v285_v45 = vadd.f32 0.5, %v284_v43 }
  0xc1   :  { %v265_v50 = vmul.f32 0.0, %v263_v44 }
  0xc2   :  { %v287_v54 = vmul.f32 0.0, %v285_v45 }
 0x12d   :  { %v268_v46 = vpop.permute.xlu1 %267 }
 0x12e   :  { %v290_v47 = vpop.permute.xlu0 %289  ;;  %v270_v48 = vmul.f32 %v268_v46, %v263_v44 }
 0x12f   :  { %v292_v49 = vmul.f32 %v290_v47, %v285_v45 }
 0x130   :  { %272 = vrot.lane.b32.xlu2 %v270_v48, %s1511_s21 }
 0x131   :  { %294 = vrot.lane.b32.xlu0 %v292_v49, %s1511_s21 }
 0x18a   :  { %v273_v51 = vpop.permute.xlu2 %272 }
 0x18b   :  { %v1688_v52 = vadd.f32 %v273_v51, %v265_v50 }
 0x18d   :  { %1367 = vtanh.f32 %v1688_v52 }
 0x193   :  { %v1368_v53 = vpop.eup %1367 }
 0x194   :  { %278 = vrot.lane.b32.xlu0 %v1368_v53, %s1510_s20 }
 0x1a3   :  { %v295_v55 = vpop.permute.xlu0 %294 }
 0x1a4   :  { %v1692_v56 = vadd.f32 %v295_v55, %v287_v54 }
 0x1a6   :  { %1369 = vtanh.f32 %v1692_v56 }
 0x1ac   :  { %v1370_v57 = vpop.eup %1369 }
 0x1ad   :  { %300 = vrot.lane.b32.xlu1 %v1370_v57, %s1510_s20 }
 0x206   :  { %v279_v59 = vpop.permute.xlu0 %278 }
 0x207   :  { %v281_v60 = vmul.f32 %v279_v59, %v263_v44 }
 0x209   :  { %305 = vrot.lane.b32.xlu1 %v281_v60, %s1511_s21  ;;  %v174_v60 = vadd.f32 %v1670_v21, %v1680_v29 }
 0x21f   :  { %v301_v62 = vpop.permute.xlu1 %300 }
 0x220   :  { %v303_v63 = vmul.f32 %v301_v62, %v285_v45 }
 0x222   :  { %310 = vrot.lane.b32.xlu2 %v303_v63, %s1511_s21 }
 0x27b   :  { %v306_v9 = vpop.permute.xlu1 %305 }
 0x27c   :  { %v311_v14 = vpop.permute.xlu2 %310  ;;  %308 = vst.msk [vmem:[#allocation3] sm:$0xff] %vm210_vm1, %v306_v9  ;;  %1319 = vmatmul.msk.f32.vlgmr.msra.gmra.mxu2 %vm210_vm1, %v306_v9 }
 0x27d   :  { %314 = vst.msk [vmem:[#allocation4 + $0x38] sm:$0xff] %vm210_vm1, %v311_v14  ;;  %1320 = vmatmul.msk.f32.vlgmr.msra.gmra.mxu3 %vm210_vm1, %v311_v14  ;;  %577 = vmatpush.msra.mxu2 %v1593_v7 }
 0x27e   :  { %604 = vmatpush.msra.mxu3 %v1581_v5 }
 0x27f   :  { %578 = vmatpush.msra.mxu2 %v1598_v8 }
 0x280   :  { %605 = vmatpush.msra.mxu3 %v1588_v6 }
 0x281   :  { %579 = vmatpush.msra.mxu2 %v1613_v11 }
 0x282   :  { %606 = vmatpush.msra.mxu3 %v1608_v10 }
 0x283   :  { %v1116_v15 = vld [vmem:[#allocation3] sm:$0xff]  ;;  %580 = vmatpush.msra.mxu2 %v1625_v13 }
 0x284   :  { %1341 = vmatmul.msk.f32.vlgmr.msrb.gmra.mxu1 %vm210_vm1, %v1116_v15  ;;  %607 = vmatpush.msra.mxu3 %v1620_v12 }
 0x2ff   :  { %v346_v26 = vpop.f32.mrf.mxu2 }
 0x300   :  { %v349_v28 = vadd.f32 %v346_v26, %v121_v17  ;;  %v373_v30 = vpop.f32.mrf.mxu3 }
 0x301   :  { %v376_v31 = vadd.f32 %v373_v30, %v177_v24 }
 0x302   :  { %1371 = vtanh.f32 %v349_v28  ;;  %v377_v23 = vmul.f32 0.5, %v349_v28 }
 0x303   :  { %1373 = vtanh.f32 %v376_v31  ;;  %v399_v34 = vmul.f32 0.5, %v376_v31 }
 0x305   :  { %1375 = vtanh.f32 %v399_v34 }
 0x306   :  { %1377 = vtanh.f32 %v377_v23 }
 0x308   :  { %v1372_v32 = vpop.eup %1371 }
 0x309   :  { %v1374_v33 = vpop.eup %1373  ;;  %384 = vrot.lane.b32.xlu1 %v1372_v32, %s1510_s20 }
 0x30a   :  { %406 = vrot.lane.b32.xlu2 %v1374_v33, %s1510_s20 }
 0x30b   :  { %v1376_v35 = vpop.eup %1375 }
 0x30c   :  { %v401_v36 = vmul.f32 0.5, %v1376_v35  ;;  %v1378_v40 = vpop.eup %1377 }
 0x30d   :  { %v379_v41 = vmul.f32 0.5, %v1378_v40 }
 0x30e   :  { %v402_v37 = vadd.f32 0.5, %v401_v36 }
 0x30f   :  { %v380_v42 = vadd.f32 0.5, %v379_v41 }
 0x310   :  { %v404_v45 = vmul.f32 %v402_v37, %v1692_v56 }
 0x311   :  { %v382_v49 = vmul.f32 %v380_v42, %v1688_v52 }
 0x364   :  { %v407_v38 = vpop.permute.xlu2 %406 }
 0x365   :  { %v409_v39 = vmul.f32 %v407_v38, %v402_v37 }
 0x367   :  { %411 = vrot.lane.b32.xlu0 %v409_v39, %s1511_s21 }
 0x37b   :  { %v385_v43 = vpop.permute.xlu1 %384 }
 0x37c   :  { %v387_v44 = vmul.f32 %v385_v43, %v380_v42 }
 0x37e   :  { %389 = vrot.lane.b32.xlu0 %v387_v44, %s1511_s21 }
 0x3d9   :  { %v412_v46 = vpop.permute.xlu0 %411 }
 0x3da   :  { %v414_v47 = vadd.f32 %v412_v46, %v404_v45 }
 0x3dc   :  { %1379 = vtanh.f32 %v414_v47 }
 0x3e2   :  { %v1380_v48 = vpop.eup %1379 }
 0x3e3   :  { %417 = vrot.lane.b32.xlu2 %v1380_v48, %s1510_s20 }
 0x3f0   :  { %v390_v50 = vpop.permute.xlu0 %389 }
 0x3f1   :  { %v392_v51 = vadd.f32 %v390_v50, %v382_v49  ;;  %v171_v49 = vadd.f32 %v1666_v19, %v1680_v29 }
 0x3f3   :  { %1381 = vtanh.f32 %v392_v51 }
 0x3f9   :  { %v1382_v53 = vpop.eup %1381 }
 0x3fa   :  { %395 = vrot.lane.b32.xlu2 %v1382_v53, %s1510_s20 }
 0x43d   :  { %v418_v54 = vpop.permute.xlu2 %417 }
 0x43e   :  { %v420_v55 = vmul.f32 %v418_v54, %v402_v37 }
 0x440   :  { %428 = vrot.lane.b32.xlu1 %v420_v55, %s1511_s21 }
 0x454   :  { %v396_v57 = vpop.permute.xlu2 %395 }
 0x455   :  { %v398_v56 = vmul.f32 %v396_v57, %v380_v42 }
 0x457   :  { %422 = vrot.lane.b32.xlu0 %v398_v56, %s1511_s21 }
 0x4b2   :  { %v429_v58 = vpop.permute.xlu1 %428 }
 0x4b3   :  { %432 = vst.msk [vmem:[#allocation4 + $0x30] sm:$0xff] %vm210_vm1, %v429_v58  ;;  %1322 = vmatmul.msk.f32.vlgmr.msrb.gmra.mxu3 %vm210_vm1, %v429_v58 }
 0x4b4   :  { %716 = vmatpush.msrb.mxu3 %v1581_v5 }
 0x4b6   :  { %717 = vmatpush.msrb.mxu3 %v1588_v6 }
 0x4b8   :  { %718 = vmatpush.msrb.mxu3 %v1608_v10 }
 0x4ba   :  { %719 = vmatpush.msrb.mxu3 %v1620_v12 }
 0x4c9   :  { %v423_v52 = vpop.permute.xlu0 %422 }
 0x4ca   :  { %426 = vst.msk [vmem:[#allocation3 + $0x8] sm:$0xff] %vm210_vm1, %v423_v52  ;;  %1321 = vmatmul.msk.f32.vlgmr.msrb.gmra.mxu2 %vm210_vm1, %v423_v52 }
 0x4cb   :  { %689 = vmatpush.msrb.mxu2 %v1593_v7 }
 0x4cd   :  { %690 = vmatpush.msrb.mxu2 %v1598_v8 }
 0x4cf   :  { %691 = vmatpush.msrb.mxu2 %v1613_v11 }
 0x4d1   :  { %v1117_v59 = vld [vmem:[#allocation3 + $0x8] sm:$0xff]  ;;  %692 = vmatpush.msrb.mxu2 %v1625_v13 }
 0x4d2   :  { %1342 = vmatmul.msk.f32.gmra.mxu1 %vm210_vm1, %v1117_v59 }
 0x536   :  { %v491_v61 = vpop.f32.mrf.mxu3 }
 0x537   :  { %v494_v62 = vadd.f32 %v491_v61, %v174_v60 }
 0x539   :  { %1383 = vtanh.f32 %v494_v62  ;;  %v517_v9 = vmul.f32 0.5, %v494_v62 }
 0x53f   :  { %v1384_v63 = vpop.eup %1383 }
 0x540   :  { %524 = vrot.lane.b32.xlu1 %v1384_v63, %s1510_s20 }
 0x54d   :  { %v464_v2 = vpop.f32.mrf.mxu2 }
 0x54e   :  { %v467_v3 = vadd.f32 %v464_v2, %v124_v1 }
 0x550   :  { %1385 = vtanh.f32 %v467_v3  ;;  %v495_v24 = vmul.f32 0.5, %v467_v3 }
 0x551   :  { %1387 = vtanh.f32 %v517_v9 }
 0x552   :  { %1389 = vtanh.f32 %v495_v24 }
 0x556   :  { %v1386_v4 = vpop.eup %1385 }
 0x557   :  { %502 = vrot.lane.b32.xlu0 %v1386_v4, %s1510_s20  ;;  %v1388_v14 = vpop.eup %1387 }
 0x558   :  { %v519_v15 = vmul.f32 0.5, %v1388_v14  ;;  %v1390_v26 = vpop.eup %1389 }
 0x559   :  { %v497_v28 = vmul.f32 0.5, %v1390_v26 }
 0x55a   :  { %v520_v21 = vadd.f32 0.5, %v519_v15 }
 0x55b   :  { %v498_v30 = vadd.f32 0.5, %v497_v28 }
 0x55c   :  { %v522_v33 = vmul.f32 %v520_v21, %v414_v47  ;;  %v126_v47 = vpop.f32.mrf.mxu0 }
 0x55d   :  { %v500_v37 = vmul.f32 %v498_v30, %v392_v51  ;;  %v127_v48 = vadd.f32 %v126_v47, %v1678_v27 }
 0x5b2   :  { %v525_v16 = vpop.permute.xlu1 %524 }
 0x5b3   :  { %v527_v17 = vmul.f32 %v525_v16, %v520_v21 }
 0x5b5   :  { %529 = vrot.lane.b32.xlu2 %v527_v17, %s1511_s21 }
 0x5c9   :  { %v503_v31 = vpop.permute.xlu0 %502 }
 0x5ca   :  { %v505_v32 = vmul.f32 %v503_v31, %v498_v30 }
 0x5cc   :  { %507 = vrot.lane.b32.xlu2 %v505_v32, %s1511_s21 }
 0x60f   :  { %v530_v34 = vpop.permute.xlu2 %529 }
 0x610   :  { %v532_v35 = vadd.f32 %v530_v34, %v522_v33  ;;  %v1818_v34 = vpop.f32.mrf.mxu1 }
 0x612   :  { %1391 = vtanh.f32 %v532_v35 }
 0x618   :  { %v1392_v36 = vpop.eup %1391 }
 0x619   :  { %535 = vrot.lane.b32.xlu1 %v1392_v36, %s1510_s20 }
 0x626   :  { %v508_v38 = vpop.permute.xlu2 %507 }
 0x627   :  { %v510_v39 = vadd.f32 %v508_v38, %v500_v37 }
 0x629   :  { %1393 = vtanh.f32 %v510_v39 }
 0x62f   :  { %v1394_v23 = vpop.eup %1393 }
 0x630   :  { %513 = vrot.lane.b32.xlu1 %v1394_v23, %s1510_s20 }
 0x68b   :  { %v536_v40 = vpop.permute.xlu1 %535 }
 0x68c   :  { %v538_v41 = vmul.f32 %v536_v40, %v520_v21 }
 0x68e   :  { %546 = vrot.lane.b32.xlu0 %v538_v41, %s1511_s21  ;;  %v130_v41 = vadd.f32 %v1664_v18, %v1678_v27 }
 0x6a2   :  { %v514_v42 = vpop.permute.xlu1 %513 }
 0x6a3   :  { %v516_v43 = vmul.f32 %v514_v42, %v498_v30 }
 0x6a5   :  { %540 = vrot.lane.b32.xlu2 %v516_v43, %s1511_s21 }
 0x6ff   :  { %v541_v44 = vpop.permute.xlu2 %540 }
 0x700   :  { %v547_v45 = vpop.permute.xlu0 %546  ;;  %544 = vst.msk [vmem:[#allocation3 + $0x10] sm:$0xff] %vm210_vm1, %v541_v44  ;;  %1323 = vmatmul.msk.f32.vlgmr.msra.gmra.mxu2 %vm210_vm1, %v541_v44 }
 0x701   :  { %550 = vst.msk [vmem:[#allocation4 + $0x28] sm:$0xff] %vm210_vm1, %v547_v45  ;;  %1324 = vmatmul.msk.f32.vlgmr.msra.gmra.mxu3 %vm210_vm1, %v547_v45  ;;  %801 = vmatpush.msra.mxu2 %v1593_v7 }
 0x702   :  { %828 = vmatpush.msra.mxu3 %v1581_v5 }
 0x703   :  { %802 = vmatpush.msra.mxu2 %v1598_v8 }
 0x704   :  { %829 = vmatpush.msra.mxu3 %v1588_v6 }
 0x705   :  { %803 = vmatpush.msra.mxu2 %v1613_v11 }
 0x706   :  { %830 = vmatpush.msra.mxu3 %v1608_v10 }
 0x707   :  { %v1118_v46 = vld [vmem:[#allocation3 + $0x10] sm:$0xff]  ;;  %804 = vmatpush.msra.mxu2 %v1625_v13 }
 0x708   :  { %1343 = vmatmul.msk.f32.gmra.mxu1 %vm210_vm1, %v1118_v46  ;;  %831 = vmatpush.msra.mxu3 %v1620_v12 }
 0x783   :  { %v582_v50 = vpop.f32.mrf.mxu2 }
 0x784   :  { %v585_v51 = vadd.f32 %v582_v50, %v127_v48  ;;  %v609_v53 = vpop.f32.mrf.mxu3 }
 0x785   :  { %v612_v54 = vadd.f32 %v609_v53, %v171_v49 }
 0x786   :  { %1395 = vtanh.f32 %v585_v51  ;;  %v613_v58 = vmul.f32 0.5, %v585_v51 }
 0x787   :  { %1397 = vtanh.f32 %v612_v54  ;;  %v635_v56 = vmul.f32 0.5, %v612_v54 }
 0x789   :  { %1399 = vtanh.f32 %v635_v56 }
 0x78a   :  { %1401 = vtanh.f32 %v613_v58 }
 0x78c   :  { %v1396_v55 = vpop.eup %1395 }
 0x78d   :  { %v1398_v57 = vpop.eup %1397  ;;  %620 = vrot.lane.b32.xlu2 %v1396_v55, %s1510_s20 }
 0x78e   :  { %642 = vrot.lane.b32.xlu0 %v1398_v57, %s1510_s20 }
 0x78f   :  { %v1400_v52 = vpop.eup %1399 }
 0x790   :  { %v637_v59 = vmul.f32 0.5, %v1400_v52  ;;  %v1402_v19 = vpop.eup %1401 }
 0x791   :  { %v615_v63 = vmul.f32 0.5, %v1402_v19 }
 0x792   :  { %v638_v60 = vadd.f32 0.5, %v637_v59 }
 0x793   :  { %v616_v1 = vadd.f32 0.5, %v615_v63 }
 0x794   :  { %v640_v3 = vmul.f32 %v638_v60, %v532_v35  ;;  %v1820_v35 = vpop.f32.mrf.mxu1 }
 0x795   :  { %v618_v14 = vmul.f32 %v616_v1, %v510_v39 }
 0x79c   :  { %v1822_v36 = vpop.f32.mrf.mxu1 }
 0x7a4   :  { %v167_v37 = vpop.f32.mrf.mxu1 }
 0x7a5   :  { %v168_v38 = vadd.f32 %v167_v37, %v1680_v29 }
 0x7e7   :  { %v621_v0 = vpop.permute.xlu2 %620 }
 0x7e8   :  { %v623_v2 = vmul.f32 %v621_v0, %v616_v1 }
 0x800   :  { %v643_v61 = vpop.permute.xlu0 %642 }
 0x801   :  { %v645_v62 = vmul.f32 %v643_v61, %v638_v60 }
 0x803   :  { %647 = vrot.lane.b32.xlu1 %v645_v62, %s1511_s21 }
 0x80b   :  { %625 = vrot.lane.b32.xlu1 %v623_v2, %s1511_s21 }
 0x875   :  { %v648_v4 = vpop.permute.xlu1 %647 }
 0x876   :  { %v1795_v9 = vadd.f32 %v648_v4, %v640_v3 }
 0x878   :  { %1403 = vtanh.f32 %v1795_v9 }
 0x87d   :  { %v626_v15 = vpop.permute.xlu1 %625 }
 0x87e   :  { %v1404_v21 = vpop.eup %1403  ;;  %v1798_v16 = vadd.f32 %v626_v15, %v618_v14 }
 0x87f   :  { %653 = vrot.lane.b32.xlu0 %v1404_v21, %s1510_s20 }
 0x880   :  { %1405 = vtanh.f32 %v1798_v16 }
 0x886   :  { %v1406_v17 = vpop.eup %1405 }
 0x887   :  { %631 = vrot.lane.b32.xlu0 %v1406_v17, %s1510_s20 }
 0x8f1   :  { %v654_v24 = vpop.permute.xlu0 %653 }
 0x8f2   :  { %v656_v26 = vmul.f32 %v654_v24, %v638_v60 }
 0x8f4   :  { %664 = vrot.lane.b32.xlu2 %v656_v26, %s1511_s21 }
 0x8f9   :  { %v632_v28 = vpop.permute.xlu0 %631 }
 0x8fa   :  { %v634_v30 = vmul.f32 %v632_v28, %v616_v1 }
 0x8fc   :  { %658 = vrot.lane.b32.xlu1 %v634_v30, %s1511_s21 }
 0x94e   :  { %v665_v31 = vpop.permute.xlu2 %664 }
 0x94f   :  { %668 = vst.msk [vmem:[#allocation4 + $0x20] sm:$0xff] %vm210_vm1, %v665_v31  ;;  %1326 = vmatmul.msk.f32.vlgmr.msrb.gmra.mxu3 %vm210_vm1, %v665_v31 }
 0x950   :  { %940 = vmatpush.msrb.mxu3 %v1581_v5 }
 0x952   :  { %941 = vmatpush.msrb.mxu3 %v1588_v6 }
 0x954   :  { %942 = vmatpush.msrb.mxu3 %v1608_v10 }
 0x956   :  { %943 = vmatpush.msrb.mxu3 %v1620_v12 }
 0x96e   :  { %v659_v32 = vpop.permute.xlu1 %658 }
 0x96f   :  { %662 = vst.msk [vmem:[#allocation3 + $0x18] sm:$0xff] %vm210_vm1, %v659_v32  ;;  %1325 = vmatmul.msk.f32.vlgmr.msrb.gmra.mxu2 %vm210_vm1, %v659_v32 }
 0x970   :  { %913 = vmatpush.msrb.mxu2 %v1593_v7 }
 0x972   :  { %914 = vmatpush.msrb.mxu2 %v1598_v8 }
 0x974   :  { %915 = vmatpush.msrb.mxu2 %v1613_v11 }
 0x976   :  { %v1119_v33 = vld [vmem:[#allocation3 + $0x18] sm:$0xff]  ;;  %916 = vmatpush.msrb.mxu2 %v1625_v13 }
 0x977   :  { %1344 = vmatmul.msk.f32.gmra.mxu1 %vm210_vm1, %v1119_v33 }
 0x9d2   :  { %v721_v39 = vpop.f32.mrf.mxu3 }
 0x9d3   :  { %v724_v23 = vadd.f32 %v721_v39, %v168_v38 }
 0x9d5   :  { %1407 = vtanh.f32 %v724_v23  ;;  %v747_v45 = vmul.f32 0.5, %v724_v23 }
 0x9db   :  { %v1408_v40 = vpop.eup %1407 }
 0x9dc   :  { %754 = vrot.lane.b32.xlu2 %v1408_v40, %s1510_s20 }
 0x9f2   :  { %v694_v42 = vpop.f32.mrf.mxu2 }
 0x9f3   :  { %v697_v43 = vadd.f32 %v694_v42, %v130_v41 }
 0x9f5   :  { %1409 = vtanh.f32 %v697_v43  ;;  %v725_v51 = vmul.f32 0.5, %v697_v43 }
 0x9f6   :  { %1411 = vtanh.f32 %v747_v45 }
 0x9f7   :  { %1413 = vtanh.f32 %v725_v51 }
 0x9fb   :  { %v1410_v44 = vpop.eup %1409 }
 0x9fc   :  { %732 = vrot.lane.b32.xlu1 %v1410_v44, %s1510_s20  ;;  %v1412_v46 = vpop.eup %1411 }
 0x9fd   :  { %v749_v47 = vmul.f32 0.5, %v1412_v46  ;;  %v1414_v53 = vpop.eup %1413 }
 0x9fe   :  { %v727_v54 = vmul.f32 0.5, %v1414_v53 }
 0x9ff   :  { %v750_v48 = vadd.f32 0.5, %v749_v47 }
 0xa00   :  { %v728_v18 = vadd.f32 0.5, %v727_v54  ;;  %v136_v54 = vadd.f32 %v1672_v22, %v1678_v27 }
 0xa01   :  { %v752_v56 = vmul.f32 %v750_v48, %v1795_v9 }
 0xa02   :  { %v730_v60 = vmul.f32 %v728_v18, %v1798_v16 }
 0xa36   :  { %v755_v49 = vpop.permute.xlu2 %754 }
 0xa37   :  { %v757_v50 = vmul.f32 %v755_v49, %v750_v48  ;;  %v162_v49 = vadd.f32 %v1820_v35, %v1680_v29 }
 0xa39   :  { %759 = vrot.lane.b32.xlu0 %v757_v50, %s1511_s21 }
 0xa6e   :  { %v733_v55 = vpop.permute.xlu1 %732 }
 0xa6f   :  { %v735_v57 = vmul.f32 %v733_v55, %v728_v18 }
 0xa71   :  { %737 = vrot.lane.b32.xlu0 %v735_v57, %s1511_s21 }
 0xaab   :  { %v760_v58 = vpop.permute.xlu0 %759 }
 0xaac   :  { %v762_v52 = vadd.f32 %v760_v58, %v752_v56 }
 0xaae   :  { %1415 = vtanh.f32 %v762_v52 }
 0xab4   :  { %v1416_v59 = vpop.eup %1415 }
 0xab5   :  { %765 = vrot.lane.b32.xlu2 %v1416_v59, %s1510_s20 }
 0xae3   :  { %v738_v19 = vpop.permute.xlu0 %737 }
 0xae4   :  { %v740_v61 = vadd.f32 %v738_v19, %v730_v60 }
 0xae6   :  { %1417 = vtanh.f32 %v740_v61 }
 0xaec   :  { %v1418_v62 = vpop.eup %1417 }
 0xaed   :  { %743 = vrot.lane.b32.xlu2 %v1418_v62, %s1510_s20 }
 0xb0f   :  { %v766_v63 = vpop.permute.xlu2 %765 }
 0xb10   :  { %v768_v0 = vmul.f32 %v766_v63, %v750_v48 }
 0xb12   :  { %776 = vrot.lane.b32.xlu1 %v768_v0, %s1511_s21 }
 0xb47   :  { %v744_v1 = vpop.permute.xlu2 %743 }
 0xb48   :  { %v746_v2 = vmul.f32 %v744_v1, %v728_v18 }
 0xb4a   :  { %770 = vrot.lane.b32.xlu0 %v746_v2, %s1511_s21 }
 0xb84   :  { %v777_v3 = vpop.permute.xlu1 %776 }
 0xb85   :  { %780 = vst.msk [vmem:[#allocation4 + $0x18] sm:$0xff] %vm210_vm1, %v777_v3  ;;  %1328 = vmatmul.msk.f32.vlgmr.msra.gmra.mxu3 %vm210_vm1, %v777_v3 }
 0xb86   :  { %1052 = vmatpush.msra.mxu3 %v1581_v5  ;;  %v165_v5 = vadd.f32 %v1822_v36, %v1680_v29 }
 0xb88   :  { %1053 = vmatpush.msra.mxu3 %v1588_v6 }
 0xb8a   :  { %1054 = vmatpush.msra.mxu3 %v1608_v10 }
 0xb8c   :  { %1055 = vmatpush.msra.mxu3 %v1620_v12 }
 0xbbc   :  { %v771_v4 = vpop.permute.xlu0 %770 }
 0xbbd   :  { %774 = vst.msk [vmem:[#allocation3 + $0x20] sm:$0xff] %vm210_vm1, %v771_v4  ;;  %1327 = vmatmul.msk.f32.vlgmr.msra.gmra.mxu2 %vm210_vm1, %v771_v4 }
 0xbbe   :  { %1025 = vmatpush.msra.mxu2 %v1593_v7  ;;  %v133_v7 = vadd.f32 %v1668_v20, %v1678_v27 }
 0xbc0   :  { %1026 = vmatpush.msra.mxu2 %v1598_v8 }
 0xbc2   :  { %1027 = vmatpush.msra.mxu2 %v1613_v11 }
 0xbc4   :  { %v1120_v9 = vld [vmem:[#allocation3 + $0x20] sm:$0xff]  ;;  %1028 = vmatpush.msra.mxu2 %v1625_v13 }
 0xbc5   :  { %1345 = vmatmul.msk.f32.gmra.mxu1 %vm210_vm1, %v1120_v9 }
 0xc08   :  { %v833_v6 = vpop.f32.mrf.mxu3 }
 0xc09   :  { %v836_v10 = vadd.f32 %v833_v6, %v165_v5 }
 0xc0b   :  { %1419 = vtanh.f32 %v836_v10  ;;  %v859_v13 = vmul.f32 0.5, %v836_v10 }
 0xc11   :  { %v1420_v12 = vpop.eup %1419 }
 0xc12   :  { %866 = vrot.lane.b32.xlu1 %v1420_v12, %s1510_s20 }
 0xc40   :  { %v806_v8 = vpop.f32.mrf.mxu2 }
 0xc41   :  { %v809_v14 = vadd.f32 %v806_v8, %v133_v7 }
 0xc43   :  { %1421 = vtanh.f32 %v809_v14  ;;  %v837_v26 = vmul.f32 0.5, %v809_v14 }
 0xc44   :  { %1423 = vtanh.f32 %v859_v13 }
 0xc45   :  { %1425 = vtanh.f32 %v837_v26  ;;  %v139_v26 = vadd.f32 %v1676_v25, %v1678_v27 }
 0xc49   :  { %v1422_v11 = vpop.eup %1421 }
 0xc4a   :  { %844 = vrot.lane.b32.xlu0 %v1422_v11, %s1510_s20  ;;  %v1424_v15 = vpop.eup %1423 }
 0xc4b   :  { %v861_v21 = vmul.f32 0.5, %v1424_v15  ;;  %v1426_v28 = vpop.eup %1425 }
 0xc4c   :  { %v839_v30 = vmul.f32 0.5, %v1426_v28 }
 0xc4d   :  { %v862_v16 = vadd.f32 0.5, %v861_v21  ;;  %v159_v21 = vadd.f32 %v1818_v34, %v1680_v29 }
 0xc4e   :  { %v840_v20 = vadd.f32 0.5, %v839_v30 }
 0xc4f   :  { %v864_v33 = vmul.f32 %v862_v16, %v762_v52 }
 0xc50   :  { %v842_v39 = vmul.f32 %v840_v20, %v740_v61 }
 0xc84   :  { %v867_v17 = vpop.permute.xlu1 %866 }
 0xc85   :  { %v869_v24 = vmul.f32 %v867_v17, %v862_v16 }
 0xc87   :  { %871 = vrot.lane.b32.xlu2 %v869_v24, %s1511_s21 }
 0xcbc   :  { %v845_v31 = vpop.permute.xlu0 %844 }
 0xcbd   :  { %v847_v32 = vmul.f32 %v845_v31, %v840_v20 }
 0xcbf   :  { %849 = vrot.lane.b32.xlu2 %v847_v32, %s1511_s21 }
 0xce1   :  { %v872_v36 = vpop.permute.xlu2 %871 }
 0xce2   :  { %v874_v37 = vadd.f32 %v872_v36, %v864_v33 }
 0xce4   :  { %1427 = vtanh.f32 %v874_v37 }
 0xcea   :  { %v1428_v38 = vpop.eup %1427 }
 0xceb   :  { %877 = vrot.lane.b32.xlu1 %v1428_v38, %s1510_s20 }
 0xd19   :  { %v850_v23 = vpop.permute.xlu2 %849 }
 0xd1a   :  { %v852_v40 = vadd.f32 %v850_v23, %v842_v39 }
 0xd1c   :  { %1429 = vtanh.f32 %v852_v40 }
 0xd22   :  { %v1430_v41 = vpop.eup %1429 }
 0xd23   :  { %855 = vrot.lane.b32.xlu1 %v1430_v41, %s1510_s20 }
 0xd5d   :  { %v878_v42 = vpop.permute.xlu1 %877 }
 0xd5e   :  { %v880_v43 = vmul.f32 %v878_v42, %v862_v16 }
 0xd60   :  { %888 = vrot.lane.b32.xlu0 %v880_v43, %s1511_s21 }
 0xd95   :  { %v856_v44 = vpop.permute.xlu1 %855 }
 0xd96   :  { %v858_v45 = vmul.f32 %v856_v44, %v840_v20 }
 0xd98   :  { %882 = vrot.lane.b32.xlu2 %v858_v45, %s1511_s21 }
 0xdd2   :  { %v889_v46 = vpop.permute.xlu0 %888 }
 0xdd3   :  { %892 = vst.msk [vmem:[#allocation4 + $0x10] sm:$0xff] %vm210_vm1, %v889_v46  ;;  %1330 = vmatmul.msk.f32.vlgmr.msrb.gmra.mxu3 %vm210_vm1, %v889_v46 }
 0xdf2   :  { %v883_v47 = vpop.permute.xlu2 %882 }
 0xdf3   :  { %886 = vst.msk [vmem:[#allocation3 + $0x28] sm:$0xff] %vm210_vm1, %v883_v47  ;;  %1329 = vmatmul.msk.f32.vlgmr.msrb.gmra.mxu2 %vm210_vm1, %v883_v47 }
 0xdfa   :  { %v1121_v48 = vld [vmem:[#allocation3 + $0x28] sm:$0xff] }
 0xdfb   :  { %1346 = vmatmul.msk.f32.gmra.mxu1 %vm210_vm1, %v1121_v48 }
 0xe56   :  { %v945_v50 = vpop.f32.mrf.mxu3 }
 0xe57   :  { %v948_v51 = vadd.f32 %v945_v50, %v162_v49  ;;  %v1139_v50 = vld [vmem:[%s1949_s6 + $0x18] sm:$0xff] }
 0xe58   :  { %1176 = vmatpush.msrb.mxu0 %v1139_v50 }
 0xe59   :  { %1431 = vtanh.f32 %v948_v51  ;;  %v971_v56 = vmul.f32 0.5, %v948_v51  ;;  %v1138_v51 = vld [vmem:[%s1949_s6 + $0x10] sm:$0xff] }
 0xe5a   :  { %1177 = vmatpush.msrb.mxu0 %v1138_v51 }
 0xe5f   :  { %v1432_v53 = vpop.eup %1431 }
 0xe60   :  { %978 = vrot.lane.b32.xlu0 %v1432_v53, %s1510_s20  ;;  %v1137_v53 = vld [vmem:[%s1949_s6 + $0x8] sm:$0xff] }
 0xe61   :  { %1178 = vmatpush.msrb.mxu0 %v1137_v53 }
 0xe76   :  { %v918_v18 = vpop.f32.mrf.mxu2 }
 0xe77   :  { %v921_v55 = vadd.f32 %v918_v18, %v136_v54 }
 0xe79   :  { %1433 = vtanh.f32 %v921_v55  ;;  %v949_v58 = vmul.f32 0.5, %v921_v55  ;;  %v1136_v55 = vld [vmem:[%s1949_s6] sm:$0xff] }
 0xe7a   :  { %1435 = vtanh.f32 %v971_v56  ;;  %1179 = vmatpush.msrb.mxu0 %v1136_v55 }
 0xe7b   :  { %1437 = vtanh.f32 %v949_v58 }
 0xe7f   :  { %v1434_v57 = vpop.eup %1433 }
 0xe80   :  { %956 = vrot.lane.b32.xlu2 %v1434_v57, %s1510_s20  ;;  %v1436_v52 = vpop.eup %1435 }
 0xe81   :  { %v973_v35 = vmul.f32 0.5, %v1436_v52  ;;  %v1438_v60 = vpop.eup %1437  ;;  %v1130_v52 = vld [vmem:[#allocation4 + $0x10] sm:$0xff] }
 0xe82   :  { %v951_v62 = vmul.f32 0.5, %v1438_v60  ;;  %v1133_v60 = vld [vmem:[#allocation4 + $0x28] sm:$0xff] }
 0xe83   :  { %v974_v59 = vadd.f32 0.5, %v973_v35  ;;  %v1131_v35 = vld [vmem:[#allocation4 + $0x18] sm:$0xff] }
 0xe84   :  { %v952_v22 = vadd.f32 0.5, %v951_v62  ;;  %v1135_v62 = vld [vmem:[#allocation4 + $0x38] sm:$0xff] }
 0xe85   :  { %v976_v1 = vmul.f32 %v974_v59, %v874_v37 }
 0xe86   :  { %v954_v4 = vmul.f32 %v952_v22, %v852_v40 }
 0xed2   :  { %v979_v19 = vpop.permute.xlu0 %978 }
 0xed3   :  { %v981_v61 = vmul.f32 %v979_v19, %v974_v59 }
 0xed5   :  { %983 = vrot.lane.b32.xlu1 %v981_v61, %s1511_s21  ;;  %v1134_v61 = vld [vmem:[#allocation4 + $0x30] sm:$0xff] }
 0xeda   :  { %v957_v63 = vpop.permute.xlu2 %956 }
 0xedb   :  { %v959_v0 = vmul.f32 %v957_v63, %v952_v22  ;;  %v1358_v63 = vld [vmem:[#allocation7] ss:$0 sm:$0xff] }
 0xedd   :  { %961 = vrot.lane.b32.xlu1 %v959_v0, %s1511_s21  ;;  %v1246_v0 = vpop.f32.mrf.mxu1 }
 0xf47   :  { %v984_v2 = vpop.permute.xlu1 %983 }
 0xf48   :  { %v986_v3 = vadd.f32 %v984_v2, %v976_v1 }
 0xf4a   :  { %1439 = vtanh.f32 %v986_v3 }
 0xf4f   :  { %v962_v9 = vpop.permute.xlu1 %961 }
 0xf50   :  { %v1440_v5 = vpop.eup %1439  ;;  %v964_v6 = vadd.f32 %v962_v9, %v954_v4  ;;  %v1249_v4 = vpop.f32.mrf.mxu1 }
 0xf51   :  { %989 = vrot.lane.b32.xlu0 %v1440_v5, %s1510_s20 }
 0xf52   :  { %1441 = vtanh.f32 %v964_v6 }
 0xf58   :  { %v1442_v10 = vpop.eup %1441 }
 0xf59   :  { %967 = vrot.lane.b32.xlu0 %v1442_v10, %s1510_s20  ;;  %v1252_v10 = vpop.f32.mrf.mxu1 }
 0xfc3   :  { %v990_v12 = vpop.permute.xlu0 %989 }
 0xfc4   :  { %v992_v7 = vmul.f32 %v990_v12, %v974_v59  ;;  %v1132_v59 = vld [vmem:[#allocation4 + $0x20] sm:$0xff] }
 0xfc6   :  { %1000 = vrot.lane.b32.xlu2 %v992_v7, %s1511_s21 }
 0xfcb   :  { %v968_v8 = vpop.permute.xlu0 %967 }
 0xfcc   :  { %v970_v14 = vmul.f32 %v968_v8, %v952_v22 }
 0xfce   :  { %994 = vrot.lane.b32.xlu1 %v970_v14, %s1511_s21  ;;  %v1255_v14 = vpop.f32.mrf.mxu1 }
0x1020   :  { %v1001_v11 = vpop.permute.xlu2 %1000 }
0x1021   :  { %1004 = vst.msk [vmem:[#allocation4 + $0x8] sm:$0xff] %vm210_vm1, %v1001_v11  ;;  %1332 = vmatmul.msk.f32.vlgmr.msra.gmra.mxu3 %vm210_vm1, %v1001_v11 }
0x1028   :  { %v1129_v58 = vld [vmem:[#allocation4 + $0x8] sm:$0xff] }
0x1040   :  { %v995_v13 = vpop.permute.xlu1 %994 }
0x1041   :  { %998 = vst.msk [vmem:[#allocation3 + $0x30] sm:$0xff] %vm210_vm1, %v995_v13  ;;  %1331 = vmatmul.msk.f32.vlgmr.msra.gmra.mxu2 %vm210_vm1, %v995_v13 }
0x1048   :  { %v1122_v15 = vld [vmem:[#allocation3 + $0x30] sm:$0xff] }
0x1049   :  { %1347 = vmatmul.msk.f32.gmra.mxu1 %vm210_vm1, %v1122_v15 }
0x10a4   :  { %v1057_v16 = vpop.f32.mrf.mxu3 }
0x10a5   :  { %v1060_v17 = vadd.f32 %v1057_v16, %v159_v21  ;;  %v1258_v21 = vpop.f32.mrf.mxu1 }
0x10a7   :  { %1443 = vtanh.f32 %v1060_v17  ;;  %v1083_v31 = vmul.f32 0.5, %v1060_v17 }
0x10ad   :  { %v1444_v24 = vpop.eup %1443 }
0x10ae   :  { %1090 = vrot.lane.b32.xlu2 %v1444_v24, %s1510_s20 }
0x10c4   :  { %v1030_v28 = vpop.f32.mrf.mxu2 }
0x10c5   :  { %v1033_v30 = vadd.f32 %v1030_v28, %v139_v26  ;;  %v1261_v26 = vpop.f32.mrf.mxu1 }
0x10c7   :  { %1445 = vtanh.f32 %v1033_v30  ;;  %v1061_v37 = vmul.f32 0.5, %v1033_v30 }
0x10c8   :  { %1447 = vtanh.f32 %v1083_v31 }
0x10c9   :  { %1449 = vtanh.f32 %v1061_v37 }
0x10cd   :  { %v1446_v20 = vpop.eup %1445  ;;  %v1264_v31 = vpop.f32.mrf.mxu1 }
0x10ce   :  { %1068 = vrot.lane.b32.xlu1 %v1446_v20, %s1510_s20  ;;  %v1448_v32 = vpop.eup %1447 }
0x10cf   :  { %v1085_v33 = vmul.f32 0.5, %v1448_v32  ;;  %v1450_v38 = vpop.eup %1449 }
0x10d0   :  { %v1063_v39 = vmul.f32 0.5, %v1450_v38 }
0x10d1   :  { %v1086_v29 = vadd.f32 0.5, %v1085_v33 }
0x10d2   :  { %v1064_v25 = vadd.f32 0.5, %v1063_v39 }
0x10d3   :  { %v1088_v40 = vmul.f32 %v1086_v29, %v986_v3 }
0x10d4   :  { %v1066_v44 = vmul.f32 %v1064_v25, %v964_v6 }
0x1108   :  { %v1091_v34 = vpop.permute.xlu2 %1090 }
0x1109   :  { %v1093_v36 = vmul.f32 %v1091_v34, %v1086_v29 }
0x110b   :  { %1095 = vrot.lane.b32.xlu0 %v1093_v36, %s1511_s21 }
0x1140   :  { %v1069_v27 = vpop.permute.xlu1 %1068 }
0x1141   :  { %v1071_v23 = vmul.f32 %v1069_v27, %v1064_v25 }
0x1143   :  { %1073 = vrot.lane.b32.xlu0 %v1071_v23, %s1511_s21 }
0x117d   :  { %v1096_v41 = vpop.permute.xlu0 %1095 }
0x117e   :  { %v1098_v42 = vadd.f32 %v1096_v41, %v1088_v40 }
0x1180   :  { %1451 = vtanh.f32 %v1098_v42 }
0x1186   :  { %v1452_v43 = vpop.eup %1451 }
0x1187   :  { %1101 = vrot.lane.b32.xlu2 %v1452_v43, %s1510_s20 }
0x11b5   :  { %v1074_v45 = vpop.permute.xlu0 %1073 }
0x11b6   :  { %v1076_v46 = vadd.f32 %v1074_v45, %v1066_v44 }
0x11b8   :  { %1453 = vtanh.f32 %v1076_v46 }
0x11be   :  { %v1454_v47 = vpop.eup %1453 }
0x11bf   :  { %1079 = vrot.lane.b32.xlu2 %v1454_v47, %s1510_s20 }
0x11e1   :  { %v1102_v48 = vpop.permute.xlu2 %1101 }
0x11e2   :  { %v1104_v49 = vmul.f32 %v1102_v48, %v1086_v29 }
0x11e4   :  { %1112 = vrot.lane.b32.xlu1 %v1104_v49, %s1511_s21 }
0x1219   :  { %v1080_v54 = vpop.permute.xlu2 %1079 }
0x121a   :  { %v1082_v18 = vmul.f32 %v1080_v54, %v1064_v25 }
0x121c   :  { %1106 = vrot.lane.b32.xlu0 %v1082_v18, %s1511_s21 }
0x1256   :  { %v1113_v57 = vpop.permute.xlu1 %1112 }
0x1257   :  { %1115 = vst.msk [vmem:[#allocation4] sm:$0xff] %vm210_vm1, %v1113_v57 }
0x125e   :  { %v1128_v56 = vld [vmem:[#allocation4] sm:$0xff] }
0x125f   :  { %1333 = vmatmul.msk.f32.vlgmr.msrb.gmra.mxu0 %vm210_vm1, %v1128_v56 }
0x1267   :  { %1334 = vmatmul.msk.f32.gmra.mxu0 %vm210_vm1, %v1129_v58 }
0x126f   :  { %1335 = vmatmul.msk.f32.gmra.mxu0 %vm210_vm1, %v1130_v52 }
0x1277   :  { %1336 = vmatmul.msk.f32.gmra.mxu0 %vm210_vm1, %v1131_v35 }
0x127f   :  { %1337 = vmatmul.msk.f32.gmra.mxu0 %vm210_vm1, %v1132_v59 }
0x1287   :  { %1338 = vmatmul.msk.f32.gmra.mxu0 %vm210_vm1, %v1133_v60 }
0x128e   :  { %v1107_v19 = vpop.permute.xlu0 %1106 }
0x128f   :  { %1110 = vst.msk [vmem:[#allocation3 + $0x38] sm:$0xff] %vm210_vm1, %v1107_v19  ;;  %1339 = vmatmul.msk.f32.gmra.mxu0 %vm210_vm1, %v1134_v61 }
0x1296   :  { %v1123_v22 = vld [vmem:[#allocation3 + $0x38] sm:$0xff] }
0x1297   :  { %1340 = vmatmul.msk.f32.gmra.mxu0 %vm210_vm1, %v1135_v62  ;;  %1348 = vmatmul.msk.f32.gmra.mxu1 %vm210_vm1, %v1123_v22 }
0x12dc   :  { %v1181_v1 = vpop.f32.mrf.mxu0 }
0x12dd   :  { %v1247_v2 = vadd.f32 %v1246_v0, %v1181_v1 }
0x12df   :  { %v1274_v3 = vadd.f32 %v1358_v63, %v1247_v2 }
0x12e1   :  { %1282 = vst [vmem:[%s1951_s8] sm:$0xff] %v1274_v3 }
0x12e4   :  { %v1184_v9 = vpop.f32.mrf.mxu0 }
0x12e5   :  { %v1250_v5 = vadd.f32 %v1249_v4, %v1184_v9 }
0x12e7   :  { %v1275_v6 = vadd.f32 %v1358_v63, %v1250_v5 }
0x12e9   :  { %1283 = vst [vmem:[%s1951_s8 + $0x8] sm:$0xff] %v1275_v6 }
0x12ec   :  { %v1187_v12 = vpop.f32.mrf.mxu0 }
0x12ed   :  { %v1253_v7 = vadd.f32 %v1252_v10, %v1187_v12 }
0x12ef   :  { %v1276_v8 = vadd.f32 %v1358_v63, %v1253_v7 }
0x12f1   :  { %1284 = vst [vmem:[%s1951_s8 + $0x10] sm:$0xff] %v1276_v8 }
0x12f4   :  { %v1190_v11 = vpop.f32.mrf.mxu0 }
0x12f5   :  { %v1256_v13 = vadd.f32 %v1255_v14, %v1190_v11 }
0x12f7   :  { %v1277_v15 = vadd.f32 %v1358_v63, %v1256_v13 }
0x12f9   :  { %1285 = vst [vmem:[%s1951_s8 + $0x18] sm:$0xff] %v1277_v15 }
0x12fc   :  { %v1193_v16 = vpop.f32.mrf.mxu0 }
0x12fd   :  { %v1259_v17 = vadd.f32 %v1258_v21, %v1193_v16 }
0x12ff   :  { %v1278_v24 = vadd.f32 %v1358_v63, %v1259_v17 }
0x1301   :  { %1286 = vst [vmem:[%s1951_s8 + $0x20] sm:$0xff] %v1278_v24 }
0x1304   :  { %v1196_v28 = vpop.f32.mrf.mxu0 }
0x1305   :  { %v1262_v30 = vadd.f32 %v1261_v26, %v1196_v28 }
0x1307   :  { %v1279_v20 = vadd.f32 %v1358_v63, %v1262_v30 }
0x1309   :  { %1287 = vst [vmem:[%s1951_s8 + $0x28] sm:$0xff] %v1279_v20 }
0x130c   :  { %v1199_v32 = vpop.f32.mrf.mxu0 }
0x130d   :  { %v1265_v33 = vadd.f32 %v1264_v31, %v1199_v32 }
0x130f   :  { %v1280_v29 = vadd.f32 %v1358_v63, %v1265_v33 }
0x1311   :  { %1288 = vst [vmem:[%s1951_s8 + $0x30] sm:$0xff] %v1280_v29 }
0x1314   :  { %v1202_v34 = vpop.f32.mrf.mxu0  ;;  %v1267_v36 = vpop.f32.mrf.mxu1 }
0x1315   :  { %v1268_v37 = vadd.f32 %v1267_v36, %v1202_v34 }
0x1317   :  { %v1281_v38 = vadd.f32 %v1358_v63, %v1268_v37 }
0x1319   :  { %1289 = vst [vmem:[%s1951_s8 + $0x38] sm:$0xff] %v1281_v38 }
0x131a   :  { %1294 = vsyncpa [#allocation6], 1 }
0x131b   :  { %1295 = vsyncpa [#allocation8], 1 }

// kernel: crnn_head_forward.5
= control target key start
LH: loop header
LB: loop body
LE: loop exit
PB: predicated region body
PF: predicated region fallthrough
CT: control target
= control target key end

     0   :  { %13 = vsyncpa [#allocation6], 0  ;;  %s1966_s0 = inlined_call_operand.vmem [shape: f32[64,128], index: 0, kind: input, shape index: {}]   ;;  %s1967_s1 = inlined_call_operand.hbm [shape: f32[128,256], index: 1, kind: input, shape index: {}]   ;;  %s1968_s2 = inlined_call_operand.vmem [shape: f32[1,256], index: 2, kind: input, shape index: {}]   ;;  %s1969_s3 = inlined_call_operand.vmem [shape: f32[32,128], index: 3, kind: input, shape index: {}]   ;;  %s1970_s4 = inlined_call_operand.vmem [shape: f32[32,128], index: 4, kind: input, shape index: {}]   ;;  %s1971_s5 = inlined_call_operand.vmem [shape: f32[32,128], index: 5, kind: input, shape index: {}]   ;;  %s1972_s6 = inlined_call_operand.hbm [shape: f32[32,128], index: 6, kind: input, shape index: {}]   ;;  %s1973_s7 = inlined_call_operand.hbm [shape: f32[1,128], index: 7, kind: input, shape index: {}]   ;;  %s1974_s8 = inlined_call_operand.vmem [shape: f32[64,128], index: 8, kind: output, shape index: {}]  }
   0x1   :  { %14 = vsyncpa [#allocation8], 0  ;;  %s42_s29 = sshll.u32 %s1972_s6, 4  ;;  %s1544_s30 = smov [#allocation7]   ;;  %s43_s29 = int_to_ptr.hbm [resolvable:$true] %s42_s29 }
   0x2   :  { %s44_s9 = sshll.u32 %s1544_s30, 4  ;;  %s21_s12 = sshll.u32 %s1967_s1, 4  ;;  %s45_s9 = int_to_ptr.vmem [resolvable:$true] %s44_s9  ;;  %s22_s12 = int_to_ptr.hbm [resolvable:$true] %s21_s12 }
   0x3   :  { %s1545_s13 = smov 128   ;;  %s1546_s14 = smov 8  }
   0x4   :  { %50 = dma.hbm_to_vmem [thread:$0]  %s43_s29, 512, %s45_s9, [#allocation8], %s1545_s13, %s1545_s13, %s1546_s14  }
   0x5   :  { %s1547_s15 = smov [#allocation5]   ;;  %s1548_s17 = smov 256  }
   0x6   :  { %s23_s16 = sshll.u32 %s1547_s15, 4  ;;  %s1549_s18 = smov 16   ;;  %s24_s16 = int_to_ptr.vmem [resolvable:$true] %s23_s16 }
   0x7   :  { %29 = dma.hbm_to_vmem [thread:$0]  %s22_s12, 4096, %s24_s16, [#allocation6], %s1548_s17, %s1548_s17, %s1549_s18  }
   0x8   :  { %s56_s20 = sshll.u32 %s1973_s7, 4  ;;  %s1550_s21 = smov [#allocation9]   ;;  %s57_s20 = int_to_ptr.hbm [resolvable:$true] %s56_s20 }
   0x9   :  { %s58_s22 = sshll.u32 %s1550_s21, 4  ;;  %s59_s22 = int_to_ptr.vmem [resolvable:$true] %s58_s22 }
   0xa   :  { %61 = dma.hbm_to_vmem [thread:$0]  %s57_s20, 16, %s59_s22, [#allocation8]  }
   0xb   :  { %1540 = dma.done.wait [#allocation6], 4096  }
   0xc   :  { %1541 = vsyncadd [#allocation6], 4294963200 }
   0xd   :  { %1542 = dma.done.wait [#allocation8], 528  }
   0xe   :  { %1543 = vsyncadd [#allocation8], 4294966768  ;;  %v113_v0 = vld [vmem:[#allocation5 + $0xf8] sm:$0xff]  ;;  %v111_v1 = vld [vmem:[#allocation5 + $0xe8] sm:$0xff]  ;;  %v1551_v36 = vmov 0.0   ;;  %vm230_vm0 = vcmask 261120  }
   0xf   :  { %161 = vmatpush.msra.mxu1 %v113_v0  ;;  %v109_v2 = vld [vmem:[#allocation5 + $0xd8] sm:$0xff]  ;;  %v107_v3 = vld [vmem:[#allocation5 + $0xc8] sm:$0xff]  ;;  %v1611_v16 = vld [vmem:[%s1966_s0] sm:$0xff] }
  0x10   :  { %v105_v4 = vld [vmem:[#allocation5 + $0xb8] sm:$0xff]  ;;  %v103_v5 = vld [vmem:[#allocation5 + $0xa8] sm:$0xff]  ;;  %v112_v17 = vld [vmem:[#allocation5 + $0xf0] sm:$0xff] }
  0x11   :  { %162 = vmatpush.msra.mxu1 %v111_v1  ;;  %v101_v6 = vld [vmem:[#allocation5 + $0x98] sm:$0xff]  ;;  %v99_v7 = vld [vmem:[#allocation5 + $0x88] sm:$0xff]  ;;  %v110_v18 = vld [vmem:[#allocation5 + $0xe0] sm:$0xff]  ;;  %120 = vmatpush.msra.mxu0 %v112_v17 }
  0x12   :  { %v97_v8 = vld [vmem:[#allocation5 + $0x78] sm:$0xff]  ;;  %v95_v9 = vld [vmem:[#allocation5 + $0x68] sm:$0xff]  ;;  %v108_v19 = vld [vmem:[#allocation5 + $0xd0] sm:$0xff] }
  0x13   :  { %163 = vmatpush.msra.mxu1 %v109_v2  ;;  %v93_v10 = vld [vmem:[#allocation5 + $0x58] sm:$0xff]  ;;  %v91_v11 = vld [vmem:[#allocation5 + $0x48] sm:$0xff]  ;;  %121 = vmatpush.msra.mxu0 %v110_v18  ;;  %v106_v20 = vld [vmem:[#allocation5 + $0xc0] sm:$0xff] }
  0x14   :  { %v89_v12 = vld [vmem:[#allocation5 + $0x38] sm:$0xff]  ;;  %v87_v13 = vld [vmem:[#allocation5 + $0x28] sm:$0xff]  ;;  %v104_v22 = vld [vmem:[#allocation5 + $0xb0] sm:$0xff] }
  0x15   :  { %164 = vmatpush.msra.mxu1 %v107_v3  ;;  %v85_v14 = vld [vmem:[#allocation5 + $0x18] sm:$0xff]  ;;  %v83_v15 = vld [vmem:[#allocation5 + $0x8] sm:$0xff]  ;;  %122 = vmatpush.msra.mxu0 %v108_v19  ;;  %v102_v23 = vld [vmem:[#allocation5 + $0xa0] sm:$0xff] }
  0x16   :  { %v1617_v21 = vld [vmem:[%s1966_s0 + $0x8] sm:$0xff]  ;;  %v1623_v24 = vld [vmem:[%s1970_s4 + $0x18] sm:$0xff]  ;;  %v1628_v25 = vld [vmem:[%s1970_s4 + $0x10] sm:$0xff] }
  0x17   :  { %165 = vmatpush.msra.mxu1 %v105_v4  ;;  %123 = vmatpush.msra.mxu0 %v106_v20  ;;  %v100_v26 = vld [vmem:[#allocation5 + $0x90] sm:$0xff]  ;;  %v98_v27 = vld [vmem:[#allocation5 + $0x80] sm:$0xff]  ;;  %v1638_v30 = vld [vmem:[%s1970_s4 + $0x8] sm:$0xff] }
  0x18   :  { %271 = vmatpush.msra.mxu3 %v1623_v24  ;;  %v76_v28 = vld [vmem:[%s1966_s0 + $0x10] sm:$0xff]  ;;  %v94_v31 = vld [vmem:[#allocation5 + $0x60] sm:$0xff]  ;;  %v1649_v33 = vld [vmem:[%s1969_s3 + $0x18] sm:$0xff] }
  0x19   :  { %166 = vmatpush.msra.mxu1 %v103_v5  ;;  %124 = vmatpush.msra.mxu0 %v104_v22  ;;  %v96_v29 = vld [vmem:[#allocation5 + $0x70] sm:$0xff]  ;;  %v1644_v32 = vld [vmem:[%s1970_s4] sm:$0xff]  ;;  %v77_v38 = vld [vmem:[%s1966_s0 + $0x18] sm:$0xff] }
  0x1a   :  { %272 = vmatpush.msra.mxu3 %v1628_v25  ;;  %v92_v34 = vld [vmem:[#allocation5 + $0x50] sm:$0xff]  ;;  %246 = vmatpush.msra.mxu2 %v1649_v33  ;;  %v90_v37 = vld [vmem:[#allocation5 + $0x40] sm:$0xff]  ;;  %v1667_v40 = vld [vmem:[%s1969_s3 + $0x8] sm:$0xff] }
  0x1b   :  { %167 = vmatpush.msra.mxu1 %v101_v6  ;;  %125 = vmatpush.msra.mxu0 %v102_v23  ;;  %v1655_v35 = vld [vmem:[%s1969_s3 + $0x10] sm:$0xff]  ;;  %v86_v41 = vld [vmem:[#allocation5 + $0x20] sm:$0xff]  ;;  %v79_v46 = vld [vmem:[%s1966_s0 + $0x28] sm:$0xff] }
  0x1c   :  { %273 = vmatpush.msra.mxu3 %v1638_v30  ;;  %247 = vmatpush.msra.mxu2 %v1655_v35  ;;  %v88_v39 = vld [vmem:[#allocation5 + $0x30] sm:$0xff]  ;;  %v1673_v42 = vld [vmem:[%s1969_s3] sm:$0xff]  ;;  %v81_v48 = vld [vmem:[%s1966_s0 + $0x38] sm:$0xff] }
  0x1d   :  { %168 = vmatpush.msra.mxu1 %v99_v7  ;;  %126 = vmatpush.msra.mxu0 %v100_v26  ;;  %v84_v43 = vld [vmem:[#allocation5 + $0x10] sm:$0xff]  ;;  %v82_v44 = vld [vmem:[#allocation5] sm:$0xff] }
  0x1e   :  { %274 = vmatpush.msra.mxu3 %v1644_v32  ;;  %248 = vmatpush.msra.mxu2 %v1667_v40  ;;  %v78_v45 = vld [vmem:[%s1966_s0 + $0x20] sm:$0xff]  ;;  %v80_v47 = vld [vmem:[%s1966_s0 + $0x30] sm:$0xff]  ;;  %s1552_s0 = smov 64  }
  0x1f   :  { %169 = vmatpush.msra.mxu1 %v97_v8  ;;  %127 = vmatpush.msra.mxu0 %v98_v27  ;;  %v114_v49 = vld [vmem:[%s1968_s2] sm:$0x3]  ;;  %s1553_s2 = smov 32  }
  0x20   :  { %275 = vmatmul.f32.vlgmr.msra.gmra.mxu3 %v1551_v36  ;;  %249 = vmatpush.msra.mxu2 %v1673_v42  ;;  %v117_v50 = vperm.slane %v114_v49, 1  ;;  %v1721_v2 = vperm.slane %v114_v49, 0 }
  0x21   :  { %170 = vmatpush.msra.mxu1 %v95_v9  ;;  %128 = vmatpush.msra.mxu0 %v96_v29 }
  0x22   :  { %388 = vmatpush.msrb.mxu3 %v1623_v24  ;;  %250 = vmatmul.f32.vlgmr.msra.gmra.mxu2 %v1551_v36 }
  0x23   :  { %171 = vmatpush.msra.mxu1 %v93_v10  ;;  %129 = vmatpush.msra.mxu0 %v94_v31 }
  0x24   :  { %389 = vmatpush.msrb.mxu3 %v1628_v25  ;;  %361 = vmatpush.msrb.mxu2 %v1649_v33 }
  0x25   :  { %172 = vmatpush.msra.mxu1 %v91_v11  ;;  %130 = vmatpush.msra.mxu0 %v92_v34 }
  0x26   :  { %390 = vmatpush.msrb.mxu3 %v1638_v30  ;;  %362 = vmatpush.msrb.mxu2 %v1655_v35 }
  0x27   :  { %173 = vmatpush.msra.mxu1 %v89_v12  ;;  %131 = vmatpush.msra.mxu0 %v90_v37 }
  0x28   :  { %391 = vmatpush.msrb.mxu3 %v1644_v32  ;;  %363 = vmatpush.msrb.mxu2 %v1667_v40 }
  0x29   :  { %174 = vmatpush.msra.mxu1 %v87_v13  ;;  %132 = vmatpush.msra.mxu0 %v88_v39 }
  0x2a   :  { %506 = vmatpush.msra.mxu3 %v1623_v24  ;;  %364 = vmatpush.msrb.mxu2 %v1673_v42 }
  0x2b   :  { %175 = vmatpush.msra.mxu1 %v85_v14  ;;  %133 = vmatpush.msra.mxu0 %v86_v41 }
  0x2c   :  { %507 = vmatpush.msra.mxu3 %v1628_v25  ;;  %479 = vmatpush.msra.mxu2 %v1649_v33 }
  0x2d   :  { %176 = vmatpush.msra.mxu1 %v83_v15  ;;  %134 = vmatpush.msra.mxu0 %v84_v43 }
  0x2e   :  { %177 = vmatmul.f32.vlgmr.msra.gmra.mxu1 %v1611_v16  ;;  %508 = vmatpush.msra.mxu3 %v1638_v30 }
  0x2f   :  { %135 = vmatpush.msra.mxu0 %v82_v44  ;;  %480 = vmatpush.msra.mxu2 %v1655_v35  ;;  %v1741_v44 = vld [vmem:[%s1971_s5 + $0x18] sm:$0xff] }
  0x30   :  { %136 = vmatmul.f32.vlgmr.msra.gmra.mxu0 %v1611_v16  ;;  %509 = vmatpush.msra.mxu3 %v1644_v32 }
  0x31   :  { %481 = vmatpush.msra.mxu2 %v1667_v40  ;;  %1261 = vmatpush.msrb.mxu1 %v1741_v44 }
  0x33   :  { %482 = vmatpush.msra.mxu2 %v1673_v42 }
  0x36   :  { %180 = vmatmul.f32.gmra.mxu1 %v1617_v21 }
  0x38   :  { %139 = vmatmul.f32.gmra.mxu0 %v1617_v21 }
  0x3e   :  { %183 = vmatmul.f32.gmra.mxu1 %v76_v28 }
  0x40   :  { %142 = vmatmul.f32.gmra.mxu0 %v76_v28 }
  0x46   :  { %186 = vmatmul.f32.gmra.mxu1 %v77_v38 }
  0x48   :  { %145 = vmatmul.f32.gmra.mxu0 %v77_v38 }
  0x4e   :  { %189 = vmatmul.f32.gmra.mxu1 %v78_v45 }
  0x50   :  { %148 = vmatmul.f32.gmra.mxu0 %v78_v45  ;;  %v1746_v45 = vld [vmem:[%s1971_s5 + $0x10] sm:$0xff] }
  0x51   :  { %1262 = vmatpush.msrb.mxu1 %v1746_v45 }
  0x56   :  { %192 = vmatmul.f32.gmra.mxu1 %v79_v46 }
  0x58   :  { %151 = vmatmul.f32.gmra.mxu0 %v79_v46  ;;  %v1752_v46 = vld [vmem:[%s1971_s5 + $0x8] sm:$0xff] }
  0x59   :  { %1263 = vmatpush.msrb.mxu1 %v1752_v46 }
  0x5e   :  { %195 = vmatmul.f32.gmra.mxu1 %v80_v47 }
  0x60   :  { %154 = vmatmul.f32.gmra.mxu0 %v80_v47  ;;  %v1758_v47 = vld [vmem:[%s1971_s5] sm:$0xff] }
  0x61   :  { %1264 = vmatpush.msrb.mxu1 %v1758_v47 }
  0x66   :  { %198 = vmatmul.f32.gmra.mxu1 %v81_v48 }
  0x68   :  { %157 = vmatmul.f32.gmra.mxu0 %v81_v48 }
  0xa3   :  { %v276_v1 = vpop.f32.mrf.mxu3 }
  0xa5   :  { %v251_v8 = vpop.f32.mrf.mxu2 }
  0xab   :  { %v178_v51 = vpop.f32.mrf.mxu1 }
  0xac   :  { %v1707_v52 = vadd.f32 %v178_v51, %v117_v50 }
  0xad   :  { %v137_v4 = vpop.f32.mrf.mxu0 }
  0xae   :  { %v138_v7 = vadd.f32 %v137_v4, %v1721_v2 }
  0xb0   :  { %v254_v9 = vadd.f32 %v251_v8, %v138_v7 }
  0xb2   :  { %v280_v13 = vmul.f32 0.5, %v254_v9 }
  0xb3   :  { %v181_v53 = vpop.f32.mrf.mxu1 }
  0xb4   :  { %v1709_v54 = vadd.f32 %v181_v53, %v117_v50 }
  0xbb   :  { %v184_v55 = vpop.f32.mrf.mxu1 }
  0xbc   :  { %v1711_v56 = vadd.f32 %v184_v55, %v117_v50  ;;  %v140_v55 = vpop.f32.mrf.mxu0 }
  0xc3   :  { %v187_v57 = vpop.f32.mrf.mxu1 }
  0xc4   :  { %v1713_v58 = vadd.f32 %v187_v57, %v117_v50  ;;  %v141_v57 = vadd.f32 %v140_v55, %v1721_v2 }
  0xcb   :  { %v190_v59 = vpop.f32.mrf.mxu1 }
  0xcc   :  { %v1715_v60 = vadd.f32 %v190_v59, %v117_v50 }
  0xd3   :  { %v193_v61 = vpop.f32.mrf.mxu1 }
  0xd4   :  { %v1717_v62 = vadd.f32 %v193_v61, %v117_v50 }
  0xdb   :  { %v196_v63 = vpop.f32.mrf.mxu1 }
  0xdc   :  { %v1719_v0 = vadd.f32 %v196_v63, %v117_v50 }
  0xe3   :  { %v199_v3 = vpop.f32.mrf.mxu1 }
  0xe4   :  { %v200_v5 = vadd.f32 %v199_v3, %v117_v50 }
  0xe6   :  { %v279_v6 = vadd.f32 %v276_v1, %v200_v5 }
  0xe8   :  { %1372 = vtanh.f32 %v279_v6  ;;  %v302_v12 = vmul.f32 0.5, %v279_v6 }
  0xe9   :  { %1374 = vtanh.f32 %v254_v9 }
  0xea   :  { %1376 = vtanh.f32 %v302_v12 }
  0xeb   :  { %1378 = vtanh.f32 %v280_v13 }
  0xee   :  { %v1373_v10 = vpop.eup %1372 }
  0xef   :  { %309 = vrot.lane.b32.xlu0 %v1373_v10, %s1552_s0  ;;  %v1375_v11 = vpop.eup %1374 }
  0xf0   :  { %v1377_v14 = vpop.eup %1376 }
  0xf1   :  { %v304_v15 = vmul.f32 0.5, %v1377_v14  ;;  %v1379_v17 = vpop.eup %1378 }
  0xf2   :  { %v282_v20 = vmul.f32 0.5, %v1379_v17 }
  0xf3   :  { %v305_v16 = vadd.f32 0.5, %v304_v15 }
  0xf4   :  { %v283_v21 = vadd.f32 0.5, %v282_v20 }
  0xf5   :  { %v307_v26 = vmul.f32 0.0, %v305_v16 }
  0xf6   :  { %v285_v29 = vmul.f32 0.0, %v283_v21 }
  0xf7   :  { %287 = vrot.lane.b32.xlu0 %v1375_v11, %s1552_s0 }
 0x161   :  { %v310_v18 = vpop.permute.xlu0 %309 }
 0x162   :  { %v312_v19 = vmul.f32 %v310_v18, %v305_v16 }
 0x164   :  { %314 = vrot.lane.b32.xlu1 %v312_v19, %s1553_s2 }
 0x169   :  { %v288_v22 = vpop.permute.xlu0 %287 }
 0x16a   :  { %v290_v23 = vmul.f32 %v288_v22, %v283_v21 }
 0x16c   :  { %292 = vrot.lane.b32.xlu1 %v290_v23, %s1553_s2 }
 0x1d6   :  { %v315_v27 = vpop.permute.xlu1 %314 }
 0x1d7   :  { %v1728_v28 = vadd.f32 %v315_v27, %v307_v26 }
 0x1d9   :  { %1380 = vtanh.f32 %v1728_v28 }
 0x1de   :  { %v293_v31 = vpop.permute.xlu1 %292 }
 0x1df   :  { %v1381_v34 = vpop.eup %1380  ;;  %v1731_v36 = vadd.f32 %v293_v31, %v285_v29 }
 0x1e0   :  { %320 = vrot.lane.b32.xlu2 %v1381_v34, %s1552_s0 }
 0x1e1   :  { %1382 = vtanh.f32 %v1731_v36 }
 0x1e7   :  { %v1383_v37 = vpop.eup %1382 }
 0x1e8   :  { %298 = vrot.lane.b32.xlu2 %v1383_v37, %s1552_s0 }
 0x23a   :  { %v321_v38 = vpop.permute.xlu2 %320 }
 0x23b   :  { %v323_v39 = vmul.f32 %v321_v38, %v305_v16  ;;  %v143_v38 = vpop.f32.mrf.mxu0 }
 0x23d   :  { %330 = vrot.lane.b32.xlu0 %v323_v39, %s1553_s2  ;;  %v144_v39 = vadd.f32 %v143_v38, %v1721_v2 }
 0x242   :  { %v299_v41 = vpop.permute.xlu2 %298 }
 0x243   :  { %v301_v43 = vmul.f32 %v299_v41, %v283_v21 }
 0x245   :  { %325 = vrot.lane.b32.xlu1 %v301_v43, %s1553_s2 }
 0x2af   :  { %v331_v48 = vpop.permute.xlu0 %330 }
 0x2b0   :  { %334 = vst.msk [vmem:[#allocation4 + $0x38] sm:$0xff] %vm230_vm0, %v331_v48  ;;  %1324 = vmatmul.msk.f32.vlgmr.msrb.gmra.mxu3 %vm230_vm0, %v331_v48 }
 0x2b1   :  { %624 = vmatpush.msrb.mxu3 %v1623_v24 }
 0x2b3   :  { %625 = vmatpush.msrb.mxu3 %v1628_v25 }
 0x2b5   :  { %626 = vmatpush.msrb.mxu3 %v1638_v30 }
 0x2b7   :  { %v326_v49 = vpop.permute.xlu1 %325  ;;  %627 = vmatpush.msrb.mxu3 %v1644_v32 }
 0x2b8   :  { %328 = vst.msk [vmem:[#allocation3] sm:$0xff] %vm230_vm0, %v326_v49  ;;  %1323 = vmatmul.msk.f32.vlgmr.msrb.gmra.mxu2 %vm230_vm0, %v326_v49 }
 0x2b9   :  { %597 = vmatpush.msrb.mxu2 %v1649_v33 }
 0x2bb   :  { %598 = vmatpush.msrb.mxu2 %v1655_v35 }
 0x2bd   :  { %599 = vmatpush.msrb.mxu2 %v1667_v40 }
 0x2bf   :  { %v1136_v50 = vld [vmem:[#allocation3] sm:$0xff]  ;;  %600 = vmatpush.msrb.mxu2 %v1673_v42 }
 0x2c0   :  { %1345 = vmatmul.msk.f32.vlgmr.msrb.gmra.mxu1 %vm230_vm0, %v1136_v50 }
 0x333   :  { %v393_v51 = vpop.f32.mrf.mxu3 }
 0x334   :  { %v396_v53 = vadd.f32 %v393_v51, %v1719_v0 }
 0x336   :  { %1384 = vtanh.f32 %v396_v53  ;;  %v419_v3 = vmul.f32 0.5, %v396_v53 }
 0x33b   :  { %v366_v59 = vpop.f32.mrf.mxu2 }
 0x33c   :  { %v1385_v61 = vpop.eup %1384  ;;  %v369_v63 = vadd.f32 %v366_v59, %v141_v57 }
 0x33d   :  { %426 = vrot.lane.b32.xlu2 %v1385_v61, %s1552_s0 }
 0x33e   :  { %1386 = vtanh.f32 %v369_v63  ;;  %v397_v8 = vmul.f32 0.5, %v369_v63 }
 0x33f   :  { %1388 = vtanh.f32 %v419_v3 }
 0x340   :  { %1390 = vtanh.f32 %v397_v8 }
 0x344   :  { %v1387_v1 = vpop.eup %1386 }
 0x345   :  { %404 = vrot.lane.b32.xlu0 %v1387_v1, %s1552_s0  ;;  %v1389_v4 = vpop.eup %1388 }
 0x346   :  { %v421_v5 = vmul.f32 0.5, %v1389_v4  ;;  %v1391_v9 = vpop.eup %1390 }
 0x347   :  { %v399_v10 = vmul.f32 0.5, %v1391_v9 }
 0x348   :  { %v422_v6 = vadd.f32 0.5, %v421_v5 }
 0x349   :  { %v400_v11 = vadd.f32 0.5, %v399_v10 }
 0x34a   :  { %v424_v14 = vmul.f32 %v422_v6, %v1728_v28 }
 0x34b   :  { %v402_v17 = vmul.f32 %v400_v11, %v1731_v36 }
 0x397   :  { %v427_v7 = vpop.permute.xlu2 %426 }
 0x398   :  { %v429_v0 = vmul.f32 %v427_v7, %v422_v6 }
 0x39a   :  { %431 = vrot.lane.b32.xlu1 %v429_v0, %s1553_s2 }
 0x3b7   :  { %v405_v12 = vpop.permute.xlu0 %404 }
 0x3b8   :  { %v407_v13 = vmul.f32 %v405_v12, %v400_v11 }
 0x3ba   :  { %409 = vrot.lane.b32.xlu2 %v407_v13, %s1553_s2 }
 0x40c   :  { %v432_v15 = vpop.permute.xlu1 %431 }
 0x40d   :  { %v434_v16 = vadd.f32 %v432_v15, %v424_v14 }
 0x40f   :  { %1392 = vtanh.f32 %v434_v16 }
 0x414   :  { %v410_v18 = vpop.permute.xlu2 %409 }
 0x415   :  { %v1393_v19 = vpop.eup %1392  ;;  %v412_v20 = vadd.f32 %v410_v18, %v402_v17 }
 0x416   :  { %437 = vrot.lane.b32.xlu0 %v1393_v19, %s1552_s0  ;;  %v146_v19 = vpop.f32.mrf.mxu0 }
 0x417   :  { %1394 = vtanh.f32 %v412_v20 }
 0x41d   :  { %v1395_v21 = vpop.eup %1394 }
 0x41e   :  { %415 = vrot.lane.b32.xlu1 %v1395_v21, %s1552_s0 }
 0x488   :  { %v438_v22 = vpop.permute.xlu0 %437 }
 0x489   :  { %v440_v23 = vmul.f32 %v438_v22, %v422_v6 }
 0x48b   :  { %448 = vrot.lane.b32.xlu2 %v440_v23, %s1553_s2 }
 0x490   :  { %v416_v26 = vpop.permute.xlu1 %415 }
 0x491   :  { %v418_v27 = vmul.f32 %v416_v26, %v400_v11 }
 0x493   :  { %442 = vrot.lane.b32.xlu0 %v418_v27, %s1553_s2 }
 0x4e5   :  { %v449_v28 = vpop.permute.xlu2 %448 }
 0x4e6   :  { %452 = vst.msk [vmem:[#allocation4 + $0x30] sm:$0xff] %vm230_vm0, %v449_v28  ;;  %1326 = vmatmul.msk.f32.vlgmr.msra.gmra.mxu3 %vm230_vm0, %v449_v28 }
 0x4e7   :  { %736 = vmatpush.msra.mxu3 %v1623_v24 }
 0x4e9   :  { %737 = vmatpush.msra.mxu3 %v1628_v25 }
 0x4eb   :  { %738 = vmatpush.msra.mxu3 %v1638_v30 }
 0x4ed   :  { %739 = vmatpush.msra.mxu3 %v1644_v32 }
 0x505   :  { %v443_v29 = vpop.permute.xlu0 %442 }
 0x506   :  { %446 = vst.msk [vmem:[#allocation3 + $0x8] sm:$0xff] %vm230_vm0, %v443_v29  ;;  %1325 = vmatmul.msk.f32.vlgmr.msra.gmra.mxu2 %vm230_vm0, %v443_v29 }
 0x507   :  { %709 = vmatpush.msra.mxu2 %v1649_v33 }
 0x509   :  { %710 = vmatpush.msra.mxu2 %v1655_v35 }
 0x50b   :  { %711 = vmatpush.msra.mxu2 %v1667_v40 }
 0x50d   :  { %v1137_v31 = vld [vmem:[#allocation3 + $0x8] sm:$0xff]  ;;  %712 = vmatpush.msra.mxu2 %v1673_v42 }
 0x50e   :  { %1346 = vmatmul.msk.f32.gmra.mxu1 %vm230_vm0, %v1137_v31 }
 0x569   :  { %v511_v34 = vpop.f32.mrf.mxu3 }
 0x56a   :  { %v514_v36 = vadd.f32 %v511_v34, %v1717_v62 }
 0x56c   :  { %1396 = vtanh.f32 %v514_v36  ;;  %v537_v49 = vmul.f32 0.5, %v514_v36 }
 0x572   :  { %v1397_v37 = vpop.eup %1396 }
 0x573   :  { %544 = vrot.lane.b32.xlu1 %v1397_v37, %s1552_s0 }
 0x589   :  { %v484_v41 = vpop.f32.mrf.mxu2 }
 0x58a   :  { %v487_v43 = vadd.f32 %v484_v41, %v144_v39 }
 0x58c   :  { %1398 = vtanh.f32 %v487_v43  ;;  %v515_v50 = vmul.f32 0.5, %v487_v43 }
 0x58d   :  { %1400 = vtanh.f32 %v537_v49 }
 0x58e   :  { %1402 = vtanh.f32 %v515_v50 }
 0x592   :  { %v1399_v48 = vpop.eup %1398 }
 0x593   :  { %522 = vrot.lane.b32.xlu2 %v1399_v48, %s1552_s0  ;;  %v1401_v51 = vpop.eup %1400 }
 0x594   :  { %v539_v53 = vmul.f32 0.5, %v1401_v51  ;;  %v1403_v55 = vpop.eup %1402 }
 0x595   :  { %v517_v61 = vmul.f32 0.5, %v1403_v55 }
 0x596   :  { %v540_v62 = vadd.f32 0.5, %v539_v53 }
 0x597   :  { %v518_v63 = vadd.f32 0.5, %v517_v61 }
 0x598   :  { %v542_v4 = vmul.f32 %v540_v62, %v434_v16 }
 0x599   :  { %v520_v7 = vmul.f32 %v518_v63, %v412_v20  ;;  %v147_v20 = vadd.f32 %v146_v19, %v1721_v2 }
 0x5e5   :  { %v545_v57 = vpop.permute.xlu1 %544 }
 0x5e6   :  { %v547_v59 = vmul.f32 %v545_v57, %v540_v62 }
 0x5e8   :  { %549 = vrot.lane.b32.xlu0 %v547_v59, %s1553_s2 }
 0x5ed   :  { %v523_v1 = vpop.permute.xlu2 %522 }
 0x5ee   :  { %v525_v3 = vmul.f32 %v523_v1, %v518_v63 }
 0x5f0   :  { %527 = vrot.lane.b32.xlu1 %v525_v3, %s1553_s2 }
 0x65a   :  { %v550_v5 = vpop.permute.xlu0 %549 }
 0x65b   :  { %v552_v6 = vadd.f32 %v550_v5, %v542_v4 }
 0x65d   :  { %1404 = vtanh.f32 %v552_v6 }
 0x662   :  { %v528_v0 = vpop.permute.xlu1 %527 }
 0x663   :  { %v1405_v8 = vpop.eup %1404  ;;  %v530_v9 = vadd.f32 %v528_v0, %v520_v7  ;;  %v149_v7 = vpop.f32.mrf.mxu0 }
 0x664   :  { %555 = vrot.lane.b32.xlu2 %v1405_v8, %s1552_s0  ;;  %v150_v0 = vadd.f32 %v149_v7, %v1721_v2 }
 0x665   :  { %1406 = vtanh.f32 %v530_v9 }
 0x66b   :  { %v1407_v10 = vpop.eup %1406 }
 0x66c   :  { %533 = vrot.lane.b32.xlu0 %v1407_v10, %s1552_s0 }
 0x6be   :  { %v556_v11 = vpop.permute.xlu2 %555 }
 0x6bf   :  { %v558_v12 = vmul.f32 %v556_v11, %v540_v62 }
 0x6c1   :  { %566 = vrot.lane.b32.xlu1 %v558_v12, %s1553_s2 }
 0x6de   :  { %v534_v13 = vpop.permute.xlu0 %533 }
 0x6df   :  { %v536_v14 = vmul.f32 %v534_v13, %v518_v63 }
 0x6e1   :  { %560 = vrot.lane.b32.xlu2 %v536_v14, %s1553_s2 }
 0x733   :  { %v567_v15 = vpop.permute.xlu1 %566 }
 0x734   :  { %570 = vst.msk [vmem:[#allocation4 + $0x28] sm:$0xff] %vm230_vm0, %v567_v15  ;;  %1328 = vmatmul.msk.f32.vlgmr.msrb.gmra.mxu3 %vm230_vm0, %v567_v15 }
 0x735   :  { %848 = vmatpush.msrb.mxu3 %v1623_v24 }
 0x737   :  { %849 = vmatpush.msrb.mxu3 %v1628_v25 }
 0x739   :  { %850 = vmatpush.msrb.mxu3 %v1638_v30 }
 0x73b   :  { %v561_v16 = vpop.permute.xlu2 %560  ;;  %851 = vmatpush.msrb.mxu3 %v1644_v32 }
 0x73c   :  { %564 = vst.msk [vmem:[#allocation3 + $0x10] sm:$0xff] %vm230_vm0, %v561_v16  ;;  %1327 = vmatmul.msk.f32.vlgmr.msrb.gmra.mxu2 %vm230_vm0, %v561_v16 }
 0x73d   :  { %821 = vmatpush.msrb.mxu2 %v1649_v33 }
 0x73f   :  { %822 = vmatpush.msrb.mxu2 %v1655_v35 }
 0x741   :  { %823 = vmatpush.msrb.mxu2 %v1667_v40 }
 0x743   :  { %824 = vmatpush.msrb.mxu2 %v1673_v42 }
 0x7b7   :  { %v629_v17 = vpop.f32.mrf.mxu3 }
 0x7b8   :  { %v632_v18 = vadd.f32 %v629_v17, %v1715_v60 }
 0x7ba   :  { %1408 = vtanh.f32 %v632_v18  ;;  %v655_v27 = vmul.f32 0.5, %v632_v18 }
 0x7bf   :  { %v602_v21 = vpop.f32.mrf.mxu2 }
 0x7c0   :  { %v1409_v22 = vpop.eup %1408  ;;  %v605_v23 = vadd.f32 %v602_v21, %v147_v20 }
 0x7c1   :  { %662 = vrot.lane.b32.xlu0 %v1409_v22, %s1552_s0 }
 0x7c2   :  { %1410 = vtanh.f32 %v605_v23  ;;  %v633_v28 = vmul.f32 0.5, %v605_v23 }
 0x7c3   :  { %1412 = vtanh.f32 %v655_v27 }
 0x7c4   :  { %1414 = vtanh.f32 %v633_v28 }
 0x7c8   :  { %v1411_v26 = vpop.eup %1410 }
 0x7c9   :  { %640 = vrot.lane.b32.xlu1 %v1411_v26, %s1552_s0  ;;  %v1413_v29 = vpop.eup %1412 }
 0x7ca   :  { %v657_v31 = vmul.f32 0.5, %v1413_v29  ;;  %v1415_v34 = vpop.eup %1414 }
 0x7cb   :  { %v635_v38 = vmul.f32 0.5, %v1415_v34 }
 0x7cc   :  { %v658_v60 = vadd.f32 0.5, %v657_v31 }
 0x7cd   :  { %v636_v39 = vadd.f32 0.5, %v635_v38 }
 0x7ce   :  { %v660_v48 = vmul.f32 %v658_v60, %v552_v6 }
 0x7cf   :  { %v638_v53 = vmul.f32 %v636_v39, %v530_v9 }
 0x833   :  { %v663_v36 = vpop.permute.xlu0 %662 }
 0x834   :  { %v665_v37 = vmul.f32 %v663_v36, %v658_v60 }
 0x836   :  { %667 = vrot.lane.b32.xlu2 %v665_v37, %s1553_s2 }
 0x83b   :  { %v641_v41 = vpop.permute.xlu1 %640 }
 0x83c   :  { %v643_v43 = vmul.f32 %v641_v41, %v636_v39 }
 0x83e   :  { %645 = vrot.lane.b32.xlu0 %v643_v43, %s1553_s2 }
 0x890   :  { %v668_v49 = vpop.permute.xlu2 %667 }
 0x891   :  { %v670_v50 = vadd.f32 %v668_v49, %v660_v48 }
 0x893   :  { %1416 = vtanh.f32 %v670_v50 }
 0x899   :  { %v1417_v51 = vpop.eup %1416 }
 0x89a   :  { %673 = vrot.lane.b32.xlu1 %v1417_v51, %s1552_s0 }
 0x8b0   :  { %v646_v62 = vpop.permute.xlu0 %645 }
 0x8b1   :  { %v648_v55 = vadd.f32 %v646_v62, %v638_v53 }
 0x8b3   :  { %1418 = vtanh.f32 %v648_v55 }
 0x8b9   :  { %v1419_v57 = vpop.eup %1418 }
 0x8ba   :  { %651 = vrot.lane.b32.xlu2 %v1419_v57, %s1552_s0 }
 0x90c   :  { %v674_v59 = vpop.permute.xlu1 %673 }
 0x90d   :  { %v676_v61 = vmul.f32 %v674_v59, %v658_v60 }
 0x90f   :  { %684 = vrot.lane.b32.xlu0 %v676_v61, %s1553_s2 }
 0x914   :  { %v652_v63 = vpop.permute.xlu2 %651 }
 0x915   :  { %v654_v1 = vmul.f32 %v652_v63, %v636_v39 }
 0x917   :  { %678 = vrot.lane.b32.xlu1 %v654_v1, %s1553_s2 }
 0x981   :  { %v685_v3 = vpop.permute.xlu0 %684 }
 0x982   :  { %688 = vst.msk [vmem:[#allocation4 + $0x20] sm:$0xff] %vm230_vm0, %v685_v3  ;;  %1330 = vmatmul.msk.f32.vlgmr.msra.gmra.mxu3 %vm230_vm0, %v685_v3 }
 0x983   :  { %960 = vmatpush.msra.mxu3 %v1623_v24 }
 0x985   :  { %961 = vmatpush.msra.mxu3 %v1628_v25 }
 0x987   :  { %962 = vmatpush.msra.mxu3 %v1638_v30 }
 0x989   :  { %v679_v4 = vpop.permute.xlu1 %678  ;;  %963 = vmatpush.msra.mxu3 %v1644_v32 }
 0x98a   :  { %682 = vst.msk [vmem:[#allocation3 + $0x18] sm:$0xff] %vm230_vm0, %v679_v4  ;;  %1329 = vmatmul.msk.f32.vlgmr.msra.gmra.mxu2 %vm230_vm0, %v679_v4 }
 0x98b   :  { %933 = vmatpush.msra.mxu2 %v1649_v33 }
 0x98d   :  { %934 = vmatpush.msra.mxu2 %v1655_v35 }
 0x98f   :  { %935 = vmatpush.msra.mxu2 %v1667_v40 }
 0x991   :  { %936 = vmatpush.msra.mxu2 %v1673_v42 }
 0xa05   :  { %v741_v5 = vpop.f32.mrf.mxu3 }
 0xa06   :  { %v744_v6 = vadd.f32 %v741_v5, %v1713_v58 }
 0xa08   :  { %1420 = vtanh.f32 %v744_v6  ;;  %v767_v12 = vmul.f32 0.5, %v744_v6 }
 0xa0d   :  { %v714_v8 = vpop.f32.mrf.mxu2 }
 0xa0e   :  { %v1421_v9 = vpop.eup %1420  ;;  %v717_v10 = vadd.f32 %v714_v8, %v150_v0 }
 0xa0f   :  { %774 = vrot.lane.b32.xlu2 %v1421_v9, %s1552_s0 }
 0xa10   :  { %1422 = vtanh.f32 %v717_v10  ;;  %v745_v17 = vmul.f32 0.5, %v717_v10 }
 0xa11   :  { %1424 = vtanh.f32 %v767_v12 }
 0xa12   :  { %1426 = vtanh.f32 %v745_v17 }
 0xa16   :  { %v1423_v11 = vpop.eup %1422 }
 0xa17   :  { %752 = vrot.lane.b32.xlu0 %v1423_v11, %s1552_s0  ;;  %v1425_v13 = vpop.eup %1424 }
 0xa18   :  { %v769_v14 = vmul.f32 0.5, %v1425_v13  ;;  %v1427_v18 = vpop.eup %1426 }
 0xa19   :  { %v747_v19 = vmul.f32 0.5, %v1427_v18 }
 0xa1a   :  { %v770_v15 = vadd.f32 0.5, %v769_v14 }
 0xa1b   :  { %v748_v20 = vadd.f32 0.5, %v747_v19 }
 0xa1c   :  { %v772_v23 = vmul.f32 %v770_v15, %v670_v50 }
 0xa1d   :  { %v750_v28 = vmul.f32 %v748_v20, %v648_v55 }
 0xa69   :  { %v775_v16 = vpop.permute.xlu2 %774 }
 0xa6a   :  { %v777_v58 = vmul.f32 %v775_v16, %v770_v15 }
 0xa6c   :  { %779 = vrot.lane.b32.xlu1 %v777_v58, %s1553_s2 }
 0xa89   :  { %v753_v21 = vpop.permute.xlu0 %752 }
 0xa8a   :  { %v755_v22 = vmul.f32 %v753_v21, %v748_v20 }
 0xa8c   :  { %757 = vrot.lane.b32.xlu2 %v755_v22, %s1553_s2 }
 0xade   :  { %v780_v26 = vpop.permute.xlu1 %779 }
 0xadf   :  { %v782_v27 = vadd.f32 %v780_v26, %v772_v23 }
 0xae1   :  { %1428 = vtanh.f32 %v782_v27 }
 0xae6   :  { %v758_v29 = vpop.permute.xlu2 %757 }
 0xae7   :  { %v1429_v31 = vpop.eup %1428  ;;  %v760_v60 = vadd.f32 %v758_v29, %v750_v28 }
 0xae8   :  { %785 = vrot.lane.b32.xlu0 %v1429_v31, %s1552_s0 }
 0xae9   :  { %1430 = vtanh.f32 %v760_v60 }
 0xaef   :  { %v1431_v34 = vpop.eup %1430 }
 0xaf0   :  { %763 = vrot.lane.b32.xlu1 %v1431_v34, %s1552_s0 }
 0xb5a   :  { %v786_v36 = vpop.permute.xlu0 %785 }
 0xb5b   :  { %v788_v37 = vmul.f32 %v786_v36, %v770_v15 }
 0xb5d   :  { %796 = vrot.lane.b32.xlu2 %v788_v37, %s1553_s2 }
 0xb62   :  { %v764_v38 = vpop.permute.xlu1 %763 }
 0xb63   :  { %v766_v39 = vmul.f32 %v764_v38, %v748_v20 }
 0xb65   :  { %790 = vrot.lane.b32.xlu0 %v766_v39, %s1553_s2 }
 0xbb7   :  { %v797_v41 = vpop.permute.xlu2 %796 }
 0xbb8   :  { %800 = vst.msk [vmem:[#allocation4 + $0x18] sm:$0xff] %vm230_vm0, %v797_v41  ;;  %1332 = vmatmul.msk.f32.vlgmr.msrb.gmra.mxu3 %vm230_vm0, %v797_v41 }
 0xbb9   :  { %1072 = vmatpush.msrb.mxu3 %v1623_v24 }
 0xbbb   :  { %1073 = vmatpush.msrb.mxu3 %v1628_v25 }
 0xbbd   :  { %1074 = vmatpush.msrb.mxu3 %v1638_v30 }
 0xbbf   :  { %1075 = vmatpush.msrb.mxu3 %v1644_v32  ;;  %v152_v32 = vpop.f32.mrf.mxu0 }
 0xbc0   :  { %v153_v48 = vadd.f32 %v152_v32, %v1721_v2 }
 0xbc7   :  { %v155_v58 = vpop.f32.mrf.mxu0 }
 0xbc8   :  { %v156_v17 = vadd.f32 %v155_v58, %v1721_v2 }
 0xbd7   :  { %v791_v43 = vpop.permute.xlu0 %790 }
 0xbd8   :  { %794 = vst.msk [vmem:[#allocation3 + $0x20] sm:$0xff] %vm230_vm0, %v791_v43  ;;  %1331 = vmatmul.msk.f32.vlgmr.msrb.gmra.mxu2 %vm230_vm0, %v791_v43 }
 0xbd9   :  { %1045 = vmatpush.msrb.mxu2 %v1649_v33 }
 0xbdb   :  { %1046 = vmatpush.msrb.mxu2 %v1655_v35 }
 0xbdd   :  { %1047 = vmatpush.msrb.mxu2 %v1667_v40 }
 0xbdf   :  { %1048 = vmatpush.msrb.mxu2 %v1673_v42 }
 0xc3b   :  { %v853_v24 = vpop.f32.mrf.mxu3 }
 0xc3c   :  { %v856_v25 = vadd.f32 %v853_v24, %v1711_v56 }
 0xc3e   :  { %1432 = vtanh.f32 %v856_v25  ;;  %v879_v35 = vmul.f32 0.5, %v856_v25 }
 0xc44   :  { %v1433_v30 = vpop.eup %1432 }
 0xc45   :  { %886 = vrot.lane.b32.xlu1 %v1433_v30, %s1552_s0 }
 0xc5b   :  { %v826_v49 = vpop.f32.mrf.mxu2 }
 0xc5c   :  { %v829_v50 = vadd.f32 %v826_v49, %v153_v48  ;;  %v1159_v48 = vld [vmem:[#allocation7 + $0x18] sm:$0xff]  ;;  %v1158_v49 = vld [vmem:[#allocation7 + $0x10] sm:$0xff] }
 0xc5d   :  { %1196 = vmatpush.msrb.mxu0 %v1159_v48 }
 0xc5e   :  { %1434 = vtanh.f32 %v829_v50  ;;  %v857_v40 = vmul.f32 0.5, %v829_v50  ;;  %v1157_v50 = vld [vmem:[#allocation7 + $0x8] sm:$0xff] }
 0xc5f   :  { %1436 = vtanh.f32 %v879_v35  ;;  %1197 = vmatpush.msrb.mxu0 %v1158_v49 }
 0xc60   :  { %1438 = vtanh.f32 %v857_v40 }
 0xc61   :  { %1198 = vmatpush.msrb.mxu0 %v1157_v50 }
 0xc64   :  { %v1435_v33 = vpop.eup %1434 }
 0xc65   :  { %864 = vrot.lane.b32.xlu2 %v1435_v33, %s1552_s0  ;;  %v1437_v42 = vpop.eup %1436  ;;  %v1156_v33 = vld [vmem:[#allocation7] sm:$0xff] }
 0xc66   :  { %v881_v51 = vmul.f32 0.5, %v1437_v42  ;;  %v1439_v53 = vpop.eup %1438  ;;  %1199 = vmatpush.msrb.mxu0 %v1156_v33  ;;  %v1138_v42 = vld [vmem:[#allocation3 + $0x10] sm:$0xff] }
 0xc67   :  { %v859_v57 = vmul.f32 0.5, %v1439_v53  ;;  %v1151_v53 = vld [vmem:[#allocation4 + $0x18] sm:$0xff] }
 0xc68   :  { %v882_v56 = vadd.f32 0.5, %v881_v51 }
 0xc69   :  { %v860_v59 = vadd.f32 0.5, %v859_v57 }
 0xc6a   :  { %v884_v1 = vmul.f32 %v882_v56, %v782_v27 }
 0xc6b   :  { %v862_v5 = vmul.f32 %v860_v59, %v760_v60 }
 0xcb7   :  { %v887_v62 = vpop.permute.xlu1 %886 }
 0xcb8   :  { %v889_v55 = vmul.f32 %v887_v62, %v882_v56  ;;  %v1140_v62 = vld [vmem:[#allocation3 + $0x20] sm:$0xff] }
 0xcba   :  { %891 = vrot.lane.b32.xlu0 %v889_v55, %s1553_s2  ;;  %v1152_v55 = vld [vmem:[#allocation4 + $0x20] sm:$0xff] }
 0xcbf   :  { %v865_v61 = vpop.permute.xlu2 %864 }
 0xcc0   :  { %v867_v63 = vmul.f32 %v865_v61, %v860_v59 }
 0xcc2   :  { %869 = vrot.lane.b32.xlu1 %v867_v63, %s1553_s2  ;;  %v1154_v63 = vld [vmem:[#allocation4 + $0x30] sm:$0xff] }
 0xd2c   :  { %v892_v3 = vpop.permute.xlu0 %891 }
 0xd2d   :  { %v894_v4 = vadd.f32 %v892_v3, %v884_v1  ;;  %v1155_v1 = vld [vmem:[#allocation4 + $0x38] sm:$0xff] }
 0xd2f   :  { %1440 = vtanh.f32 %v894_v4 }
 0xd34   :  { %v870_v6 = vpop.permute.xlu1 %869 }
 0xd35   :  { %v1441_v7 = vpop.eup %1440  ;;  %v872_v0 = vadd.f32 %v870_v6, %v862_v5  ;;  %v158_v5 = vpop.f32.mrf.mxu0 }
 0xd36   :  { %897 = vrot.lane.b32.xlu2 %v1441_v7, %s1552_s0  ;;  %v159_v6 = vadd.f32 %v158_v5, %v1721_v2 }
 0xd37   :  { %1442 = vtanh.f32 %v872_v0 }
 0xd3d   :  { %v1443_v8 = vpop.eup %1442 }
 0xd3e   :  { %875 = vrot.lane.b32.xlu0 %v1443_v8, %s1552_s0 }
 0xd90   :  { %v898_v9 = vpop.permute.xlu2 %897 }
 0xd91   :  { %v900_v10 = vmul.f32 %v898_v9, %v882_v56  ;;  %v1139_v56 = vld [vmem:[#allocation3 + $0x18] sm:$0xff] }
 0xd93   :  { %908 = vrot.lane.b32.xlu1 %v900_v10, %s1553_s2  ;;  %v1918_v10 = vld [vmem:[#allocation9] ss:$0 sm:$0xff] }
 0xdb0   :  { %v876_v11 = vpop.permute.xlu0 %875 }
 0xdb1   :  { %v878_v12 = vmul.f32 %v876_v11, %v860_v59  ;;  %v1153_v59 = vld [vmem:[#allocation4 + $0x28] sm:$0xff] }
 0xdb3   :  { %902 = vrot.lane.b32.xlu2 %v878_v12, %s1553_s2 }
 0xe05   :  { %v909_v13 = vpop.permute.xlu1 %908 }
 0xe06   :  { %912 = vst.msk [vmem:[#allocation4 + $0x10] sm:$0xff] %vm230_vm0, %v909_v13  ;;  %1334 = vmatmul.msk.f32.vlgmr.msra.gmra.mxu3 %vm230_vm0, %v909_v13 }
 0xe07   :  { %1357 = vmatpush.msra.mxu3 %v1741_v44 }
 0xe09   :  { %1358 = vmatpush.msra.mxu3 %v1746_v45 }
 0xe0b   :  { %1359 = vmatpush.msra.mxu3 %v1752_v46 }
 0xe0d   :  { %v903_v14 = vpop.permute.xlu2 %902  ;;  %1360 = vmatpush.msra.mxu3 %v1758_v47  ;;  %v1150_v51 = vld [vmem:[#allocation4 + $0x10] sm:$0xff] }
 0xe0e   :  { %906 = vst.msk [vmem:[#allocation3 + $0x28] sm:$0xff] %vm230_vm0, %v903_v14  ;;  %1333 = vmatmul.msk.f32.vlgmr.msra.gmra.mxu2 %vm230_vm0, %v903_v14 }
 0xe0f   :  { %1353 = vmatpush.msra.mxu2 %v1159_v48 }
 0xe11   :  { %1354 = vmatpush.msra.mxu2 %v1158_v49 }
 0xe13   :  { %1355 = vmatpush.msra.mxu2 %v1157_v50 }
 0xe15   :  { %1356 = vmatpush.msra.mxu2 %v1156_v33  ;;  %v1141_v57 = vld [vmem:[#allocation3 + $0x28] sm:$0xff] }
 0xe89   :  { %v965_v15 = vpop.f32.mrf.mxu3 }
 0xe8a   :  { %v968_v16 = vadd.f32 %v965_v15, %v1709_v54 }
 0xe8c   :  { %1444 = vtanh.f32 %v968_v16  ;;  %v991_v46 = vmul.f32 0.5, %v968_v16 }
 0xe91   :  { %v938_v18 = vpop.f32.mrf.mxu2 }
 0xe92   :  { %v1445_v44 = vpop.eup %1444  ;;  %v941_v19 = vadd.f32 %v938_v18, %v156_v17 }
 0xe93   :  { %998 = vrot.lane.b32.xlu0 %v1445_v44, %s1552_s0 }
 0xe94   :  { %1446 = vtanh.f32 %v941_v19  ;;  %v969_v47 = vmul.f32 0.5, %v941_v19 }
 0xe95   :  { %1448 = vtanh.f32 %v991_v46 }
 0xe96   :  { %1450 = vtanh.f32 %v969_v47 }
 0xe9a   :  { %v1447_v45 = vpop.eup %1446 }
 0xe9b   :  { %976 = vrot.lane.b32.xlu1 %v1447_v45, %s1552_s0  ;;  %v1449_v20 = vpop.eup %1448 }
 0xe9c   :  { %v993_v21 = vmul.f32 0.5, %v1449_v20  ;;  %v1451_v22 = vpop.eup %1450 }
 0xe9d   :  { %v971_v27 = vmul.f32 0.5, %v1451_v22 }
 0xe9e   :  { %v994_v54 = vadd.f32 0.5, %v993_v21 }
 0xe9f   :  { %v972_v28 = vadd.f32 0.5, %v971_v27 }
 0xea0   :  { %v996_v60 = vmul.f32 %v994_v54, %v894_v4 }
 0xea1   :  { %v974_v38 = vmul.f32 %v972_v28, %v872_v0 }
 0xf05   :  { %v999_v23 = vpop.permute.xlu0 %998 }
 0xf06   :  { %v1001_v26 = vmul.f32 %v999_v23, %v994_v54 }
 0xf08   :  { %1003 = vrot.lane.b32.xlu2 %v1001_v26, %s1553_s2 }
 0xf0d   :  { %v977_v29 = vpop.permute.xlu1 %976 }
 0xf0e   :  { %v979_v31 = vmul.f32 %v977_v29, %v972_v28 }
 0xf10   :  { %981 = vrot.lane.b32.xlu0 %v979_v31, %s1553_s2 }
 0xf62   :  { %v1004_v34 = vpop.permute.xlu2 %1003 }
 0xf63   :  { %v1890_v36 = vadd.f32 %v1004_v34, %v996_v60 }
 0xf65   :  { %1452 = vtanh.f32 %v1890_v36 }
 0xf6b   :  { %v1453_v37 = vpop.eup %1452 }
 0xf6c   :  { %1009 = vrot.lane.b32.xlu1 %v1453_v37, %s1552_s0 }
 0xf82   :  { %v982_v39 = vpop.permute.xlu0 %981 }
 0xf83   :  { %v1894_v41 = vadd.f32 %v982_v39, %v974_v38 }
 0xf85   :  { %1454 = vtanh.f32 %v1894_v41 }
 0xf8b   :  { %v1455_v43 = vpop.eup %1454 }
 0xf8c   :  { %987 = vrot.lane.b32.xlu2 %v1455_v43, %s1552_s0 }
 0xfde   :  { %v1010_v24 = vpop.permute.xlu1 %1009 }
 0xfdf   :  { %v1012_v25 = vmul.f32 %v1010_v24, %v994_v54 }
 0xfe1   :  { %1020 = vrot.lane.b32.xlu0 %v1012_v25, %s1553_s2 }
 0xfe6   :  { %v988_v30 = vpop.permute.xlu2 %987 }
 0xfe7   :  { %v990_v32 = vmul.f32 %v988_v30, %v972_v28 }
 0xfe9   :  { %1014 = vrot.lane.b32.xlu1 %v990_v32, %s1553_s2 }
0x1053   :  { %v1021_v35 = vpop.permute.xlu0 %1020 }
0x1054   :  { %1024 = vst.msk [vmem:[#allocation4 + $0x8] sm:$0xff] %vm230_vm0, %v1021_v35  ;;  %1336 = vmatmul.msk.f32.vlgmr.msrb.gmra.mxu3 %vm230_vm0, %v1021_v35 }
0x105b   :  { %v1015_v40 = vpop.permute.xlu1 %1014 }
0x105c   :  { %1018 = vst.msk [vmem:[#allocation3 + $0x30] sm:$0xff] %vm230_vm0, %v1015_v40  ;;  %1335 = vmatmul.msk.f32.vlgmr.msrb.gmra.mxu2 %vm230_vm0, %v1015_v40  ;;  %1347 = vmatmul.msk.f32.vlgmr.msra.gmra.mxu3 %vm230_vm0, %v1138_v42 }
0x1063   :  { %v1142_v61 = vld [vmem:[#allocation3 + $0x30] sm:$0xff] }
0x1064   :  { %1339 = vmatmul.msk.f32.vlgmr.msra.gmra.mxu2 %vm230_vm0, %v1150_v51  ;;  %1348 = vmatmul.msk.f32.gmra.mxu3 %vm230_vm0, %v1139_v56  ;;  %v1149_v56 = vld [vmem:[#allocation4 + $0x8] sm:$0xff] }
0x106c   :  { %1340 = vmatmul.msk.f32.gmra.mxu2 %vm230_vm0, %v1151_v53  ;;  %1349 = vmatmul.msk.f32.gmra.mxu3 %vm230_vm0, %v1140_v62 }
0x1074   :  { %1341 = vmatmul.msk.f32.gmra.mxu2 %vm230_vm0, %v1152_v55  ;;  %1350 = vmatmul.msk.f32.gmra.mxu3 %vm230_vm0, %v1141_v57  ;;  %v1266_v55 = vpop.f32.mrf.mxu1 }
0x107c   :  { %1342 = vmatmul.msk.f32.gmra.mxu2 %vm230_vm0, %v1153_v59  ;;  %1351 = vmatmul.msk.f32.gmra.mxu3 %vm230_vm0, %v1142_v61 }
0x1084   :  { %1343 = vmatmul.msk.f32.gmra.mxu2 %vm230_vm0, %v1154_v63  ;;  %v1269_v63 = vpop.f32.mrf.mxu1 }
0x108c   :  { %1344 = vmatmul.msk.f32.gmra.mxu2 %vm230_vm0, %v1155_v1 }
0x10d7   :  { %v1077_v3 = vpop.f32.mrf.mxu3 }
0x10d8   :  { %v1080_v4 = vadd.f32 %v1077_v3, %v1707_v52 }
0x10da   :  { %1456 = vtanh.f32 %v1080_v4  ;;  %v1103_v23 = vmul.f32 0.5, %v1080_v4 }
0x10df   :  { %v1050_v7 = vpop.f32.mrf.mxu2  ;;  %v1272_v0 = vpop.f32.mrf.mxu3 }
0x10e0   :  { %v1457_v8 = vpop.eup %1456  ;;  %v1053_v9 = vadd.f32 %v1050_v7, %v159_v6 }
0x10e1   :  { %1110 = vrot.lane.b32.xlu2 %v1457_v8, %s1552_s0 }
0x10e2   :  { %1458 = vtanh.f32 %v1053_v9  ;;  %v1081_v60 = vmul.f32 0.5, %v1053_v9 }
0x10e3   :  { %1460 = vtanh.f32 %v1103_v23 }
0x10e4   :  { %1462 = vtanh.f32 %v1081_v60 }
0x10e7   :  { %v1207_v11 = vpop.f32.mrf.mxu2  ;;  %v1275_v14 = vpop.f32.mrf.mxu3 }
0x10e8   :  { %v1459_v12 = vpop.eup %1458  ;;  %v1273_v13 = vadd.f32 %v1272_v0, %v1207_v11 }
0x10e9   :  { %1088 = vrot.lane.b32.xlu0 %v1459_v12, %s1552_s0  ;;  %v1461_v26 = vpop.eup %1460 }
0x10ea   :  { %v1296_v52 = vadd.f32 %v1918_v10, %v1273_v13  ;;  %v1105_v27 = vmul.f32 0.5, %v1461_v26  ;;  %v1463_v34 = vpop.eup %1462 }
0x10eb   :  { %v1083_v37 = vmul.f32 0.5, %v1463_v34 }
0x10ec   :  { %1304 = vst [vmem:[%s1974_s8 + $0x10] sm:$0xff] %v1296_v52  ;;  %v1106_v28 = vadd.f32 0.5, %v1105_v27 }
0x10ed   :  { %v1084_v38 = vadd.f32 0.5, %v1083_v37 }
0x10ee   :  { %v1108_v24 = vmul.f32 %v1106_v28, %v1890_v36 }
0x10ef   :  { %v1210_v2 = vpop.f32.mrf.mxu2  ;;  %v1278_v58 = vpop.f32.mrf.mxu3  ;;  %v1086_v32 = vmul.f32 %v1084_v38, %v1894_v41 }
0x10f0   :  { %v1276_v15 = vadd.f32 %v1275_v14, %v1210_v2 }
0x10f2   :  { %v1297_v16 = vadd.f32 %v1918_v10, %v1276_v15 }
0x10f4   :  { %1305 = vst [vmem:[%s1974_s8 + $0x18] sm:$0xff] %v1297_v16 }
0x10f7   :  { %v1213_v17 = vpop.f32.mrf.mxu2  ;;  %v1281_v19 = vpop.f32.mrf.mxu3 }
0x10f8   :  { %v1279_v18 = vadd.f32 %v1278_v58, %v1213_v17 }
0x10fa   :  { %v1298_v44 = vadd.f32 %v1918_v10, %v1279_v18 }
0x10fc   :  { %1306 = vst [vmem:[%s1974_s8 + $0x20] sm:$0xff] %v1298_v44 }
0x10ff   :  { %v1216_v45 = vpop.f32.mrf.mxu2  ;;  %v1284_v20 = vpop.f32.mrf.mxu3 }
0x1100   :  { %v1282_v46 = vadd.f32 %v1281_v19, %v1216_v45 }
0x1102   :  { %v1299_v47 = vadd.f32 %v1918_v10, %v1282_v46 }
0x1104   :  { %1307 = vst [vmem:[%s1974_s8 + $0x28] sm:$0xff] %v1299_v47 }
0x1107   :  { %v1219_v21 = vpop.f32.mrf.mxu2 }
0x1108   :  { %v1285_v54 = vadd.f32 %v1284_v20, %v1219_v21 }
0x110a   :  { %v1300_v22 = vadd.f32 %v1918_v10, %v1285_v54 }
0x110c   :  { %1308 = vst [vmem:[%s1974_s8 + $0x30] sm:$0xff] %v1300_v22 }
0x110f   :  { %v1222_v5 = vpop.f32.mrf.mxu2 }
0x113b   :  { %v1111_v29 = vpop.permute.xlu2 %1110 }
0x113c   :  { %v1113_v31 = vmul.f32 %v1111_v29, %v1106_v28 }
0x113e   :  { %1115 = vrot.lane.b32.xlu1 %v1113_v31, %s1553_s2 }
0x115b   :  { %v1089_v39 = vpop.permute.xlu0 %1088 }
0x115c   :  { %v1091_v43 = vmul.f32 %v1089_v39, %v1084_v38 }
0x115e   :  { %1093 = vrot.lane.b32.xlu2 %v1091_v43, %s1553_s2 }
0x11b0   :  { %v1116_v25 = vpop.permute.xlu1 %1115 }
0x11b1   :  { %v1118_v30 = vadd.f32 %v1116_v25, %v1108_v24 }
0x11b3   :  { %1464 = vtanh.f32 %v1118_v30 }
0x11b8   :  { %v1094_v48 = vpop.permute.xlu2 %1093 }
0x11b9   :  { %v1465_v49 = vpop.eup %1464  ;;  %v1096_v50 = vadd.f32 %v1094_v48, %v1086_v32 }
0x11ba   :  { %1121 = vrot.lane.b32.xlu0 %v1465_v49, %s1552_s0 }
0x11bb   :  { %1466 = vtanh.f32 %v1096_v50 }
0x11c1   :  { %v1467_v33 = vpop.eup %1466 }
0x11c2   :  { %1099 = vrot.lane.b32.xlu1 %v1467_v33, %s1552_s0 }
0x122c   :  { %v1122_v35 = vpop.permute.xlu0 %1121 }
0x122d   :  { %v1124_v40 = vmul.f32 %v1122_v35, %v1106_v28 }
0x122f   :  { %1132 = vrot.lane.b32.xlu2 %v1124_v40, %s1553_s2 }
0x1234   :  { %v1100_v42 = vpop.permute.xlu1 %1099 }
0x1235   :  { %v1102_v36 = vmul.f32 %v1100_v42, %v1084_v38 }
0x1237   :  { %1126 = vrot.lane.b32.xlu0 %v1102_v36, %s1553_s2 }
0x1289   :  { %v1133_v51 = vpop.permute.xlu2 %1132 }
0x128a   :  { %1135 = vst.msk [vmem:[#allocation4] sm:$0xff] %vm230_vm0, %v1133_v51 }
0x1291   :  { %v1148_v41 = vld [vmem:[#allocation4] sm:$0xff] }
0x1292   :  { %1337 = vmatmul.msk.f32.vlgmr.msrb.gmra.mxu0 %vm230_vm0, %v1148_v41 }
0x129a   :  { %1338 = vmatmul.msk.f32.gmra.mxu0 %vm230_vm0, %v1149_v56 }
0x12a9   :  { %v1127_v53 = vpop.permute.xlu0 %1126 }
0x12aa   :  { %1130 = vst.msk [vmem:[#allocation3 + $0x38] sm:$0xff] %vm230_vm0, %v1127_v53 }
0x12b1   :  { %v1143_v62 = vld [vmem:[#allocation3 + $0x38] sm:$0xff] }
0x12b2   :  { %1352 = vmatmul.msk.f32.gmra.mxu3 %vm230_vm0, %v1143_v62 }
0x130f   :  { %v1201_v57 = vpop.f32.mrf.mxu0 }
0x1310   :  { %v1267_v59 = vadd.f32 %v1266_v55, %v1201_v57 }
0x1312   :  { %v1294_v61 = vadd.f32 %v1918_v10, %v1267_v59 }
0x1314   :  { %1302 = vst [vmem:[%s1974_s8] sm:$0xff] %v1294_v61 }
0x1317   :  { %v1204_v1 = vpop.f32.mrf.mxu0 }
0x1318   :  { %v1270_v3 = vadd.f32 %v1269_v63, %v1204_v1 }
0x131a   :  { %v1295_v4 = vadd.f32 %v1918_v10, %v1270_v3 }
0x131c   :  { %1303 = vst [vmem:[%s1974_s8 + $0x8] sm:$0xff] %v1295_v4 }
0x1335   :  { %v1287_v6 = vpop.f32.mrf.mxu3 }
0x1336   :  { %v1288_v7 = vadd.f32 %v1287_v6, %v1222_v5 }
0x1338   :  { %v1301_v0 = vadd.f32 %v1918_v10, %v1288_v7 }
0x133a   :  { %1309 = vst [vmem:[%s1974_s8 + $0x38] sm:$0xff] %v1301_v0 }
0x133b   :  { %1314 = vsyncpa [#allocation6], 1 }
0x133c   :  { %1315 = vsyncpa [#allocation8], 1 }

</bundles_post_ra>
